<compile_context>
chip_gen: v7x
topology: tpu7x:2x2x1
jax: 0.10.0
libtpu: 0.0.40
codegen_flags: <defaults>
</compile_context>

<pallas_src>
import math
from functools import partial

import jax
import jax.numpy as jnp
from jax.experimental import pallas as pl
from jax.experimental.pallas import tpu as pltpu


def _layer_norm(x, g, b, eps=1e-5):
    mu = jnp.mean(x, axis=-1, keepdims=True)
    var = jnp.mean((x - mu) ** 2, axis=-1, keepdims=True)
    return (x - mu) * jax.lax.rsqrt(var + eps) * g + b


def _fft_block_plus_kernel(n_head,
                           x_ref, mem_ref, qm_ref, kb_ref,
                           wq_ref, wk_ref, wv_ref, wo_ref,
                           w1_ref, w2_ref, sp_ref, b1_ref,
                           out_ref):
    """All four FFT blocks for one batch element (grid = (B,))."""
    T, D = x_ref.shape[1], x_ref.shape[2]
    dk = D // n_head
    scale = 1.0 / math.sqrt(dk)

    qm = qm_ref[0]                               # (T, 1) f32 : 1 = valid query frame
    kb = kb_ref[0]                               # (1, T) f32 : 0 valid key, -1e9 padded key
    x = x_ref[0].astype(jnp.float32)             # running activation, kept in f32
    mem = mem_ref[0].astype(jnp.float32)

    # Layer order inside fft_block_plus: fft_b_1, fft_ab_1, fft_b_2, fft_ab_2
    for layer, add_block in enumerate((False, True, False, True)):
        w1 = w1_ref[layer]                       # (D, H)  bf16
        w2 = w2_ref[layer]                       # (H, D)  bf16
        sp = sp_ref[layer]                       # (11, D) f32 packed small params
        bq, bk, bv, bo = sp[0:1], sp[1:2], sp[2:3], sp[3:4]
        ln1g, ln1b = sp[4:5], sp[5:6]
        lnag, lnab = sp[6:7], sp[7:8]
        b2, ln2g, ln2b = sp[8:9], sp[9:10], sp[10:11]
        b1 = b1_ref[layer]                       # (1, H)  f32

        # --- MultiHeadedAttention_v2 (head-split weights, bf16 MXU, f32 softmax) ---
        xb = x.astype(jnp.bfloat16)
        att = None
        for h in range(n_head):                  # static, small head count (unrolled)
            lo = h * dk
            qh = (jnp.dot(xb, wq_ref[layer, h],
                          preferred_element_type=jnp.float32)
                  + bq[:, lo:lo + dk]) * scale            # (T, dk) f32, scale folded in
            kh = jnp.dot(xb, wk_ref[layer, h],
                         preferred_element_type=jnp.float32) + bk[:, lo:lo + dk]
            vh = jnp.dot(xb, wv_ref[layer, h],
                         preferred_element_type=jnp.float32) + bv[:, lo:lo + dk]

            s = jnp.dot(qh.astype(jnp.bfloat16), kh.astype(jnp.bfloat16).T,
                        preferred_element_type=jnp.float32) + kb   # additive key mask
            a = jax.nn.softmax(s, axis=-1)                          # f32
            a = a * qm                                              # zero padded query rows

            ctx_h = jnp.dot(a.astype(jnp.bfloat16), vh.astype(jnp.bfloat16),
                            preferred_element_type=jnp.float32)     # (T, dk)
            oh = jnp.dot(ctx_h.astype(jnp.bfloat16), wo_ref[layer, h],
                         preferred_element_type=jnp.float32)         # (T, D)
            att = oh if att is None else att + oh                    # == concat(ctx) @ Wo

        out = att + bo
        if add_block:
            out = out + x                        # residual=True path (fft_block_add)

        # --- layer_norm_1 ---
        out = _layer_norm(out, ln1g, ln1b)

        # --- Add_norm (fft_block_add only): LN(out + memory * query_mask) ---
        if add_block:
            out = _layer_norm(out + mem * qm, lnag, lnab)

        # --- FFN: 1x1 conv -> relu -> 1x1 conv, residual, query-masked ---
        hdn = jnp.maximum(
            jnp.dot(out.astype(jnp.bfloat16), w1,
                    preferred_element_type=jnp.float32) + b1, 0.0)
        ffn = jnp.dot(hdn.astype(jnp.bfloat16), w2,
                      preferred_element_type=jnp.float32) + b2
        ffn = (ffn + out) * qm

        # --- layer_norm_2 ---
        x = _layer_norm(ffn, ln2g, ln2b)

    out_ref[0] = x.astype(out_ref.dtype)


def fft_block_plus_forward(query, memory, attn_mask, query_mask, all_params, n_head=4):
    """Fused forward of fft_block_plus (4 blocks) in a single pallas_call.

    attn_mask is accepted for API parity but not DMA'd: as in the reference usage it is the
    outer product of query_mask, which the kernel reconstructs from query_mask alone.
    """
    del attn_mask
    B, T, D = query.shape
    H = 4 * D
    dk = D // n_head
    layers = ("b1", "ab1", "b2", "ab2")

    qm3 = query_mask.reshape(B, T, 1).astype(jnp.float32)
    key_bias = ((query_mask.astype(jnp.float32) - 1.0) * 1e9).reshape(B, 1, T)

    # Head-split weights on the host (free) -> no lane-offset slicing inside the kernel.
    def split_out(w):   # (D, D) -> (n_head, D, dk)   [columns h*dk:(h+1)*dk]
        return w.reshape(D, n_head, dk).transpose(1, 0, 2)

    WQ = jnp.stack([split_out(all_params[l]["wq"]) for l in layers]).astype(jnp.bfloat16)
    WK = jnp.stack([split_out(all_params[l]["wk"]) for l in layers]).astype(jnp.bfloat16)
    WV = jnp.stack([split_out(all_params[l]["wv"]) for l in layers]).astype(jnp.bfloat16)
    WO = jnp.stack([all_params[l]["wo"].reshape(n_head, dk, D)
                    for l in layers]).astype(jnp.bfloat16)          # (4, n_head, dk, D)
    W1 = jnp.stack([all_params[l]["w1"] for l in layers]).astype(jnp.bfloat16)  # (4, D, H)
    W2 = jnp.stack([all_params[l]["w2"] for l in layers]).astype(jnp.bfloat16)  # (4, H, D)

    ones_d = jnp.ones((1, D), jnp.float32)
    zeros_d = jnp.zeros((1, D), jnp.float32)
    SP = jnp.stack([jnp.concatenate(
        [p["bq"], p["bk"], p["bv"], p["bo"],
         p["ln1g"], p["ln1b"],
         p.get("lnag", ones_d), p.get("lnab", zeros_d),
         p["b2"], p["ln2g"], p["ln2b"]], axis=0)
        for p in (all_params[l] for l in layers)]).astype(jnp.float32)   # (4, 11, D)
    B1 = jnp.stack([all_params[l]["b1"] for l in layers]).astype(jnp.float32)  # (4, 1, H)

    batched3 = lambda b: (b, 0, 0)
    rep4 = lambda b: (0, 0, 0, 0)
    rep3 = lambda b: (0, 0, 0)

    in_specs = [
        pl.BlockSpec((1, T, D), batched3),                 # x            (bf16)
        pl.BlockSpec((1, T, D), batched3),                 # memory       (bf16)
        pl.BlockSpec((1, T, 1), batched3),                 # query mask   (f32)
        pl.BlockSpec((1, 1, T), batched3),                 # key bias     (f32)
        pl.BlockSpec((4, n_head, D, dk), rep4),            # WQ
        pl.BlockSpec((4, n_head, D, dk), rep4),            # WK
        pl.BlockSpec((4, n_head, D, dk), rep4),            # WV
        pl.BlockSpec((4, n_head, dk, D), rep4),            # WO
        pl.BlockSpec((4, D, H), rep3),                     # W1
        pl.BlockSpec((4, H, D), rep3),                     # W2
        pl.BlockSpec((4, 11, D), rep3),                    # packed small params
        pl.BlockSpec((4, 1, H), rep3),                     # FFN hidden bias
    ]

    fn = pl.pallas_call(
        partial(_fft_block_plus_kernel, n_head),
        out_shape=jax.ShapeDtypeStruct((B, T, D), jnp.float32),
        grid=(B,),
        in_specs=in_specs,
        out_specs=pl.BlockSpec((1, T, D), batched3),
        compiler_params=pltpu.CompilerParams(
            dimension_semantics=("parallel",),             # use both TCs on v7x
            vmem_limit_bytes=32 * 1024 * 1024,
        ),
    )
    return fn(query.astype(jnp.bfloat16), memory.astype(jnp.bfloat16),
              qm3, key_bias, WQ, WK, WV, WO, W1, W2, SP, B1)


def init_block_params(key, D, add_block):
    H = 4 * D
    keys = jax.random.split(key, 6)
    lin = lambda k, din, dout: (jax.random.normal(k, (din, dout), jnp.float32) * 0.05)
    p = {
        "wq": lin(keys[0], D, D), "bq": jnp.zeros((1, D), jnp.float32),
        "wk": lin(keys[1], D, D), "bk": jnp.zeros((1, D), jnp.float32),
        "wv": lin(keys[2], D, D), "bv": jnp.zeros((1, D), jnp.float32),
        "wo": lin(keys[3], D, D), "bo": jnp.zeros((1, D), jnp.float32),
        "ln1g": jnp.ones((1, D), jnp.float32), "ln1b": jnp.zeros((1, D), jnp.float32),
        "w1": lin(keys[4], D, H), "b1": jnp.zeros((1, H), jnp.float32),
        "w2": lin(keys[5], H, D), "b2": jnp.zeros((1, D), jnp.float32),
        "ln2g": jnp.ones((1, D), jnp.float32), "ln2b": jnp.zeros((1, D), jnp.float32),
    }
    if add_block:
        p["lnag"] = jnp.ones((1, D), jnp.float32)
        p["lnab"] = jnp.zeros((1, D), jnp.float32)
    return p


if __name__ == "__main__":
    B, T, D, n_head = 2, 8, 32, 4
    # NOTE: for real workloads pick D (and 4D) as multiples of 128 and T a multiple of 8
    # so output stores are lane-dense; the tiny test shapes here just exercise correctness.

    key = jax.random.PRNGKey(0)
    k_q, k_m, k_b1, k_ab1, k_b2, k_ab2 = jax.random.split(key, 6)

    query = jax.random.normal(k_q, (B, T, D), jnp.float32)
    memory = jax.random.normal(k_m, (B, T, D), jnp.float32)

    # query_mask: 1 for valid frames, 0 for padding (batch 1 has 2 padded frames).
    query_mask = jnp.ones((B, T), jnp.float32).at[1, -2:].set(0.0)
    # attn_mask: pairwise validity mask (1 = attend) — kept for API parity; the kernel
    # reconstructs it from query_mask and never DMAs the [B,T,T] array.
    attn_mask = query_mask[:, :, None] * query_mask[:, None, :]

    all_params = {
        "b1": init_block_params(k_b1, D, add_block=False),
        "ab1": init_block_params(k_ab1, D, add_block=True),
        "b2": init_block_params(k_b2, D, add_block=False),
        "ab2": init_block_params(k_ab2, D, add_block=True),
    }

    out = fft_block_plus_forward(query, memory, attn_mask, query_mask, all_params,
                                 n_head=n_head)
    out = jax.block_until_ready(out)
    assert out.shape == (B, T, D) and bool(jnp.all(jnp.isfinite(out)))
    print("KERNEL_OK")
</pallas_src>

<mosaic_0001>
module attributes {stable_mosaic.version = 11 : i64} {
  func.func @_fft_block_plus_kernel(%arg0: i32, %arg1: memref<1x8x32xbf16, #tpu.memory_space<vmem>>, %arg2: memref<1x8x32xbf16, #tpu.memory_space<vmem>>, %arg3: memref<1x8x1xf32, #tpu.memory_space<vmem>>, %arg4: memref<1x1x8xf32, #tpu.memory_space<vmem>>, %arg5: memref<4x4x32x8xbf16, #tpu.memory_space<vmem>>, %arg6: memref<4x4x32x8xbf16, #tpu.memory_space<vmem>>, %arg7: memref<4x4x32x8xbf16, #tpu.memory_space<vmem>>, %arg8: memref<4x4x8x32xbf16, #tpu.memory_space<vmem>>, %arg9: memref<4x32x128xbf16, #tpu.memory_space<vmem>>, %arg10: memref<4x128x32xbf16, #tpu.memory_space<vmem>>, %arg11: memref<4x11x32xf32, #tpu.memory_space<vmem>>, %arg12: memref<4x1x128xf32, #tpu.memory_space<vmem>>, %arg13: memref<1x8x32xf32, #tpu.memory_space<vmem>>) attributes {dimension_semantics = [#tpu.dimension_semantics<parallel>], iteration_bounds = array<i64: 2>, scalar_prefetch = 0 : i64, scratch_operands = 0 : i64, tpu.core_type = #tpu.core_type<tc>, window_params = [{transform_indices = @transform_0, window_bounds = array<i64: 1, 8, 32>}, {transform_indices = @transform_1, window_bounds = array<i64: 1, 8, 32>}, {transform_indices = @transform_2, window_bounds = array<i64: 1, 8, 1>}, {transform_indices = @transform_3, window_bounds = array<i64: 1, 1, 8>}, {pipeline_mode = #tpu.pipeline_mode<synchronous>, transform_indices = @transform_4, window_bounds = array<i64: 4, 4, 32, 8>}, {pipeline_mode = #tpu.pipeline_mode<synchronous>, transform_indices = @transform_5, window_bounds = array<i64: 4, 4, 32, 8>}, {pipeline_mode = #tpu.pipeline_mode<synchronous>, transform_indices = @transform_6, window_bounds = array<i64: 4, 4, 32, 8>}, {pipeline_mode = #tpu.pipeline_mode<synchronous>, transform_indices = @transform_7, window_bounds = array<i64: 4, 4, 8, 32>}, {pipeline_mode = #tpu.pipeline_mode<synchronous>, transform_indices = @transform_8, window_bounds = array<i64: 4, 32, 128>}, {pipeline_mode = #tpu.pipeline_mode<synchronous>, transform_indices = @transform_9, window_bounds = array<i64: 4, 128, 32>}, {pipeline_mode = #tpu.pipeline_mode<synchronous>, transform_indices = @transform_10, window_bounds = array<i64: 4, 11, 32>}, {pipeline_mode = #tpu.pipeline_mode<synchronous>, transform_indices = @transform_11, window_bounds = array<i64: 4, 1, 128>}, {transform_indices = @transform_12, window_bounds = array<i64: 1, 8, 32>}]} {
    %c0 = arith.constant 0 : index
    %c0_0 = arith.constant 0 : index
    %c0_1 = arith.constant 0 : index
    %0 = vector.load %arg3[%c0, %c0_0, %c0_1] : memref<1x8x1xf32, #tpu.memory_space<vmem>>, vector<1x8x1xf32>
    %1 = vector.shape_cast %0 : vector<1x8x1xf32> to vector<8x1xf32>
    %c0_2 = arith.constant 0 : index
    %c0_3 = arith.constant 0 : index
    %c0_4 = arith.constant 0 : index
    %2 = vector.load %arg4[%c0_2, %c0_3, %c0_4] : memref<1x1x8xf32, #tpu.memory_space<vmem>>, vector<1x1x8xf32>
    %3 = vector.shape_cast %2 : vector<1x1x8xf32> to vector<1x8xf32>
    %c0_5 = arith.constant 0 : index
    %c0_6 = arith.constant 0 : index
    %c0_7 = arith.constant 0 : index
    %4 = vector.load %arg1[%c0_5, %c0_6, %c0_7] : memref<1x8x32xbf16, #tpu.memory_space<vmem>>, vector<1x8x32xbf16>
    %5 = vector.shape_cast %4 : vector<1x8x32xbf16> to vector<8x32xbf16>
    %6 = arith.extf %5 : vector<8x32xbf16> to vector<8x32xf32>
    %c0_8 = arith.constant 0 : index
    %c0_9 = arith.constant 0 : index
    %c0_10 = arith.constant 0 : index
    %7 = vector.load %arg2[%c0_8, %c0_9, %c0_10] : memref<1x8x32xbf16, #tpu.memory_space<vmem>>, vector<1x8x32xbf16>
    %8 = vector.shape_cast %7 : vector<1x8x32xbf16> to vector<8x32xbf16>
    %9 = arith.extf %8 : vector<8x32xbf16> to vector<8x32xf32>
    %c0_11 = arith.constant 0 : index
    %c0_12 = arith.constant 0 : index
    %c0_13 = arith.constant 0 : index
    %10 = vector.load %arg9[%c0_11, %c0_12, %c0_13] : memref<4x32x128xbf16, #tpu.memory_space<vmem>>, vector<1x32x128xbf16>
    %11 = vector.shape_cast %10 : vector<1x32x128xbf16> to vector<32x128xbf16>
    %c0_14 = arith.constant 0 : index
    %c0_15 = arith.constant 0 : index
    %c0_16 = arith.constant 0 : index
    %12 = vector.load %arg10[%c0_14, %c0_15, %c0_16] : memref<4x128x32xbf16, #tpu.memory_space<vmem>>, vector<1x128x32xbf16>
    %13 = vector.shape_cast %12 : vector<1x128x32xbf16> to vector<128x32xbf16>
    %c0_17 = arith.constant 0 : index
    %c0_18 = arith.constant 0 : index
    %c0_19 = arith.constant 0 : index
    %14 = vector.load %arg11[%c0_17, %c0_18, %c0_19] : memref<4x11x32xf32, #tpu.memory_space<vmem>>, vector<1x11x32xf32>
    %15 = vector.shape_cast %14 : vector<1x11x32xf32> to vector<11x32xf32>
    %16 = vector.extract_strided_slice %15 {offsets = [0, 0], sizes = [1, 32], strides = [1, 1]} : vector<11x32xf32> to vector<1x32xf32>
    %17 = vector.extract_strided_slice %15 {offsets = [1, 0], sizes = [1, 32], strides = [1, 1]} : vector<11x32xf32> to vector<1x32xf32>
    %18 = vector.extract_strided_slice %15 {offsets = [2, 0], sizes = [1, 32], strides = [1, 1]} : vector<11x32xf32> to vector<1x32xf32>
    %19 = vector.extract_strided_slice %15 {offsets = [3, 0], sizes = [1, 32], strides = [1, 1]} : vector<11x32xf32> to vector<1x32xf32>
    %20 = vector.extract_strided_slice %15 {offsets = [4, 0], sizes = [1, 32], strides = [1, 1]} : vector<11x32xf32> to vector<1x32xf32>
    %21 = vector.extract_strided_slice %15 {offsets = [5, 0], sizes = [1, 32], strides = [1, 1]} : vector<11x32xf32> to vector<1x32xf32>
    %22 = vector.extract_strided_slice %15 {offsets = [8, 0], sizes = [1, 32], strides = [1, 1]} : vector<11x32xf32> to vector<1x32xf32>
    %23 = vector.extract_strided_slice %15 {offsets = [9, 0], sizes = [1, 32], strides = [1, 1]} : vector<11x32xf32> to vector<1x32xf32>
    %24 = vector.extract_strided_slice %15 {offsets = [10, 0], sizes = [1, 32], strides = [1, 1]} : vector<11x32xf32> to vector<1x32xf32>
    %c0_20 = arith.constant 0 : index
    %c0_21 = arith.constant 0 : index
    %c0_22 = arith.constant 0 : index
    %25 = vector.load %arg12[%c0_20, %c0_21, %c0_22] : memref<4x1x128xf32, #tpu.memory_space<vmem>>, vector<1x1x128xf32>
    %26 = vector.shape_cast %25 : vector<1x1x128xf32> to vector<1x128xf32>
    %27 = arith.truncf %6 : vector<8x32xf32> to vector<8x32xbf16>
    %c0_23 = arith.constant 0 : index
    %c0_24 = arith.constant 0 : index
    %c0_25 = arith.constant 0 : index
    %c0_26 = arith.constant 0 : index
    %28 = vector.load %arg5[%c0_23, %c0_24, %c0_25, %c0_26] : memref<4x4x32x8xbf16, #tpu.memory_space<vmem>>, vector<1x1x32x8xbf16>
    %29 = vector.shape_cast %28 : vector<1x1x32x8xbf16> to vector<32x8xbf16>
    %cst = arith.constant dense<0.000000e+00> : vector<8x8xf32>
    %30 = tpu.matmul %27, %29, %cst {dimension_numbers = #tpu.dot_dimension_numbers<[1], [0], [0], [1], [0, 0, 1, 1], [], []>} : vector<8x32xbf16>, vector<32x8xbf16>, vector<8x8xf32> -> vector<8x8xf32>
    %31 = vector.extract_strided_slice %16 {offsets = [0, 0], sizes = [1, 8], strides = [1, 1]} : vector<1x32xf32> to vector<1x8xf32>
    %32 = vector.broadcast %31 : vector<1x8xf32> to vector<8x8xf32>
    %33 = arith.addf %30, %32 : vector<8x8xf32>
    %cst_27 = arith.constant 0.353553385 : f32
    %34 = vector.broadcast %cst_27 : f32 to vector<8x8xf32>
    %35 = arith.mulf %33, %34 : vector<8x8xf32>
    %c0_28 = arith.constant 0 : index
    %c0_29 = arith.constant 0 : index
    %c0_30 = arith.constant 0 : index
    %c0_31 = arith.constant 0 : index
    %36 = vector.load %arg6[%c0_28, %c0_29, %c0_30, %c0_31] : memref<4x4x32x8xbf16, #tpu.memory_space<vmem>>, vector<1x1x32x8xbf16>
    %37 = vector.shape_cast %36 : vector<1x1x32x8xbf16> to vector<32x8xbf16>
    %cst_32 = arith.constant dense<0.000000e+00> : vector<8x8xf32>
    %38 = tpu.matmul %27, %37, %cst_32 {dimension_numbers = #tpu.dot_dimension_numbers<[1], [0], [0], [1], [0, 0, 1, 1], [], []>} : vector<8x32xbf16>, vector<32x8xbf16>, vector<8x8xf32> -> vector<8x8xf32>
    %39 = vector.extract_strided_slice %17 {offsets = [0, 0], sizes = [1, 8], strides = [1, 1]} : vector<1x32xf32> to vector<1x8xf32>
    %40 = vector.broadcast %39 : vector<1x8xf32> to vector<8x8xf32>
    %41 = arith.addf %38, %40 : vector<8x8xf32>
    %c0_33 = arith.constant 0 : index
    %c0_34 = arith.constant 0 : index
    %c0_35 = arith.constant 0 : index
    %c0_36 = arith.constant 0 : index
    %42 = vector.load %arg7[%c0_33, %c0_34, %c0_35, %c0_36] : memref<4x4x32x8xbf16, #tpu.memory_space<vmem>>, vector<1x1x32x8xbf16>
    %43 = vector.shape_cast %42 : vector<1x1x32x8xbf16> to vector<32x8xbf16>
    %cst_37 = arith.constant dense<0.000000e+00> : vector<8x8xf32>
    %44 = tpu.matmul %27, %43, %cst_37 {dimension_numbers = #tpu.dot_dimension_numbers<[1], [0], [0], [1], [0, 0, 1, 1], [], []>} : vector<8x32xbf16>, vector<32x8xbf16>, vector<8x8xf32> -> vector<8x8xf32>
    %45 = vector.extract_strided_slice %18 {offsets = [0, 0], sizes = [1, 8], strides = [1, 1]} : vector<1x32xf32> to vector<1x8xf32>
    %46 = vector.broadcast %45 : vector<1x8xf32> to vector<8x8xf32>
    %47 = arith.addf %44, %46 : vector<8x8xf32>
    %48 = arith.truncf %35 : vector<8x8xf32> to vector<8x8xbf16>
    %49 = arith.truncf %41 : vector<8x8xf32> to vector<8x8xbf16>
    %50 = tpu.transpose %49, [1, 0] : vector<8x8xbf16> -> vector<8x8xbf16>
    %cst_38 = arith.constant dense<0.000000e+00> : vector<8x8xf32>
    %51 = tpu.matmul %48, %50, %cst_38 {dimension_numbers = #tpu.dot_dimension_numbers<[1], [0], [0], [1], [0, 0, 1, 1], [], []>} : vector<8x8xbf16>, vector<8x8xbf16>, vector<8x8xf32> -> vector<8x8xf32>
    %52 = vector.broadcast %3 : vector<1x8xf32> to vector<8x8xf32>
    %53 = arith.addf %51, %52 : vector<8x8xf32>
    %cst_39 = arith.constant dense<0xFF800000> : vector<8xf32>
    %54 = vector.multi_reduction <maximumf>, %53, %cst_39 [1] : vector<8x8xf32> to vector<8xf32>
    %cst_40 = arith.constant 0xFF800000 : f32
    %55 = vector.broadcast %cst_40 : f32 to vector<8xf32>
    %56 = arith.maximumf %55, %54 : vector<8xf32>
    %57 = vector.shape_cast %56 : vector<8xf32> to vector<8x1xf32>
    %58 = vector.broadcast %57 : vector<8x1xf32> to vector<8x8xf32>
    %59 = arith.subf %53, %58 : vector<8x8xf32>
    %60 = math.exp %59 : vector<8x8xf32>
    %cst_41 = arith.constant dense<0.000000e+00> : vector<8xf32>
    %61 = vector.multi_reduction <add>, %60, %cst_41 [1] : vector<8x8xf32> to vector<8xf32>
    %62 = vector.shape_cast %61 : vector<8xf32> to vector<8x1xf32>
    %63 = vector.broadcast %62 : vector<8x1xf32> to vector<8x8xf32>
    %64 = arith.divf %60, %63 : vector<8x8xf32>
    %65 = vector.broadcast %1 : vector<8x1xf32> to vector<8x8xf32>
    %66 = arith.mulf %64, %65 : vector<8x8xf32>
    %67 = arith.truncf %66 : vector<8x8xf32> to vector<8x8xbf16>
    %68 = arith.truncf %47 : vector<8x8xf32> to vector<8x8xbf16>
    %cst_42 = arith.constant dense<0.000000e+00> : vector<8x8xf32>
    %69 = tpu.matmul %67, %68, %cst_42 {dimension_numbers = #tpu.dot_dimension_numbers<[1], [0], [0], [1], [0, 0, 1, 1], [], []>} : vector<8x8xbf16>, vector<8x8xbf16>, vector<8x8xf32> -> vector<8x8xf32>
    %70 = arith.truncf %69 : vector<8x8xf32> to vector<8x8xbf16>
    %c0_43 = arith.constant 0 : index
    %c0_44 = arith.constant 0 : index
    %c0_45 = arith.constant 0 : index
    %c0_46 = arith.constant 0 : index
    %71 = vector.load %arg8[%c0_43, %c0_44, %c0_45, %c0_46] : memref<4x4x8x32xbf16, #tpu.memory_space<vmem>>, vector<1x1x8x32xbf16>
    %72 = vector.shape_cast %71 : vector<1x1x8x32xbf16> to vector<8x32xbf16>
    %cst_47 = arith.constant dense<0.000000e+00> : vector<8x32xf32>
    %73 = tpu.matmul %70, %72, %cst_47 {dimension_numbers = #tpu.dot_dimension_numbers<[1], [0], [0], [1], [0, 0, 1, 1], [], []>} : vector<8x8xbf16>, vector<8x32xbf16>, vector<8x32xf32> -> vector<8x32xf32>
    %c0_48 = arith.constant 0 : index
    %c1 = arith.constant 1 : index
    %c0_49 = arith.constant 0 : index
    %c0_50 = arith.constant 0 : index
    %74 = vector.load %arg5[%c0_48, %c1, %c0_49, %c0_50] : memref<4x4x32x8xbf16, #tpu.memory_space<vmem>>, vector<1x1x32x8xbf16>
    %75 = vector.shape_cast %74 : vector<1x1x32x8xbf16> to vector<32x8xbf16>
    %cst_51 = arith.constant dense<0.000000e+00> : vector<8x8xf32>
    %76 = tpu.matmul %27, %75, %cst_51 {dimension_numbers = #tpu.dot_dimension_numbers<[1], [0], [0], [1], [0, 0, 1, 1], [], []>} : vector<8x32xbf16>, vector<32x8xbf16>, vector<8x8xf32> -> vector<8x8xf32>
    %77 = vector.extract_strided_slice %16 {offsets = [0, 8], sizes = [1, 8], strides = [1, 1]} : vector<1x32xf32> to vector<1x8xf32>
    %78 = vector.broadcast %77 : vector<1x8xf32> to vector<8x8xf32>
    %79 = arith.addf %76, %78 : vector<8x8xf32>
    %cst_52 = arith.constant 0.353553385 : f32
    %80 = vector.broadcast %cst_52 : f32 to vector<8x8xf32>
    %81 = arith.mulf %79, %80 : vector<8x8xf32>
    %c0_53 = arith.constant 0 : index
    %c1_54 = arith.constant 1 : index
    %c0_55 = arith.constant 0 : index
    %c0_56 = arith.constant 0 : index
    %82 = vector.load %arg6[%c0_53, %c1_54, %c0_55, %c0_56] : memref<4x4x32x8xbf16, #tpu.memory_space<vmem>>, vector<1x1x32x8xbf16>
    %83 = vector.shape_cast %82 : vector<1x1x32x8xbf16> to vector<32x8xbf16>
    %cst_57 = arith.constant dense<0.000000e+00> : vector<8x8xf32>
    %84 = tpu.matmul %27, %83, %cst_57 {dimension_numbers = #tpu.dot_dimension_numbers<[1], [0], [0], [1], [0, 0, 1, 1], [], []>} : vector<8x32xbf16>, vector<32x8xbf16>, vector<8x8xf32> -> vector<8x8xf32>
    %85 = vector.extract_strided_slice %17 {offsets = [0, 8], sizes = [1, 8], strides = [1, 1]} : vector<1x32xf32> to vector<1x8xf32>
    %86 = vector.broadcast %85 : vector<1x8xf32> to vector<8x8xf32>
    %87 = arith.addf %84, %86 : vector<8x8xf32>
    %c0_58 = arith.constant 0 : index
    %c1_59 = arith.constant 1 : index
    %c0_60 = arith.constant 0 : index
    %c0_61 = arith.constant 0 : index
    %88 = vector.load %arg7[%c0_58, %c1_59, %c0_60, %c0_61] : memref<4x4x32x8xbf16, #tpu.memory_space<vmem>>, vector<1x1x32x8xbf16>
    %89 = vector.shape_cast %88 : vector<1x1x32x8xbf16> to vector<32x8xbf16>
    %cst_62 = arith.constant dense<0.000000e+00> : vector<8x8xf32>
    %90 = tpu.matmul %27, %89, %cst_62 {dimension_numbers = #tpu.dot_dimension_numbers<[1], [0], [0], [1], [0, 0, 1, 1], [], []>} : vector<8x32xbf16>, vector<32x8xbf16>, vector<8x8xf32> -> vector<8x8xf32>
    %91 = vector.extract_strided_slice %18 {offsets = [0, 8], sizes = [1, 8], strides = [1, 1]} : vector<1x32xf32> to vector<1x8xf32>
    %92 = vector.broadcast %91 : vector<1x8xf32> to vector<8x8xf32>
    %93 = arith.addf %90, %92 : vector<8x8xf32>
    %94 = arith.truncf %81 : vector<8x8xf32> to vector<8x8xbf16>
    %95 = arith.truncf %87 : vector<8x8xf32> to vector<8x8xbf16>
    %96 = tpu.transpose %95, [1, 0] : vector<8x8xbf16> -> vector<8x8xbf16>
    %cst_63 = arith.constant dense<0.000000e+00> : vector<8x8xf32>
    %97 = tpu.matmul %94, %96, %cst_63 {dimension_numbers = #tpu.dot_dimension_numbers<[1], [0], [0], [1], [0, 0, 1, 1], [], []>} : vector<8x8xbf16>, vector<8x8xbf16>, vector<8x8xf32> -> vector<8x8xf32>
    %98 = vector.broadcast %3 : vector<1x8xf32> to vector<8x8xf32>
    %99 = arith.addf %97, %98 : vector<8x8xf32>
    %cst_64 = arith.constant dense<0xFF800000> : vector<8xf32>
    %100 = vector.multi_reduction <maximumf>, %99, %cst_64 [1] : vector<8x8xf32> to vector<8xf32>
    %cst_65 = arith.constant 0xFF800000 : f32
    %101 = vector.broadcast %cst_65 : f32 to vector<8xf32>
    %102 = arith.maximumf %101, %100 : vector<8xf32>
    %103 = vector.shape_cast %102 : vector<8xf32> to vector<8x1xf32>
    %104 = vector.broadcast %103 : vector<8x1xf32> to vector<8x8xf32>
    %105 = arith.subf %99, %104 : vector<8x8xf32>
    %106 = math.exp %105 : vector<8x8xf32>
    %cst_66 = arith.constant dense<0.000000e+00> : vector<8xf32>
    %107 = vector.multi_reduction <add>, %106, %cst_66 [1] : vector<8x8xf32> to vector<8xf32>
    %108 = vector.shape_cast %107 : vector<8xf32> to vector<8x1xf32>
    %109 = vector.broadcast %108 : vector<8x1xf32> to vector<8x8xf32>
    %110 = arith.divf %106, %109 : vector<8x8xf32>
    %111 = vector.broadcast %1 : vector<8x1xf32> to vector<8x8xf32>
    %112 = arith.mulf %110, %111 : vector<8x8xf32>
    %113 = arith.truncf %112 : vector<8x8xf32> to vector<8x8xbf16>
    %114 = arith.truncf %93 : vector<8x8xf32> to vector<8x8xbf16>
    %cst_67 = arith.constant dense<0.000000e+00> : vector<8x8xf32>
    %115 = tpu.matmul %113, %114, %cst_67 {dimension_numbers = #tpu.dot_dimension_numbers<[1], [0], [0], [1], [0, 0, 1, 1], [], []>} : vector<8x8xbf16>, vector<8x8xbf16>, vector<8x8xf32> -> vector<8x8xf32>
    %116 = arith.truncf %115 : vector<8x8xf32> to vector<8x8xbf16>
    %c0_68 = arith.constant 0 : index
    %c1_69 = arith.constant 1 : index
    %c0_70 = arith.constant 0 : index
    %c0_71 = arith.constant 0 : index
    %117 = vector.load %arg8[%c0_68, %c1_69, %c0_70, %c0_71] : memref<4x4x8x32xbf16, #tpu.memory_space<vmem>>, vector<1x1x8x32xbf16>
    %118 = vector.shape_cast %117 : vector<1x1x8x32xbf16> to vector<8x32xbf16>
    %cst_72 = arith.constant dense<0.000000e+00> : vector<8x32xf32>
    %119 = tpu.matmul %116, %118, %cst_72 {dimension_numbers = #tpu.dot_dimension_numbers<[1], [0], [0], [1], [0, 0, 1, 1], [], []>} : vector<8x8xbf16>, vector<8x32xbf16>, vector<8x32xf32> -> vector<8x32xf32>
    %120 = arith.addf %73, %119 : vector<8x32xf32>
    %c0_73 = arith.constant 0 : index
    %c2 = arith.constant 2 : index
    %c0_74 = arith.constant 0 : index
    %c0_75 = arith.constant 0 : index
    %121 = vector.load %arg5[%c0_73, %c2, %c0_74, %c0_75] : memref<4x4x32x8xbf16, #tpu.memory_space<vmem>>, vector<1x1x32x8xbf16>
    %122 = vector.shape_cast %121 : vector<1x1x32x8xbf16> to vector<32x8xbf16>
    %cst_76 = arith.constant dense<0.000000e+00> : vector<8x8xf32>
    %123 = tpu.matmul %27, %122, %cst_76 {dimension_numbers = #tpu.dot_dimension_numbers<[1], [0], [0], [1], [0, 0, 1, 1], [], []>} : vector<8x32xbf16>, vector<32x8xbf16>, vector<8x8xf32> -> vector<8x8xf32>
    %124 = vector.extract_strided_slice %16 {offsets = [0, 16], sizes = [1, 8], strides = [1, 1]} : vector<1x32xf32> to vector<1x8xf32>
    %125 = vector.broadcast %124 : vector<1x8xf32> to vector<8x8xf32>
    %126 = arith.addf %123, %125 : vector<8x8xf32>
    %cst_77 = arith.constant 0.353553385 : f32
    %127 = vector.broadcast %cst_77 : f32 to vector<8x8xf32>
    %128 = arith.mulf %126, %127 : vector<8x8xf32>
    %c0_78 = arith.constant 0 : index
    %c2_79 = arith.constant 2 : index
    %c0_80 = arith.constant 0 : index
    %c0_81 = arith.constant 0 : index
    %129 = vector.load %arg6[%c0_78, %c2_79, %c0_80, %c0_81] : memref<4x4x32x8xbf16, #tpu.memory_space<vmem>>, vector<1x1x32x8xbf16>
    %130 = vector.shape_cast %129 : vector<1x1x32x8xbf16> to vector<32x8xbf16>
    %cst_82 = arith.constant dense<0.000000e+00> : vector<8x8xf32>
    %131 = tpu.matmul %27, %130, %cst_82 {dimension_numbers = #tpu.dot_dimension_numbers<[1], [0], [0], [1], [0, 0, 1, 1], [], []>} : vector<8x32xbf16>, vector<32x8xbf16>, vector<8x8xf32> -> vector<8x8xf32>
    %132 = vector.extract_strided_slice %17 {offsets = [0, 16], sizes = [1, 8], strides = [1, 1]} : vector<1x32xf32> to vector<1x8xf32>
    %133 = vector.broadcast %132 : vector<1x8xf32> to vector<8x8xf32>
    %134 = arith.addf %131, %133 : vector<8x8xf32>
    %c0_83 = arith.constant 0 : index
    %c2_84 = arith.constant 2 : index
    %c0_85 = arith.constant 0 : index
    %c0_86 = arith.constant 0 : index
    %135 = vector.load %arg7[%c0_83, %c2_84, %c0_85, %c0_86] : memref<4x4x32x8xbf16, #tpu.memory_space<vmem>>, vector<1x1x32x8xbf16>
    %136 = vector.shape_cast %135 : vector<1x1x32x8xbf16> to vector<32x8xbf16>
    %cst_87 = arith.constant dense<0.000000e+00> : vector<8x8xf32>
    %137 = tpu.matmul %27, %136, %cst_87 {dimension_numbers = #tpu.dot_dimension_numbers<[1], [0], [0], [1], [0, 0, 1, 1], [], []>} : vector<8x32xbf16>, vector<32x8xbf16>, vector<8x8xf32> -> vector<8x8xf32>
    %138 = vector.extract_strided_slice %18 {offsets = [0, 16], sizes = [1, 8], strides = [1, 1]} : vector<1x32xf32> to vector<1x8xf32>
    %139 = vector.broadcast %138 : vector<1x8xf32> to vector<8x8xf32>
    %140 = arith.addf %137, %139 : vector<8x8xf32>
    %141 = arith.truncf %128 : vector<8x8xf32> to vector<8x8xbf16>
    %142 = arith.truncf %134 : vector<8x8xf32> to vector<8x8xbf16>
    %143 = tpu.transpose %142, [1, 0] : vector<8x8xbf16> -> vector<8x8xbf16>
    %cst_88 = arith.constant dense<0.000000e+00> : vector<8x8xf32>
    %144 = tpu.matmul %141, %143, %cst_88 {dimension_numbers = #tpu.dot_dimension_numbers<[1], [0], [0], [1], [0, 0, 1, 1], [], []>} : vector<8x8xbf16>, vector<8x8xbf16>, vector<8x8xf32> -> vector<8x8xf32>
    %145 = vector.broadcast %3 : vector<1x8xf32> to vector<8x8xf32>
    %146 = arith.addf %144, %145 : vector<8x8xf32>
    %cst_89 = arith.constant dense<0xFF800000> : vector<8xf32>
    %147 = vector.multi_reduction <maximumf>, %146, %cst_89 [1] : vector<8x8xf32> to vector<8xf32>
    %cst_90 = arith.constant 0xFF800000 : f32
    %148 = vector.broadcast %cst_90 : f32 to vector<8xf32>
    %149 = arith.maximumf %148, %147 : vector<8xf32>
    %150 = vector.shape_cast %149 : vector<8xf32> to vector<8x1xf32>
    %151 = vector.broadcast %150 : vector<8x1xf32> to vector<8x8xf32>
    %152 = arith.subf %146, %151 : vector<8x8xf32>
    %153 = math.exp %152 : vector<8x8xf32>
    %cst_91 = arith.constant dense<0.000000e+00> : vector<8xf32>
    %154 = vector.multi_reduction <add>, %153, %cst_91 [1] : vector<8x8xf32> to vector<8xf32>
    %155 = vector.shape_cast %154 : vector<8xf32> to vector<8x1xf32>
    %156 = vector.broadcast %155 : vector<8x1xf32> to vector<8x8xf32>
    %157 = arith.divf %153, %156 : vector<8x8xf32>
    %158 = vector.broadcast %1 : vector<8x1xf32> to vector<8x8xf32>
    %159 = arith.mulf %157, %158 : vector<8x8xf32>
    %160 = arith.truncf %159 : vector<8x8xf32> to vector<8x8xbf16>
    %161 = arith.truncf %140 : vector<8x8xf32> to vector<8x8xbf16>
    %cst_92 = arith.constant dense<0.000000e+00> : vector<8x8xf32>
    %162 = tpu.matmul %160, %161, %cst_92 {dimension_numbers = #tpu.dot_dimension_numbers<[1], [0], [0], [1], [0, 0, 1, 1], [], []>} : vector<8x8xbf16>, vector<8x8xbf16>, vector<8x8xf32> -> vector<8x8xf32>
    %163 = arith.truncf %162 : vector<8x8xf32> to vector<8x8xbf16>
    %c0_93 = arith.constant 0 : index
    %c2_94 = arith.constant 2 : index
    %c0_95 = arith.constant 0 : index
    %c0_96 = arith.constant 0 : index
    %164 = vector.load %arg8[%c0_93, %c2_94, %c0_95, %c0_96] : memref<4x4x8x32xbf16, #tpu.memory_space<vmem>>, vector<1x1x8x32xbf16>
    %165 = vector.shape_cast %164 : vector<1x1x8x32xbf16> to vector<8x32xbf16>
    %cst_97 = arith.constant dense<0.000000e+00> : vector<8x32xf32>
    %166 = tpu.matmul %163, %165, %cst_97 {dimension_numbers = #tpu.dot_dimension_numbers<[1], [0], [0], [1], [0, 0, 1, 1], [], []>} : vector<8x8xbf16>, vector<8x32xbf16>, vector<8x32xf32> -> vector<8x32xf32>
    %167 = arith.addf %120, %166 : vector<8x32xf32>
    %c0_98 = arith.constant 0 : index
    %c3 = arith.constant 3 : index
    %c0_99 = arith.constant 0 : index
    %c0_100 = arith.constant 0 : index
    %168 = vector.load %arg5[%c0_98, %c3, %c0_99, %c0_100] : memref<4x4x32x8xbf16, #tpu.memory_space<vmem>>, vector<1x1x32x8xbf16>
    %169 = vector.shape_cast %168 : vector<1x1x32x8xbf16> to vector<32x8xbf16>
    %cst_101 = arith.constant dense<0.000000e+00> : vector<8x8xf32>
    %170 = tpu.matmul %27, %169, %cst_101 {dimension_numbers = #tpu.dot_dimension_numbers<[1], [0], [0], [1], [0, 0, 1, 1], [], []>} : vector<8x32xbf16>, vector<32x8xbf16>, vector<8x8xf32> -> vector<8x8xf32>
    %171 = vector.extract_strided_slice %16 {offsets = [0, 24], sizes = [1, 8], strides = [1, 1]} : vector<1x32xf32> to vector<1x8xf32>
    %172 = vector.broadcast %171 : vector<1x8xf32> to vector<8x8xf32>
    %173 = arith.addf %170, %172 : vector<8x8xf32>
    %cst_102 = arith.constant 0.353553385 : f32
    %174 = vector.broadcast %cst_102 : f32 to vector<8x8xf32>
    %175 = arith.mulf %173, %174 : vector<8x8xf32>
    %c0_103 = arith.constant 0 : index
    %c3_104 = arith.constant 3 : index
    %c0_105 = arith.constant 0 : index
    %c0_106 = arith.constant 0 : index
    %176 = vector.load %arg6[%c0_103, %c3_104, %c0_105, %c0_106] : memref<4x4x32x8xbf16, #tpu.memory_space<vmem>>, vector<1x1x32x8xbf16>
    %177 = vector.shape_cast %176 : vector<1x1x32x8xbf16> to vector<32x8xbf16>
    %cst_107 = arith.constant dense<0.000000e+00> : vector<8x8xf32>
    %178 = tpu.matmul %27, %177, %cst_107 {dimension_numbers = #tpu.dot_dimension_numbers<[1], [0], [0], [1], [0, 0, 1, 1], [], []>} : vector<8x32xbf16>, vector<32x8xbf16>, vector<8x8xf32> -> vector<8x8xf32>
    %179 = vector.extract_strided_slice %17 {offsets = [0, 24], sizes = [1, 8], strides = [1, 1]} : vector<1x32xf32> to vector<1x8xf32>
    %180 = vector.broadcast %179 : vector<1x8xf32> to vector<8x8xf32>
    %181 = arith.addf %178, %180 : vector<8x8xf32>
    %c0_108 = arith.constant 0 : index
    %c3_109 = arith.constant 3 : index
    %c0_110 = arith.constant 0 : index
    %c0_111 = arith.constant 0 : index
    %182 = vector.load %arg7[%c0_108, %c3_109, %c0_110, %c0_111] : memref<4x4x32x8xbf16, #tpu.memory_space<vmem>>, vector<1x1x32x8xbf16>
    %183 = vector.shape_cast %182 : vector<1x1x32x8xbf16> to vector<32x8xbf16>
    %cst_112 = arith.constant dense<0.000000e+00> : vector<8x8xf32>
    %184 = tpu.matmul %27, %183, %cst_112 {dimension_numbers = #tpu.dot_dimension_numbers<[1], [0], [0], [1], [0, 0, 1, 1], [], []>} : vector<8x32xbf16>, vector<32x8xbf16>, vector<8x8xf32> -> vector<8x8xf32>
    %185 = vector.extract_strided_slice %18 {offsets = [0, 24], sizes = [1, 8], strides = [1, 1]} : vector<1x32xf32> to vector<1x8xf32>
    %186 = vector.broadcast %185 : vector<1x8xf32> to vector<8x8xf32>
    %187 = arith.addf %184, %186 : vector<8x8xf32>
    %188 = arith.truncf %175 : vector<8x8xf32> to vector<8x8xbf16>
    %189 = arith.truncf %181 : vector<8x8xf32> to vector<8x8xbf16>
    %190 = tpu.transpose %189, [1, 0] : vector<8x8xbf16> -> vector<8x8xbf16>
    %cst_113 = arith.constant dense<0.000000e+00> : vector<8x8xf32>
    %191 = tpu.matmul %188, %190, %cst_113 {dimension_numbers = #tpu.dot_dimension_numbers<[1], [0], [0], [1], [0, 0, 1, 1], [], []>} : vector<8x8xbf16>, vector<8x8xbf16>, vector<8x8xf32> -> vector<8x8xf32>
    %192 = vector.broadcast %3 : vector<1x8xf32> to vector<8x8xf32>
    %193 = arith.addf %191, %192 : vector<8x8xf32>
    %cst_114 = arith.constant dense<0xFF800000> : vector<8xf32>
    %194 = vector.multi_reduction <maximumf>, %193, %cst_114 [1] : vector<8x8xf32> to vector<8xf32>
    %cst_115 = arith.constant 0xFF800000 : f32
    %195 = vector.broadcast %cst_115 : f32 to vector<8xf32>
    %196 = arith.maximumf %195, %194 : vector<8xf32>
    %197 = vector.shape_cast %196 : vector<8xf32> to vector<8x1xf32>
    %198 = vector.broadcast %197 : vector<8x1xf32> to vector<8x8xf32>
    %199 = arith.subf %193, %198 : vector<8x8xf32>
    %200 = math.exp %199 : vector<8x8xf32>
    %cst_116 = arith.constant dense<0.000000e+00> : vector<8xf32>
    %201 = vector.multi_reduction <add>, %200, %cst_116 [1] : vector<8x8xf32> to vector<8xf32>
    %202 = vector.shape_cast %201 : vector<8xf32> to vector<8x1xf32>
    %203 = vector.broadcast %202 : vector<8x1xf32> to vector<8x8xf32>
    %204 = arith.divf %200, %203 : vector<8x8xf32>
    %205 = vector.broadcast %1 : vector<8x1xf32> to vector<8x8xf32>
    %206 = arith.mulf %204, %205 : vector<8x8xf32>
    %207 = arith.truncf %206 : vector<8x8xf32> to vector<8x8xbf16>
    %208 = arith.truncf %187 : vector<8x8xf32> to vector<8x8xbf16>
    %cst_117 = arith.constant dense<0.000000e+00> : vector<8x8xf32>
    %209 = tpu.matmul %207, %208, %cst_117 {dimension_numbers = #tpu.dot_dimension_numbers<[1], [0], [0], [1], [0, 0, 1, 1], [], []>} : vector<8x8xbf16>, vector<8x8xbf16>, vector<8x8xf32> -> vector<8x8xf32>
    %210 = arith.truncf %209 : vector<8x8xf32> to vector<8x8xbf16>
    %c0_118 = arith.constant 0 : index
    %c3_119 = arith.constant 3 : index
    %c0_120 = arith.constant 0 : index
    %c0_121 = arith.constant 0 : index
    %211 = vector.load %arg8[%c0_118, %c3_119, %c0_120, %c0_121] : memref<4x4x8x32xbf16, #tpu.memory_space<vmem>>, vector<1x1x8x32xbf16>
    %212 = vector.shape_cast %211 : vector<1x1x8x32xbf16> to vector<8x32xbf16>
    %cst_122 = arith.constant dense<0.000000e+00> : vector<8x32xf32>
    %213 = tpu.matmul %210, %212, %cst_122 {dimension_numbers = #tpu.dot_dimension_numbers<[1], [0], [0], [1], [0, 0, 1, 1], [], []>} : vector<8x8xbf16>, vector<8x32xbf16>, vector<8x32xf32> -> vector<8x32xf32>
    %214 = arith.addf %167, %213 : vector<8x32xf32>
    %215 = vector.broadcast %19 : vector<1x32xf32> to vector<8x32xf32>
    %216 = arith.addf %214, %215 : vector<8x32xf32>
    %cst_123 = arith.constant dense<0.000000e+00> : vector<8xf32>
    %217 = vector.multi_reduction <add>, %216, %cst_123 [1] : vector<8x32xf32> to vector<8xf32>
    %218 = vector.shape_cast %217 : vector<8xf32> to vector<8x1xf32>
    %cst_124 = arith.constant 3.200000e+01 : f32
    %219 = vector.broadcast %cst_124 : f32 to vector<8x1xf32>
    %220 = arith.divf %218, %219 : vector<8x1xf32>
    %221 = vector.broadcast %220 : vector<8x1xf32> to vector<8x32xf32>
    %222 = arith.subf %216, %221 : vector<8x32xf32>
    %223 = arith.mulf %222, %222 : vector<8x32xf32>
    %cst_125 = arith.constant dense<0.000000e+00> : vector<8xf32>
    %224 = vector.multi_reduction <add>, %223, %cst_125 [1] : vector<8x32xf32> to vector<8xf32>
    %225 = vector.shape_cast %224 : vector<8xf32> to vector<8x1xf32>
    %cst_126 = arith.constant 3.200000e+01 : f32
    %226 = vector.broadcast %cst_126 : f32 to vector<8x1xf32>
    %227 = arith.divf %225, %226 : vector<8x1xf32>
    %228 = vector.broadcast %220 : vector<8x1xf32> to vector<8x32xf32>
    %229 = arith.subf %216, %228 : vector<8x32xf32>
    %cst_127 = arith.constant 9.99999974E-6 : f32
    %230 = vector.broadcast %cst_127 : f32 to vector<8x1xf32>
    %231 = arith.addf %227, %230 : vector<8x1xf32>
    %232 = math.rsqrt %231 : vector<8x1xf32>
    %233 = vector.broadcast %232 : vector<8x1xf32> to vector<8x32xf32>
    %234 = arith.mulf %229, %233 : vector<8x32xf32>
    %235 = vector.broadcast %20 : vector<1x32xf32> to vector<8x32xf32>
    %236 = arith.mulf %234, %235 : vector<8x32xf32>
    %237 = vector.broadcast %21 : vector<1x32xf32> to vector<8x32xf32>
    %238 = arith.addf %236, %237 : vector<8x32xf32>
    %239 = arith.truncf %238 : vector<8x32xf32> to vector<8x32xbf16>
    %cst_128 = arith.constant dense<0.000000e+00> : vector<8x128xf32>
    %240 = tpu.matmul %239, %11, %cst_128 {dimension_numbers = #tpu.dot_dimension_numbers<[1], [0], [0], [1], [0, 0, 1, 1], [], []>} : vector<8x32xbf16>, vector<32x128xbf16>, vector<8x128xf32> -> vector<8x128xf32>
    %241 = vector.broadcast %26 : vector<1x128xf32> to vector<8x128xf32>
    %242 = arith.addf %240, %241 : vector<8x128xf32>
    %cst_129 = arith.constant 0.000000e+00 : f32
    %243 = vector.broadcast %cst_129 : f32 to vector<8x128xf32>
    %244 = arith.maximumf %242, %243 : vector<8x128xf32>
    %245 = arith.truncf %244 : vector<8x128xf32> to vector<8x128xbf16>
    %cst_130 = arith.constant dense<0.000000e+00> : vector<8x32xf32>
    %246 = tpu.matmul %245, %13, %cst_130 {dimension_numbers = #tpu.dot_dimension_numbers<[1], [0], [0], [1], [0, 0, 1, 1], [], []>} : vector<8x128xbf16>, vector<128x32xbf16>, vector<8x32xf32> -> vector<8x32xf32>
    %247 = vector.broadcast %22 : vector<1x32xf32> to vector<8x32xf32>
    %248 = arith.addf %246, %247 : vector<8x32xf32>
    %249 = arith.addf %248, %238 : vector<8x32xf32>
    %250 = vector.broadcast %1 : vector<8x1xf32> to vector<8x32xf32>
    %251 = arith.mulf %249, %250 : vector<8x32xf32>
    %cst_131 = arith.constant dense<0.000000e+00> : vector<8xf32>
    %252 = vector.multi_reduction <add>, %251, %cst_131 [1] : vector<8x32xf32> to vector<8xf32>
    %253 = vector.shape_cast %252 : vector<8xf32> to vector<8x1xf32>
    %cst_132 = arith.constant 3.200000e+01 : f32
    %254 = vector.broadcast %cst_132 : f32 to vector<8x1xf32>
    %255 = arith.divf %253, %254 : vector<8x1xf32>
    %256 = vector.broadcast %255 : vector<8x1xf32> to vector<8x32xf32>
    %257 = arith.subf %251, %256 : vector<8x32xf32>
    %258 = arith.mulf %257, %257 : vector<8x32xf32>
    %cst_133 = arith.constant dense<0.000000e+00> : vector<8xf32>
    %259 = vector.multi_reduction <add>, %258, %cst_133 [1] : vector<8x32xf32> to vector<8xf32>
    %260 = vector.shape_cast %259 : vector<8xf32> to vector<8x1xf32>
    %cst_134 = arith.constant 3.200000e+01 : f32
    %261 = vector.broadcast %cst_134 : f32 to vector<8x1xf32>
    %262 = arith.divf %260, %261 : vector<8x1xf32>
    %263 = vector.broadcast %255 : vector<8x1xf32> to vector<8x32xf32>
    %264 = arith.subf %251, %263 : vector<8x32xf32>
    %cst_135 = arith.constant 9.99999974E-6 : f32
    %265 = vector.broadcast %cst_135 : f32 to vector<8x1xf32>
    %266 = arith.addf %262, %265 : vector<8x1xf32>
    %267 = math.rsqrt %266 : vector<8x1xf32>
    %268 = vector.broadcast %267 : vector<8x1xf32> to vector<8x32xf32>
    %269 = arith.mulf %264, %268 : vector<8x32xf32>
    %270 = vector.broadcast %23 : vector<1x32xf32> to vector<8x32xf32>
    %271 = arith.mulf %269, %270 : vector<8x32xf32>
    %272 = vector.broadcast %24 : vector<1x32xf32> to vector<8x32xf32>
    %273 = arith.addf %271, %272 : vector<8x32xf32>
    %c1_136 = arith.constant 1 : index
    %c0_137 = arith.constant 0 : index
    %c0_138 = arith.constant 0 : index
    %274 = vector.load %arg9[%c1_136, %c0_137, %c0_138] : memref<4x32x128xbf16, #tpu.memory_space<vmem>>, vector<1x32x128xbf16>
    %275 = vector.shape_cast %274 : vector<1x32x128xbf16> to vector<32x128xbf16>
    %c1_139 = arith.constant 1 : index
    %c0_140 = arith.constant 0 : index
    %c0_141 = arith.constant 0 : index
    %276 = vector.load %arg10[%c1_139, %c0_140, %c0_141] : memref<4x128x32xbf16, #tpu.memory_space<vmem>>, vector<1x128x32xbf16>
    %277 = vector.shape_cast %276 : vector<1x128x32xbf16> to vector<128x32xbf16>
    %c1_142 = arith.constant 1 : index
    %c0_143 = arith.constant 0 : index
    %c0_144 = arith.constant 0 : index
    %278 = vector.load %arg11[%c1_142, %c0_143, %c0_144] : memref<4x11x32xf32, #tpu.memory_space<vmem>>, vector<1x11x32xf32>
    %279 = vector.shape_cast %278 : vector<1x11x32xf32> to vector<11x32xf32>
    %280 = vector.extract_strided_slice %279 {offsets = [0, 0], sizes = [1, 32], strides = [1, 1]} : vector<11x32xf32> to vector<1x32xf32>
    %281 = vector.extract_strided_slice %279 {offsets = [1, 0], sizes = [1, 32], strides = [1, 1]} : vector<11x32xf32> to vector<1x32xf32>
    %282 = vector.extract_strided_slice %279 {offsets = [2, 0], sizes = [1, 32], strides = [1, 1]} : vector<11x32xf32> to vector<1x32xf32>
    %283 = vector.extract_strided_slice %279 {offsets = [3, 0], sizes = [1, 32], strides = [1, 1]} : vector<11x32xf32> to vector<1x32xf32>
    %284 = vector.extract_strided_slice %279 {offsets = [4, 0], sizes = [1, 32], strides = [1, 1]} : vector<11x32xf32> to vector<1x32xf32>
    %285 = vector.extract_strided_slice %279 {offsets = [5, 0], sizes = [1, 32], strides = [1, 1]} : vector<11x32xf32> to vector<1x32xf32>
    %286 = vector.extract_strided_slice %279 {offsets = [6, 0], sizes = [1, 32], strides = [1, 1]} : vector<11x32xf32> to vector<1x32xf32>
    %287 = vector.extract_strided_slice %279 {offsets = [7, 0], sizes = [1, 32], strides = [1, 1]} : vector<11x32xf32> to vector<1x32xf32>
    %288 = vector.extract_strided_slice %279 {offsets = [8, 0], sizes = [1, 32], strides = [1, 1]} : vector<11x32xf32> to vector<1x32xf32>
    %289 = vector.extract_strided_slice %279 {offsets = [9, 0], sizes = [1, 32], strides = [1, 1]} : vector<11x32xf32> to vector<1x32xf32>
    %290 = vector.extract_strided_slice %279 {offsets = [10, 0], sizes = [1, 32], strides = [1, 1]} : vector<11x32xf32> to vector<1x32xf32>
    %c1_145 = arith.constant 1 : index
    %c0_146 = arith.constant 0 : index
    %c0_147 = arith.constant 0 : index
    %291 = vector.load %arg12[%c1_145, %c0_146, %c0_147] : memref<4x1x128xf32, #tpu.memory_space<vmem>>, vector<1x1x128xf32>
    %292 = vector.shape_cast %291 : vector<1x1x128xf32> to vector<1x128xf32>
    %293 = arith.truncf %273 : vector<8x32xf32> to vector<8x32xbf16>
    %c1_148 = arith.constant 1 : index
    %c0_149 = arith.constant 0 : index
    %c0_150 = arith.constant 0 : index
    %c0_151 = arith.constant 0 : index
    %294 = vector.load %arg5[%c1_148, %c0_149, %c0_150, %c0_151] : memref<4x4x32x8xbf16, #tpu.memory_space<vmem>>, vector<1x1x32x8xbf16>
    %295 = vector.shape_cast %294 : vector<1x1x32x8xbf16> to vector<32x8xbf16>
    %cst_152 = arith.constant dense<0.000000e+00> : vector<8x8xf32>
    %296 = tpu.matmul %293, %295, %cst_152 {dimension_numbers = #tpu.dot_dimension_numbers<[1], [0], [0], [1], [0, 0, 1, 1], [], []>} : vector<8x32xbf16>, vector<32x8xbf16>, vector<8x8xf32> -> vector<8x8xf32>
    %297 = vector.extract_strided_slice %280 {offsets = [0, 0], sizes = [1, 8], strides = [1, 1]} : vector<1x32xf32> to vector<1x8xf32>
    %298 = vector.broadcast %297 : vector<1x8xf32> to vector<8x8xf32>
    %299 = arith.addf %296, %298 : vector<8x8xf32>
    %cst_153 = arith.constant 0.353553385 : f32
    %300 = vector.broadcast %cst_153 : f32 to vector<8x8xf32>
    %301 = arith.mulf %299, %300 : vector<8x8xf32>
    %c1_154 = arith.constant 1 : index
    %c0_155 = arith.constant 0 : index
    %c0_156 = arith.constant 0 : index
    %c0_157 = arith.constant 0 : index
    %302 = vector.load %arg6[%c1_154, %c0_155, %c0_156, %c0_157] : memref<4x4x32x8xbf16, #tpu.memory_space<vmem>>, vector<1x1x32x8xbf16>
    %303 = vector.shape_cast %302 : vector<1x1x32x8xbf16> to vector<32x8xbf16>
    %cst_158 = arith.constant dense<0.000000e+00> : vector<8x8xf32>
    %304 = tpu.matmul %293, %303, %cst_158 {dimension_numbers = #tpu.dot_dimension_numbers<[1], [0], [0], [1], [0, 0, 1, 1], [], []>} : vector<8x32xbf16>, vector<32x8xbf16>, vector<8x8xf32> -> vector<8x8xf32>
    %305 = vector.extract_strided_slice %281 {offsets = [0, 0], sizes = [1, 8], strides = [1, 1]} : vector<1x32xf32> to vector<1x8xf32>
    %306 = vector.broadcast %305 : vector<1x8xf32> to vector<8x8xf32>
    %307 = arith.addf %304, %306 : vector<8x8xf32>
    %c1_159 = arith.constant 1 : index
    %c0_160 = arith.constant 0 : index
    %c0_161 = arith.constant 0 : index
    %c0_162 = arith.constant 0 : index
    %308 = vector.load %arg7[%c1_159, %c0_160, %c0_161, %c0_162] : memref<4x4x32x8xbf16, #tpu.memory_space<vmem>>, vector<1x1x32x8xbf16>
    %309 = vector.shape_cast %308 : vector<1x1x32x8xbf16> to vector<32x8xbf16>
    %cst_163 = arith.constant dense<0.000000e+00> : vector<8x8xf32>
    %310 = tpu.matmul %293, %309, %cst_163 {dimension_numbers = #tpu.dot_dimension_numbers<[1], [0], [0], [1], [0, 0, 1, 1], [], []>} : vector<8x32xbf16>, vector<32x8xbf16>, vector<8x8xf32> -> vector<8x8xf32>
    %311 = vector.extract_strided_slice %282 {offsets = [0, 0], sizes = [1, 8], strides = [1, 1]} : vector<1x32xf32> to vector<1x8xf32>
    %312 = vector.broadcast %311 : vector<1x8xf32> to vector<8x8xf32>
    %313 = arith.addf %310, %312 : vector<8x8xf32>
    %314 = arith.truncf %301 : vector<8x8xf32> to vector<8x8xbf16>
    %315 = arith.truncf %307 : vector<8x8xf32> to vector<8x8xbf16>
    %316 = tpu.transpose %315, [1, 0] : vector<8x8xbf16> -> vector<8x8xbf16>
    %cst_164 = arith.constant dense<0.000000e+00> : vector<8x8xf32>
    %317 = tpu.matmul %314, %316, %cst_164 {dimension_numbers = #tpu.dot_dimension_numbers<[1], [0], [0], [1], [0, 0, 1, 1], [], []>} : vector<8x8xbf16>, vector<8x8xbf16>, vector<8x8xf32> -> vector<8x8xf32>
    %318 = vector.broadcast %3 : vector<1x8xf32> to vector<8x8xf32>
    %319 = arith.addf %317, %318 : vector<8x8xf32>
    %cst_165 = arith.constant dense<0xFF800000> : vector<8xf32>
    %320 = vector.multi_reduction <maximumf>, %319, %cst_165 [1] : vector<8x8xf32> to vector<8xf32>
    %cst_166 = arith.constant 0xFF800000 : f32
    %321 = vector.broadcast %cst_166 : f32 to vector<8xf32>
    %322 = arith.maximumf %321, %320 : vector<8xf32>
    %323 = vector.shape_cast %322 : vector<8xf32> to vector<8x1xf32>
    %324 = vector.broadcast %323 : vector<8x1xf32> to vector<8x8xf32>
    %325 = arith.subf %319, %324 : vector<8x8xf32>
    %326 = math.exp %325 : vector<8x8xf32>
    %cst_167 = arith.constant dense<0.000000e+00> : vector<8xf32>
    %327 = vector.multi_reduction <add>, %326, %cst_167 [1] : vector<8x8xf32> to vector<8xf32>
    %328 = vector.shape_cast %327 : vector<8xf32> to vector<8x1xf32>
    %329 = vector.broadcast %328 : vector<8x1xf32> to vector<8x8xf32>
    %330 = arith.divf %326, %329 : vector<8x8xf32>
    %331 = vector.broadcast %1 : vector<8x1xf32> to vector<8x8xf32>
    %332 = arith.mulf %330, %331 : vector<8x8xf32>
    %333 = arith.truncf %332 : vector<8x8xf32> to vector<8x8xbf16>
    %334 = arith.truncf %313 : vector<8x8xf32> to vector<8x8xbf16>
    %cst_168 = arith.constant dense<0.000000e+00> : vector<8x8xf32>
    %335 = tpu.matmul %333, %334, %cst_168 {dimension_numbers = #tpu.dot_dimension_numbers<[1], [0], [0], [1], [0, 0, 1, 1], [], []>} : vector<8x8xbf16>, vector<8x8xbf16>, vector<8x8xf32> -> vector<8x8xf32>
    %336 = arith.truncf %335 : vector<8x8xf32> to vector<8x8xbf16>
    %c1_169 = arith.constant 1 : index
    %c0_170 = arith.constant 0 : index
    %c0_171 = arith.constant 0 : index
    %c0_172 = arith.constant 0 : index
    %337 = vector.load %arg8[%c1_169, %c0_170, %c0_171, %c0_172] : memref<4x4x8x32xbf16, #tpu.memory_space<vmem>>, vector<1x1x8x32xbf16>
    %338 = vector.shape_cast %337 : vector<1x1x8x32xbf16> to vector<8x32xbf16>
    %cst_173 = arith.constant dense<0.000000e+00> : vector<8x32xf32>
    %339 = tpu.matmul %336, %338, %cst_173 {dimension_numbers = #tpu.dot_dimension_numbers<[1], [0], [0], [1], [0, 0, 1, 1], [], []>} : vector<8x8xbf16>, vector<8x32xbf16>, vector<8x32xf32> -> vector<8x32xf32>
    %c1_174 = arith.constant 1 : index
    %c1_175 = arith.constant 1 : index
    %c0_176 = arith.constant 0 : index
    %c0_177 = arith.constant 0 : index
    %340 = vector.load %arg5[%c1_174, %c1_175, %c0_176, %c0_177] : memref<4x4x32x8xbf16, #tpu.memory_space<vmem>>, vector<1x1x32x8xbf16>
    %341 = vector.shape_cast %340 : vector<1x1x32x8xbf16> to vector<32x8xbf16>
    %cst_178 = arith.constant dense<0.000000e+00> : vector<8x8xf32>
    %342 = tpu.matmul %293, %341, %cst_178 {dimension_numbers = #tpu.dot_dimension_numbers<[1], [0], [0], [1], [0, 0, 1, 1], [], []>} : vector<8x32xbf16>, vector<32x8xbf16>, vector<8x8xf32> -> vector<8x8xf32>
    %343 = vector.extract_strided_slice %280 {offsets = [0, 8], sizes = [1, 8], strides = [1, 1]} : vector<1x32xf32> to vector<1x8xf32>
    %344 = vector.broadcast %343 : vector<1x8xf32> to vector<8x8xf32>
    %345 = arith.addf %342, %344 : vector<8x8xf32>
    %cst_179 = arith.constant 0.353553385 : f32
    %346 = vector.broadcast %cst_179 : f32 to vector<8x8xf32>
    %347 = arith.mulf %345, %346 : vector<8x8xf32>
    %c1_180 = arith.constant 1 : index
    %c1_181 = arith.constant 1 : index
    %c0_182 = arith.constant 0 : index
    %c0_183 = arith.constant 0 : index
    %348 = vector.load %arg6[%c1_180, %c1_181, %c0_182, %c0_183] : memref<4x4x32x8xbf16, #tpu.memory_space<vmem>>, vector<1x1x32x8xbf16>
    %349 = vector.shape_cast %348 : vector<1x1x32x8xbf16> to vector<32x8xbf16>
    %cst_184 = arith.constant dense<0.000000e+00> : vector<8x8xf32>
    %350 = tpu.matmul %293, %349, %cst_184 {dimension_numbers = #tpu.dot_dimension_numbers<[1], [0], [0], [1], [0, 0, 1, 1], [], []>} : vector<8x32xbf16>, vector<32x8xbf16>, vector<8x8xf32> -> vector<8x8xf32>
    %351 = vector.extract_strided_slice %281 {offsets = [0, 8], sizes = [1, 8], strides = [1, 1]} : vector<1x32xf32> to vector<1x8xf32>
    %352 = vector.broadcast %351 : vector<1x8xf32> to vector<8x8xf32>
    %353 = arith.addf %350, %352 : vector<8x8xf32>
    %c1_185 = arith.constant 1 : index
    %c1_186 = arith.constant 1 : index
    %c0_187 = arith.constant 0 : index
    %c0_188 = arith.constant 0 : index
    %354 = vector.load %arg7[%c1_185, %c1_186, %c0_187, %c0_188] : memref<4x4x32x8xbf16, #tpu.memory_space<vmem>>, vector<1x1x32x8xbf16>
    %355 = vector.shape_cast %354 : vector<1x1x32x8xbf16> to vector<32x8xbf16>
    %cst_189 = arith.constant dense<0.000000e+00> : vector<8x8xf32>
    %356 = tpu.matmul %293, %355, %cst_189 {dimension_numbers = #tpu.dot_dimension_numbers<[1], [0], [0], [1], [0, 0, 1, 1], [], []>} : vector<8x32xbf16>, vector<32x8xbf16>, vector<8x8xf32> -> vector<8x8xf32>
    %357 = vector.extract_strided_slice %282 {offsets = [0, 8], sizes = [1, 8], strides = [1, 1]} : vector<1x32xf32> to vector<1x8xf32>
    %358 = vector.broadcast %357 : vector<1x8xf32> to vector<8x8xf32>
    %359 = arith.addf %356, %358 : vector<8x8xf32>
    %360 = arith.truncf %347 : vector<8x8xf32> to vector<8x8xbf16>
    %361 = arith.truncf %353 : vector<8x8xf32> to vector<8x8xbf16>
    %362 = tpu.transpose %361, [1, 0] : vector<8x8xbf16> -> vector<8x8xbf16>
    %cst_190 = arith.constant dense<0.000000e+00> : vector<8x8xf32>
    %363 = tpu.matmul %360, %362, %cst_190 {dimension_numbers = #tpu.dot_dimension_numbers<[1], [0], [0], [1], [0, 0, 1, 1], [], []>} : vector<8x8xbf16>, vector<8x8xbf16>, vector<8x8xf32> -> vector<8x8xf32>
    %364 = vector.broadcast %3 : vector<1x8xf32> to vector<8x8xf32>
    %365 = arith.addf %363, %364 : vector<8x8xf32>
    %cst_191 = arith.constant dense<0xFF800000> : vector<8xf32>
    %366 = vector.multi_reduction <maximumf>, %365, %cst_191 [1] : vector<8x8xf32> to vector<8xf32>
    %cst_192 = arith.constant 0xFF800000 : f32
    %367 = vector.broadcast %cst_192 : f32 to vector<8xf32>
    %368 = arith.maximumf %367, %366 : vector<8xf32>
    %369 = vector.shape_cast %368 : vector<8xf32> to vector<8x1xf32>
    %370 = vector.broadcast %369 : vector<8x1xf32> to vector<8x8xf32>
    %371 = arith.subf %365, %370 : vector<8x8xf32>
    %372 = math.exp %371 : vector<8x8xf32>
    %cst_193 = arith.constant dense<0.000000e+00> : vector<8xf32>
    %373 = vector.multi_reduction <add>, %372, %cst_193 [1] : vector<8x8xf32> to vector<8xf32>
    %374 = vector.shape_cast %373 : vector<8xf32> to vector<8x1xf32>
    %375 = vector.broadcast %374 : vector<8x1xf32> to vector<8x8xf32>
    %376 = arith.divf %372, %375 : vector<8x8xf32>
    %377 = vector.broadcast %1 : vector<8x1xf32> to vector<8x8xf32>
    %378 = arith.mulf %376, %377 : vector<8x8xf32>
    %379 = arith.truncf %378 : vector<8x8xf32> to vector<8x8xbf16>
    %380 = arith.truncf %359 : vector<8x8xf32> to vector<8x8xbf16>
    %cst_194 = arith.constant dense<0.000000e+00> : vector<8x8xf32>
    %381 = tpu.matmul %379, %380, %cst_194 {dimension_numbers = #tpu.dot_dimension_numbers<[1], [0], [0], [1], [0, 0, 1, 1], [], []>} : vector<8x8xbf16>, vector<8x8xbf16>, vector<8x8xf32> -> vector<8x8xf32>
    %382 = arith.truncf %381 : vector<8x8xf32> to vector<8x8xbf16>
    %c1_195 = arith.constant 1 : index
    %c1_196 = arith.constant 1 : index
    %c0_197 = arith.constant 0 : index
    %c0_198 = arith.constant 0 : index
    %383 = vector.load %arg8[%c1_195, %c1_196, %c0_197, %c0_198] : memref<4x4x8x32xbf16, #tpu.memory_space<vmem>>, vector<1x1x8x32xbf16>
    %384 = vector.shape_cast %383 : vector<1x1x8x32xbf16> to vector<8x32xbf16>
    %cst_199 = arith.constant dense<0.000000e+00> : vector<8x32xf32>
    %385 = tpu.matmul %382, %384, %cst_199 {dimension_numbers = #tpu.dot_dimension_numbers<[1], [0], [0], [1], [0, 0, 1, 1], [], []>} : vector<8x8xbf16>, vector<8x32xbf16>, vector<8x32xf32> -> vector<8x32xf32>
    %386 = arith.addf %339, %385 : vector<8x32xf32>
    %c1_200 = arith.constant 1 : index
    %c2_201 = arith.constant 2 : index
    %c0_202 = arith.constant 0 : index
    %c0_203 = arith.constant 0 : index
    %387 = vector.load %arg5[%c1_200, %c2_201, %c0_202, %c0_203] : memref<4x4x32x8xbf16, #tpu.memory_space<vmem>>, vector<1x1x32x8xbf16>
    %388 = vector.shape_cast %387 : vector<1x1x32x8xbf16> to vector<32x8xbf16>
    %cst_204 = arith.constant dense<0.000000e+00> : vector<8x8xf32>
    %389 = tpu.matmul %293, %388, %cst_204 {dimension_numbers = #tpu.dot_dimension_numbers<[1], [0], [0], [1], [0, 0, 1, 1], [], []>} : vector<8x32xbf16>, vector<32x8xbf16>, vector<8x8xf32> -> vector<8x8xf32>
    %390 = vector.extract_strided_slice %280 {offsets = [0, 16], sizes = [1, 8], strides = [1, 1]} : vector<1x32xf32> to vector<1x8xf32>
    %391 = vector.broadcast %390 : vector<1x8xf32> to vector<8x8xf32>
    %392 = arith.addf %389, %391 : vector<8x8xf32>
    %cst_205 = arith.constant 0.353553385 : f32
    %393 = vector.broadcast %cst_205 : f32 to vector<8x8xf32>
    %394 = arith.mulf %392, %393 : vector<8x8xf32>
    %c1_206 = arith.constant 1 : index
    %c2_207 = arith.constant 2 : index
    %c0_208 = arith.constant 0 : index
    %c0_209 = arith.constant 0 : index
    %395 = vector.load %arg6[%c1_206, %c2_207, %c0_208, %c0_209] : memref<4x4x32x8xbf16, #tpu.memory_space<vmem>>, vector<1x1x32x8xbf16>
    %396 = vector.shape_cast %395 : vector<1x1x32x8xbf16> to vector<32x8xbf16>
    %cst_210 = arith.constant dense<0.000000e+00> : vector<8x8xf32>
    %397 = tpu.matmul %293, %396, %cst_210 {dimension_numbers = #tpu.dot_dimension_numbers<[1], [0], [0], [1], [0, 0, 1, 1], [], []>} : vector<8x32xbf16>, vector<32x8xbf16>, vector<8x8xf32> -> vector<8x8xf32>
    %398 = vector.extract_strided_slice %281 {offsets = [0, 16], sizes = [1, 8], strides = [1, 1]} : vector<1x32xf32> to vector<1x8xf32>
    %399 = vector.broadcast %398 : vector<1x8xf32> to vector<8x8xf32>
    %400 = arith.addf %397, %399 : vector<8x8xf32>
    %c1_211 = arith.constant 1 : index
    %c2_212 = arith.constant 2 : index
    %c0_213 = arith.constant 0 : index
    %c0_214 = arith.constant 0 : index
    %401 = vector.load %arg7[%c1_211, %c2_212, %c0_213, %c0_214] : memref<4x4x32x8xbf16, #tpu.memory_space<vmem>>, vector<1x1x32x8xbf16>
    %402 = vector.shape_cast %401 : vector<1x1x32x8xbf16> to vector<32x8xbf16>
    %cst_215 = arith.constant dense<0.000000e+00> : vector<8x8xf32>
    %403 = tpu.matmul %293, %402, %cst_215 {dimension_numbers = #tpu.dot_dimension_numbers<[1], [0], [0], [1], [0, 0, 1, 1], [], []>} : vector<8x32xbf16>, vector<32x8xbf16>, vector<8x8xf32> -> vector<8x8xf32>
    %404 = vector.extract_strided_slice %282 {offsets = [0, 16], sizes = [1, 8], strides = [1, 1]} : vector<1x32xf32> to vector<1x8xf32>
    %405 = vector.broadcast %404 : vector<1x8xf32> to vector<8x8xf32>
    %406 = arith.addf %403, %405 : vector<8x8xf32>
    %407 = arith.truncf %394 : vector<8x8xf32> to vector<8x8xbf16>
    %408 = arith.truncf %400 : vector<8x8xf32> to vector<8x8xbf16>
    %409 = tpu.transpose %408, [1, 0] : vector<8x8xbf16> -> vector<8x8xbf16>
    %cst_216 = arith.constant dense<0.000000e+00> : vector<8x8xf32>
    %410 = tpu.matmul %407, %409, %cst_216 {dimension_numbers = #tpu.dot_dimension_numbers<[1], [0], [0], [1], [0, 0, 1, 1], [], []>} : vector<8x8xbf16>, vector<8x8xbf16>, vector<8x8xf32> -> vector<8x8xf32>
    %411 = vector.broadcast %3 : vector<1x8xf32> to vector<8x8xf32>
    %412 = arith.addf %410, %411 : vector<8x8xf32>
    %cst_217 = arith.constant dense<0xFF800000> : vector<8xf32>
    %413 = vector.multi_reduction <maximumf>, %412, %cst_217 [1] : vector<8x8xf32> to vector<8xf32>
    %cst_218 = arith.constant 0xFF800000 : f32
    %414 = vector.broadcast %cst_218 : f32 to vector<8xf32>
    %415 = arith.maximumf %414, %413 : vector<8xf32>
    %416 = vector.shape_cast %415 : vector<8xf32> to vector<8x1xf32>
    %417 = vector.broadcast %416 : vector<8x1xf32> to vector<8x8xf32>
    %418 = arith.subf %412, %417 : vector<8x8xf32>
    %419 = math.exp %418 : vector<8x8xf32>
    %cst_219 = arith.constant dense<0.000000e+00> : vector<8xf32>
    %420 = vector.multi_reduction <add>, %419, %cst_219 [1] : vector<8x8xf32> to vector<8xf32>
    %421 = vector.shape_cast %420 : vector<8xf32> to vector<8x1xf32>
    %422 = vector.broadcast %421 : vector<8x1xf32> to vector<8x8xf32>
    %423 = arith.divf %419, %422 : vector<8x8xf32>
    %424 = vector.broadcast %1 : vector<8x1xf32> to vector<8x8xf32>
    %425 = arith.mulf %423, %424 : vector<8x8xf32>
    %426 = arith.truncf %425 : vector<8x8xf32> to vector<8x8xbf16>
    %427 = arith.truncf %406 : vector<8x8xf32> to vector<8x8xbf16>
    %cst_220 = arith.constant dense<0.000000e+00> : vector<8x8xf32>
    %428 = tpu.matmul %426, %427, %cst_220 {dimension_numbers = #tpu.dot_dimension_numbers<[1], [0], [0], [1], [0, 0, 1, 1], [], []>} : vector<8x8xbf16>, vector<8x8xbf16>, vector<8x8xf32> -> vector<8x8xf32>
    %429 = arith.truncf %428 : vector<8x8xf32> to vector<8x8xbf16>
    %c1_221 = arith.constant 1 : index
    %c2_222 = arith.constant 2 : index
    %c0_223 = arith.constant 0 : index
    %c0_224 = arith.constant 0 : index
    %430 = vector.load %arg8[%c1_221, %c2_222, %c0_223, %c0_224] : memref<4x4x8x32xbf16, #tpu.memory_space<vmem>>, vector<1x1x8x32xbf16>
    %431 = vector.shape_cast %430 : vector<1x1x8x32xbf16> to vector<8x32xbf16>
    %cst_225 = arith.constant dense<0.000000e+00> : vector<8x32xf32>
    %432 = tpu.matmul %429, %431, %cst_225 {dimension_numbers = #tpu.dot_dimension_numbers<[1], [0], [0], [1], [0, 0, 1, 1], [], []>} : vector<8x8xbf16>, vector<8x32xbf16>, vector<8x32xf32> -> vector<8x32xf32>
    %433 = arith.addf %386, %432 : vector<8x32xf32>
    %c1_226 = arith.constant 1 : index
    %c3_227 = arith.constant 3 : index
    %c0_228 = arith.constant 0 : index
    %c0_229 = arith.constant 0 : index
    %434 = vector.load %arg5[%c1_226, %c3_227, %c0_228, %c0_229] : memref<4x4x32x8xbf16, #tpu.memory_space<vmem>>, vector<1x1x32x8xbf16>
    %435 = vector.shape_cast %434 : vector<1x1x32x8xbf16> to vector<32x8xbf16>
    %cst_230 = arith.constant dense<0.000000e+00> : vector<8x8xf32>
    %436 = tpu.matmul %293, %435, %cst_230 {dimension_numbers = #tpu.dot_dimension_numbers<[1], [0], [0], [1], [0, 0, 1, 1], [], []>} : vector<8x32xbf16>, vector<32x8xbf16>, vector<8x8xf32> -> vector<8x8xf32>
    %437 = vector.extract_strided_slice %280 {offsets = [0, 24], sizes = [1, 8], strides = [1, 1]} : vector<1x32xf32> to vector<1x8xf32>
    %438 = vector.broadcast %437 : vector<1x8xf32> to vector<8x8xf32>
    %439 = arith.addf %436, %438 : vector<8x8xf32>
    %cst_231 = arith.constant 0.353553385 : f32
    %440 = vector.broadcast %cst_231 : f32 to vector<8x8xf32>
    %441 = arith.mulf %439, %440 : vector<8x8xf32>
    %c1_232 = arith.constant 1 : index
    %c3_233 = arith.constant 3 : index
    %c0_234 = arith.constant 0 : index
    %c0_235 = arith.constant 0 : index
    %442 = vector.load %arg6[%c1_232, %c3_233, %c0_234, %c0_235] : memref<4x4x32x8xbf16, #tpu.memory_space<vmem>>, vector<1x1x32x8xbf16>
    %443 = vector.shape_cast %442 : vector<1x1x32x8xbf16> to vector<32x8xbf16>
    %cst_236 = arith.constant dense<0.000000e+00> : vector<8x8xf32>
    %444 = tpu.matmul %293, %443, %cst_236 {dimension_numbers = #tpu.dot_dimension_numbers<[1], [0], [0], [1], [0, 0, 1, 1], [], []>} : vector<8x32xbf16>, vector<32x8xbf16>, vector<8x8xf32> -> vector<8x8xf32>
    %445 = vector.extract_strided_slice %281 {offsets = [0, 24], sizes = [1, 8], strides = [1, 1]} : vector<1x32xf32> to vector<1x8xf32>
    %446 = vector.broadcast %445 : vector<1x8xf32> to vector<8x8xf32>
    %447 = arith.addf %444, %446 : vector<8x8xf32>
    %c1_237 = arith.constant 1 : index
    %c3_238 = arith.constant 3 : index
    %c0_239 = arith.constant 0 : index
    %c0_240 = arith.constant 0 : index
    %448 = vector.load %arg7[%c1_237, %c3_238, %c0_239, %c0_240] : memref<4x4x32x8xbf16, #tpu.memory_space<vmem>>, vector<1x1x32x8xbf16>
    %449 = vector.shape_cast %448 : vector<1x1x32x8xbf16> to vector<32x8xbf16>
    %cst_241 = arith.constant dense<0.000000e+00> : vector<8x8xf32>
    %450 = tpu.matmul %293, %449, %cst_241 {dimension_numbers = #tpu.dot_dimension_numbers<[1], [0], [0], [1], [0, 0, 1, 1], [], []>} : vector<8x32xbf16>, vector<32x8xbf16>, vector<8x8xf32> -> vector<8x8xf32>
    %451 = vector.extract_strided_slice %282 {offsets = [0, 24], sizes = [1, 8], strides = [1, 1]} : vector<1x32xf32> to vector<1x8xf32>
    %452 = vector.broadcast %451 : vector<1x8xf32> to vector<8x8xf32>
    %453 = arith.addf %450, %452 : vector<8x8xf32>
    %454 = arith.truncf %441 : vector<8x8xf32> to vector<8x8xbf16>
    %455 = arith.truncf %447 : vector<8x8xf32> to vector<8x8xbf16>
    %456 = tpu.transpose %455, [1, 0] : vector<8x8xbf16> -> vector<8x8xbf16>
    %cst_242 = arith.constant dense<0.000000e+00> : vector<8x8xf32>
    %457 = tpu.matmul %454, %456, %cst_242 {dimension_numbers = #tpu.dot_dimension_numbers<[1], [0], [0], [1], [0, 0, 1, 1], [], []>} : vector<8x8xbf16>, vector<8x8xbf16>, vector<8x8xf32> -> vector<8x8xf32>
    %458 = vector.broadcast %3 : vector<1x8xf32> to vector<8x8xf32>
    %459 = arith.addf %457, %458 : vector<8x8xf32>
    %cst_243 = arith.constant dense<0xFF800000> : vector<8xf32>
    %460 = vector.multi_reduction <maximumf>, %459, %cst_243 [1] : vector<8x8xf32> to vector<8xf32>
    %cst_244 = arith.constant 0xFF800000 : f32
    %461 = vector.broadcast %cst_244 : f32 to vector<8xf32>
    %462 = arith.maximumf %461, %460 : vector<8xf32>
    %463 = vector.shape_cast %462 : vector<8xf32> to vector<8x1xf32>
    %464 = vector.broadcast %463 : vector<8x1xf32> to vector<8x8xf32>
    %465 = arith.subf %459, %464 : vector<8x8xf32>
    %466 = math.exp %465 : vector<8x8xf32>
    %cst_245 = arith.constant dense<0.000000e+00> : vector<8xf32>
    %467 = vector.multi_reduction <add>, %466, %cst_245 [1] : vector<8x8xf32> to vector<8xf32>
    %468 = vector.shape_cast %467 : vector<8xf32> to vector<8x1xf32>
    %469 = vector.broadcast %468 : vector<8x1xf32> to vector<8x8xf32>
    %470 = arith.divf %466, %469 : vector<8x8xf32>
    %471 = vector.broadcast %1 : vector<8x1xf32> to vector<8x8xf32>
    %472 = arith.mulf %470, %471 : vector<8x8xf32>
    %473 = arith.truncf %472 : vector<8x8xf32> to vector<8x8xbf16>
    %474 = arith.truncf %453 : vector<8x8xf32> to vector<8x8xbf16>
    %cst_246 = arith.constant dense<0.000000e+00> : vector<8x8xf32>
    %475 = tpu.matmul %473, %474, %cst_246 {dimension_numbers = #tpu.dot_dimension_numbers<[1], [0], [0], [1], [0, 0, 1, 1], [], []>} : vector<8x8xbf16>, vector<8x8xbf16>, vector<8x8xf32> -> vector<8x8xf32>
    %476 = arith.truncf %475 : vector<8x8xf32> to vector<8x8xbf16>
    %c1_247 = arith.constant 1 : index
    %c3_248 = arith.constant 3 : index
    %c0_249 = arith.constant 0 : index
    %c0_250 = arith.constant 0 : index
    %477 = vector.load %arg8[%c1_247, %c3_248, %c0_249, %c0_250] : memref<4x4x8x32xbf16, #tpu.memory_space<vmem>>, vector<1x1x8x32xbf16>
    %478 = vector.shape_cast %477 : vector<1x1x8x32xbf16> to vector<8x32xbf16>
    %cst_251 = arith.constant dense<0.000000e+00> : vector<8x32xf32>
    %479 = tpu.matmul %476, %478, %cst_251 {dimension_numbers = #tpu.dot_dimension_numbers<[1], [0], [0], [1], [0, 0, 1, 1], [], []>} : vector<8x8xbf16>, vector<8x32xbf16>, vector<8x32xf32> -> vector<8x32xf32>
    %480 = arith.addf %433, %479 : vector<8x32xf32>
    %481 = vector.broadcast %283 : vector<1x32xf32> to vector<8x32xf32>
    %482 = arith.addf %480, %481 : vector<8x32xf32>
    %483 = arith.addf %482, %273 : vector<8x32xf32>
    %cst_252 = arith.constant dense<0.000000e+00> : vector<8xf32>
    %484 = vector.multi_reduction <add>, %483, %cst_252 [1] : vector<8x32xf32> to vector<8xf32>
    %485 = vector.shape_cast %484 : vector<8xf32> to vector<8x1xf32>
    %cst_253 = arith.constant 3.200000e+01 : f32
    %486 = vector.broadcast %cst_253 : f32 to vector<8x1xf32>
    %487 = arith.divf %485, %486 : vector<8x1xf32>
    %488 = vector.broadcast %487 : vector<8x1xf32> to vector<8x32xf32>
    %489 = arith.subf %483, %488 : vector<8x32xf32>
    %490 = arith.mulf %489, %489 : vector<8x32xf32>
    %cst_254 = arith.constant dense<0.000000e+00> : vector<8xf32>
    %491 = vector.multi_reduction <add>, %490, %cst_254 [1] : vector<8x32xf32> to vector<8xf32>
    %492 = vector.shape_cast %491 : vector<8xf32> to vector<8x1xf32>
    %cst_255 = arith.constant 3.200000e+01 : f32
    %493 = vector.broadcast %cst_255 : f32 to vector<8x1xf32>
    %494 = arith.divf %492, %493 : vector<8x1xf32>
    %495 = vector.broadcast %487 : vector<8x1xf32> to vector<8x32xf32>
    %496 = arith.subf %483, %495 : vector<8x32xf32>
    %cst_256 = arith.constant 9.99999974E-6 : f32
    %497 = vector.broadcast %cst_256 : f32 to vector<8x1xf32>
    %498 = arith.addf %494, %497 : vector<8x1xf32>
    %499 = math.rsqrt %498 : vector<8x1xf32>
    %500 = vector.broadcast %499 : vector<8x1xf32> to vector<8x32xf32>
    %501 = arith.mulf %496, %500 : vector<8x32xf32>
    %502 = vector.broadcast %284 : vector<1x32xf32> to vector<8x32xf32>
    %503 = arith.mulf %501, %502 : vector<8x32xf32>
    %504 = vector.broadcast %285 : vector<1x32xf32> to vector<8x32xf32>
    %505 = arith.addf %503, %504 : vector<8x32xf32>
    %506 = vector.broadcast %1 : vector<8x1xf32> to vector<8x32xf32>
    %507 = arith.mulf %9, %506 : vector<8x32xf32>
    %508 = arith.addf %505, %507 : vector<8x32xf32>
    %cst_257 = arith.constant dense<0.000000e+00> : vector<8xf32>
    %509 = vector.multi_reduction <add>, %508, %cst_257 [1] : vector<8x32xf32> to vector<8xf32>
    %510 = vector.shape_cast %509 : vector<8xf32> to vector<8x1xf32>
    %cst_258 = arith.constant 3.200000e+01 : f32
    %511 = vector.broadcast %cst_258 : f32 to vector<8x1xf32>
    %512 = arith.divf %510, %511 : vector<8x1xf32>
    %513 = vector.broadcast %512 : vector<8x1xf32> to vector<8x32xf32>
    %514 = arith.subf %508, %513 : vector<8x32xf32>
    %515 = arith.mulf %514, %514 : vector<8x32xf32>
    %cst_259 = arith.constant dense<0.000000e+00> : vector<8xf32>
    %516 = vector.multi_reduction <add>, %515, %cst_259 [1] : vector<8x32xf32> to vector<8xf32>
    %517 = vector.shape_cast %516 : vector<8xf32> to vector<8x1xf32>
    %cst_260 = arith.constant 3.200000e+01 : f32
    %518 = vector.broadcast %cst_260 : f32 to vector<8x1xf32>
    %519 = arith.divf %517, %518 : vector<8x1xf32>
    %520 = vector.broadcast %512 : vector<8x1xf32> to vector<8x32xf32>
    %521 = arith.subf %508, %520 : vector<8x32xf32>
    %cst_261 = arith.constant 9.99999974E-6 : f32
    %522 = vector.broadcast %cst_261 : f32 to vector<8x1xf32>
    %523 = arith.addf %519, %522 : vector<8x1xf32>
    %524 = math.rsqrt %523 : vector<8x1xf32>
    %525 = vector.broadcast %524 : vector<8x1xf32> to vector<8x32xf32>
    %526 = arith.mulf %521, %525 : vector<8x32xf32>
    %527 = vector.broadcast %286 : vector<1x32xf32> to vector<8x32xf32>
    %528 = arith.mulf %526, %527 : vector<8x32xf32>
    %529 = vector.broadcast %287 : vector<1x32xf32> to vector<8x32xf32>
    %530 = arith.addf %528, %529 : vector<8x32xf32>
    %531 = arith.truncf %530 : vector<8x32xf32> to vector<8x32xbf16>
    %cst_262 = arith.constant dense<0.000000e+00> : vector<8x128xf32>
    %532 = tpu.matmul %531, %275, %cst_262 {dimension_numbers = #tpu.dot_dimension_numbers<[1], [0], [0], [1], [0, 0, 1, 1], [], []>} : vector<8x32xbf16>, vector<32x128xbf16>, vector<8x128xf32> -> vector<8x128xf32>
    %533 = vector.broadcast %292 : vector<1x128xf32> to vector<8x128xf32>
    %534 = arith.addf %532, %533 : vector<8x128xf32>
    %cst_263 = arith.constant 0.000000e+00 : f32
    %535 = vector.broadcast %cst_263 : f32 to vector<8x128xf32>
    %536 = arith.maximumf %534, %535 : vector<8x128xf32>
    %537 = arith.truncf %536 : vector<8x128xf32> to vector<8x128xbf16>
    %cst_264 = arith.constant dense<0.000000e+00> : vector<8x32xf32>
    %538 = tpu.matmul %537, %277, %cst_264 {dimension_numbers = #tpu.dot_dimension_numbers<[1], [0], [0], [1], [0, 0, 1, 1], [], []>} : vector<8x128xbf16>, vector<128x32xbf16>, vector<8x32xf32> -> vector<8x32xf32>
    %539 = vector.broadcast %288 : vector<1x32xf32> to vector<8x32xf32>
    %540 = arith.addf %538, %539 : vector<8x32xf32>
    %541 = arith.addf %540, %530 : vector<8x32xf32>
    %542 = vector.broadcast %1 : vector<8x1xf32> to vector<8x32xf32>
    %543 = arith.mulf %541, %542 : vector<8x32xf32>
    %cst_265 = arith.constant dense<0.000000e+00> : vector<8xf32>
    %544 = vector.multi_reduction <add>, %543, %cst_265 [1] : vector<8x32xf32> to vector<8xf32>
    %545 = vector.shape_cast %544 : vector<8xf32> to vector<8x1xf32>
    %cst_266 = arith.constant 3.200000e+01 : f32
    %546 = vector.broadcast %cst_266 : f32 to vector<8x1xf32>
    %547 = arith.divf %545, %546 : vector<8x1xf32>
    %548 = vector.broadcast %547 : vector<8x1xf32> to vector<8x32xf32>
    %549 = arith.subf %543, %548 : vector<8x32xf32>
    %550 = arith.mulf %549, %549 : vector<8x32xf32>
    %cst_267 = arith.constant dense<0.000000e+00> : vector<8xf32>
    %551 = vector.multi_reduction <add>, %550, %cst_267 [1] : vector<8x32xf32> to vector<8xf32>
    %552 = vector.shape_cast %551 : vector<8xf32> to vector<8x1xf32>
    %cst_268 = arith.constant 3.200000e+01 : f32
    %553 = vector.broadcast %cst_268 : f32 to vector<8x1xf32>
    %554 = arith.divf %552, %553 : vector<8x1xf32>
    %555 = vector.broadcast %547 : vector<8x1xf32> to vector<8x32xf32>
    %556 = arith.subf %543, %555 : vector<8x32xf32>
    %cst_269 = arith.constant 9.99999974E-6 : f32
    %557 = vector.broadcast %cst_269 : f32 to vector<8x1xf32>
    %558 = arith.addf %554, %557 : vector<8x1xf32>
    %559 = math.rsqrt %558 : vector<8x1xf32>
    %560 = vector.broadcast %559 : vector<8x1xf32> to vector<8x32xf32>
    %561 = arith.mulf %556, %560 : vector<8x32xf32>
    %562 = vector.broadcast %289 : vector<1x32xf32> to vector<8x32xf32>
    %563 = arith.mulf %561, %562 : vector<8x32xf32>
    %564 = vector.broadcast %290 : vector<1x32xf32> to vector<8x32xf32>
    %565 = arith.addf %563, %564 : vector<8x32xf32>
    %c2_270 = arith.constant 2 : index
    %c0_271 = arith.constant 0 : index
    %c0_272 = arith.constant 0 : index
    %566 = vector.load %arg9[%c2_270, %c0_271, %c0_272] : memref<4x32x128xbf16, #tpu.memory_space<vmem>>, vector<1x32x128xbf16>
    %567 = vector.shape_cast %566 : vector<1x32x128xbf16> to vector<32x128xbf16>
    %c2_273 = arith.constant 2 : index
    %c0_274 = arith.constant 0 : index
    %c0_275 = arith.constant 0 : index
    %568 = vector.load %arg10[%c2_273, %c0_274, %c0_275] : memref<4x128x32xbf16, #tpu.memory_space<vmem>>, vector<1x128x32xbf16>
    %569 = vector.shape_cast %568 : vector<1x128x32xbf16> to vector<128x32xbf16>
    %c2_276 = arith.constant 2 : index
    %c0_277 = arith.constant 0 : index
    %c0_278 = arith.constant 0 : index
    %570 = vector.load %arg11[%c2_276, %c0_277, %c0_278] : memref<4x11x32xf32, #tpu.memory_space<vmem>>, vector<1x11x32xf32>
    %571 = vector.shape_cast %570 : vector<1x11x32xf32> to vector<11x32xf32>
    %572 = vector.extract_strided_slice %571 {offsets = [0, 0], sizes = [1, 32], strides = [1, 1]} : vector<11x32xf32> to vector<1x32xf32>
    %573 = vector.extract_strided_slice %571 {offsets = [1, 0], sizes = [1, 32], strides = [1, 1]} : vector<11x32xf32> to vector<1x32xf32>
    %574 = vector.extract_strided_slice %571 {offsets = [2, 0], sizes = [1, 32], strides = [1, 1]} : vector<11x32xf32> to vector<1x32xf32>
    %575 = vector.extract_strided_slice %571 {offsets = [3, 0], sizes = [1, 32], strides = [1, 1]} : vector<11x32xf32> to vector<1x32xf32>
    %576 = vector.extract_strided_slice %571 {offsets = [4, 0], sizes = [1, 32], strides = [1, 1]} : vector<11x32xf32> to vector<1x32xf32>
    %577 = vector.extract_strided_slice %571 {offsets = [5, 0], sizes = [1, 32], strides = [1, 1]} : vector<11x32xf32> to vector<1x32xf32>
    %578 = vector.extract_strided_slice %571 {offsets = [8, 0], sizes = [1, 32], strides = [1, 1]} : vector<11x32xf32> to vector<1x32xf32>
    %579 = vector.extract_strided_slice %571 {offsets = [9, 0], sizes = [1, 32], strides = [1, 1]} : vector<11x32xf32> to vector<1x32xf32>
    %580 = vector.extract_strided_slice %571 {offsets = [10, 0], sizes = [1, 32], strides = [1, 1]} : vector<11x32xf32> to vector<1x32xf32>
    %c2_279 = arith.constant 2 : index
    %c0_280 = arith.constant 0 : index
    %c0_281 = arith.constant 0 : index
    %581 = vector.load %arg12[%c2_279, %c0_280, %c0_281] : memref<4x1x128xf32, #tpu.memory_space<vmem>>, vector<1x1x128xf32>
    %582 = vector.shape_cast %581 : vector<1x1x128xf32> to vector<1x128xf32>
    %583 = arith.truncf %565 : vector<8x32xf32> to vector<8x32xbf16>
    %c2_282 = arith.constant 2 : index
    %c0_283 = arith.constant 0 : index
    %c0_284 = arith.constant 0 : index
    %c0_285 = arith.constant 0 : index
    %584 = vector.load %arg5[%c2_282, %c0_283, %c0_284, %c0_285] : memref<4x4x32x8xbf16, #tpu.memory_space<vmem>>, vector<1x1x32x8xbf16>
    %585 = vector.shape_cast %584 : vector<1x1x32x8xbf16> to vector<32x8xbf16>
    %cst_286 = arith.constant dense<0.000000e+00> : vector<8x8xf32>
    %586 = tpu.matmul %583, %585, %cst_286 {dimension_numbers = #tpu.dot_dimension_numbers<[1], [0], [0], [1], [0, 0, 1, 1], [], []>} : vector<8x32xbf16>, vector<32x8xbf16>, vector<8x8xf32> -> vector<8x8xf32>
    %587 = vector.extract_strided_slice %572 {offsets = [0, 0], sizes = [1, 8], strides = [1, 1]} : vector<1x32xf32> to vector<1x8xf32>
    %588 = vector.broadcast %587 : vector<1x8xf32> to vector<8x8xf32>
    %589 = arith.addf %586, %588 : vector<8x8xf32>
    %cst_287 = arith.constant 0.353553385 : f32
    %590 = vector.broadcast %cst_287 : f32 to vector<8x8xf32>
    %591 = arith.mulf %589, %590 : vector<8x8xf32>
    %c2_288 = arith.constant 2 : index
    %c0_289 = arith.constant 0 : index
    %c0_290 = arith.constant 0 : index
    %c0_291 = arith.constant 0 : index
    %592 = vector.load %arg6[%c2_288, %c0_289, %c0_290, %c0_291] : memref<4x4x32x8xbf16, #tpu.memory_space<vmem>>, vector<1x1x32x8xbf16>
    %593 = vector.shape_cast %592 : vector<1x1x32x8xbf16> to vector<32x8xbf16>
    %cst_292 = arith.constant dense<0.000000e+00> : vector<8x8xf32>
    %594 = tpu.matmul %583, %593, %cst_292 {dimension_numbers = #tpu.dot_dimension_numbers<[1], [0], [0], [1], [0, 0, 1, 1], [], []>} : vector<8x32xbf16>, vector<32x8xbf16>, vector<8x8xf32> -> vector<8x8xf32>
    %595 = vector.extract_strided_slice %573 {offsets = [0, 0], sizes = [1, 8], strides = [1, 1]} : vector<1x32xf32> to vector<1x8xf32>
    %596 = vector.broadcast %595 : vector<1x8xf32> to vector<8x8xf32>
    %597 = arith.addf %594, %596 : vector<8x8xf32>
    %c2_293 = arith.constant 2 : index
    %c0_294 = arith.constant 0 : index
    %c0_295 = arith.constant 0 : index
    %c0_296 = arith.constant 0 : index
    %598 = vector.load %arg7[%c2_293, %c0_294, %c0_295, %c0_296] : memref<4x4x32x8xbf16, #tpu.memory_space<vmem>>, vector<1x1x32x8xbf16>
    %599 = vector.shape_cast %598 : vector<1x1x32x8xbf16> to vector<32x8xbf16>
    %cst_297 = arith.constant dense<0.000000e+00> : vector<8x8xf32>
    %600 = tpu.matmul %583, %599, %cst_297 {dimension_numbers = #tpu.dot_dimension_numbers<[1], [0], [0], [1], [0, 0, 1, 1], [], []>} : vector<8x32xbf16>, vector<32x8xbf16>, vector<8x8xf32> -> vector<8x8xf32>
    %601 = vector.extract_strided_slice %574 {offsets = [0, 0], sizes = [1, 8], strides = [1, 1]} : vector<1x32xf32> to vector<1x8xf32>
    %602 = vector.broadcast %601 : vector<1x8xf32> to vector<8x8xf32>
    %603 = arith.addf %600, %602 : vector<8x8xf32>
    %604 = arith.truncf %591 : vector<8x8xf32> to vector<8x8xbf16>
    %605 = arith.truncf %597 : vector<8x8xf32> to vector<8x8xbf16>
    %606 = tpu.transpose %605, [1, 0] : vector<8x8xbf16> -> vector<8x8xbf16>
    %cst_298 = arith.constant dense<0.000000e+00> : vector<8x8xf32>
    %607 = tpu.matmul %604, %606, %cst_298 {dimension_numbers = #tpu.dot_dimension_numbers<[1], [0], [0], [1], [0, 0, 1, 1], [], []>} : vector<8x8xbf16>, vector<8x8xbf16>, vector<8x8xf32> -> vector<8x8xf32>
    %608 = vector.broadcast %3 : vector<1x8xf32> to vector<8x8xf32>
    %609 = arith.addf %607, %608 : vector<8x8xf32>
    %cst_299 = arith.constant dense<0xFF800000> : vector<8xf32>
    %610 = vector.multi_reduction <maximumf>, %609, %cst_299 [1] : vector<8x8xf32> to vector<8xf32>
    %cst_300 = arith.constant 0xFF800000 : f32
    %611 = vector.broadcast %cst_300 : f32 to vector<8xf32>
    %612 = arith.maximumf %611, %610 : vector<8xf32>
    %613 = vector.shape_cast %612 : vector<8xf32> to vector<8x1xf32>
    %614 = vector.broadcast %613 : vector<8x1xf32> to vector<8x8xf32>
    %615 = arith.subf %609, %614 : vector<8x8xf32>
    %616 = math.exp %615 : vector<8x8xf32>
    %cst_301 = arith.constant dense<0.000000e+00> : vector<8xf32>
    %617 = vector.multi_reduction <add>, %616, %cst_301 [1] : vector<8x8xf32> to vector<8xf32>
    %618 = vector.shape_cast %617 : vector<8xf32> to vector<8x1xf32>
    %619 = vector.broadcast %618 : vector<8x1xf32> to vector<8x8xf32>
    %620 = arith.divf %616, %619 : vector<8x8xf32>
    %621 = vector.broadcast %1 : vector<8x1xf32> to vector<8x8xf32>
    %622 = arith.mulf %620, %621 : vector<8x8xf32>
    %623 = arith.truncf %622 : vector<8x8xf32> to vector<8x8xbf16>
    %624 = arith.truncf %603 : vector<8x8xf32> to vector<8x8xbf16>
    %cst_302 = arith.constant dense<0.000000e+00> : vector<8x8xf32>
    %625 = tpu.matmul %623, %624, %cst_302 {dimension_numbers = #tpu.dot_dimension_numbers<[1], [0], [0], [1], [0, 0, 1, 1], [], []>} : vector<8x8xbf16>, vector<8x8xbf16>, vector<8x8xf32> -> vector<8x8xf32>
    %626 = arith.truncf %625 : vector<8x8xf32> to vector<8x8xbf16>
    %c2_303 = arith.constant 2 : index
    %c0_304 = arith.constant 0 : index
    %c0_305 = arith.constant 0 : index
    %c0_306 = arith.constant 0 : index
    %627 = vector.load %arg8[%c2_303, %c0_304, %c0_305, %c0_306] : memref<4x4x8x32xbf16, #tpu.memory_space<vmem>>, vector<1x1x8x32xbf16>
    %628 = vector.shape_cast %627 : vector<1x1x8x32xbf16> to vector<8x32xbf16>
    %cst_307 = arith.constant dense<0.000000e+00> : vector<8x32xf32>
    %629 = tpu.matmul %626, %628, %cst_307 {dimension_numbers = #tpu.dot_dimension_numbers<[1], [0], [0], [1], [0, 0, 1, 1], [], []>} : vector<8x8xbf16>, vector<8x32xbf16>, vector<8x32xf32> -> vector<8x32xf32>
    %c2_308 = arith.constant 2 : index
    %c1_309 = arith.constant 1 : index
    %c0_310 = arith.constant 0 : index
    %c0_311 = arith.constant 0 : index
    %630 = vector.load %arg5[%c2_308, %c1_309, %c0_310, %c0_311] : memref<4x4x32x8xbf16, #tpu.memory_space<vmem>>, vector<1x1x32x8xbf16>
    %631 = vector.shape_cast %630 : vector<1x1x32x8xbf16> to vector<32x8xbf16>
    %cst_312 = arith.constant dense<0.000000e+00> : vector<8x8xf32>
    %632 = tpu.matmul %583, %631, %cst_312 {dimension_numbers = #tpu.dot_dimension_numbers<[1], [0], [0], [1], [0, 0, 1, 1], [], []>} : vector<8x32xbf16>, vector<32x8xbf16>, vector<8x8xf32> -> vector<8x8xf32>
    %633 = vector.extract_strided_slice %572 {offsets = [0, 8], sizes = [1, 8], strides = [1, 1]} : vector<1x32xf32> to vector<1x8xf32>
    %634 = vector.broadcast %633 : vector<1x8xf32> to vector<8x8xf32>
    %635 = arith.addf %632, %634 : vector<8x8xf32>
    %cst_313 = arith.constant 0.353553385 : f32
    %636 = vector.broadcast %cst_313 : f32 to vector<8x8xf32>
    %637 = arith.mulf %635, %636 : vector<8x8xf32>
    %c2_314 = arith.constant 2 : index
    %c1_315 = arith.constant 1 : index
    %c0_316 = arith.constant 0 : index
    %c0_317 = arith.constant 0 : index
    %638 = vector.load %arg6[%c2_314, %c1_315, %c0_316, %c0_317] : memref<4x4x32x8xbf16, #tpu.memory_space<vmem>>, vector<1x1x32x8xbf16>
    %639 = vector.shape_cast %638 : vector<1x1x32x8xbf16> to vector<32x8xbf16>
    %cst_318 = arith.constant dense<0.000000e+00> : vector<8x8xf32>
    %640 = tpu.matmul %583, %639, %cst_318 {dimension_numbers = #tpu.dot_dimension_numbers<[1], [0], [0], [1], [0, 0, 1, 1], [], []>} : vector<8x32xbf16>, vector<32x8xbf16>, vector<8x8xf32> -> vector<8x8xf32>
    %641 = vector.extract_strided_slice %573 {offsets = [0, 8], sizes = [1, 8], strides = [1, 1]} : vector<1x32xf32> to vector<1x8xf32>
    %642 = vector.broadcast %641 : vector<1x8xf32> to vector<8x8xf32>
    %643 = arith.addf %640, %642 : vector<8x8xf32>
    %c2_319 = arith.constant 2 : index
    %c1_320 = arith.constant 1 : index
    %c0_321 = arith.constant 0 : index
    %c0_322 = arith.constant 0 : index
    %644 = vector.load %arg7[%c2_319, %c1_320, %c0_321, %c0_322] : memref<4x4x32x8xbf16, #tpu.memory_space<vmem>>, vector<1x1x32x8xbf16>
    %645 = vector.shape_cast %644 : vector<1x1x32x8xbf16> to vector<32x8xbf16>
    %cst_323 = arith.constant dense<0.000000e+00> : vector<8x8xf32>
    %646 = tpu.matmul %583, %645, %cst_323 {dimension_numbers = #tpu.dot_dimension_numbers<[1], [0], [0], [1], [0, 0, 1, 1], [], []>} : vector<8x32xbf16>, vector<32x8xbf16>, vector<8x8xf32> -> vector<8x8xf32>
    %647 = vector.extract_strided_slice %574 {offsets = [0, 8], sizes = [1, 8], strides = [1, 1]} : vector<1x32xf32> to vector<1x8xf32>
    %648 = vector.broadcast %647 : vector<1x8xf32> to vector<8x8xf32>
    %649 = arith.addf %646, %648 : vector<8x8xf32>
    %650 = arith.truncf %637 : vector<8x8xf32> to vector<8x8xbf16>
    %651 = arith.truncf %643 : vector<8x8xf32> to vector<8x8xbf16>
    %652 = tpu.transpose %651, [1, 0] : vector<8x8xbf16> -> vector<8x8xbf16>
    %cst_324 = arith.constant dense<0.000000e+00> : vector<8x8xf32>
    %653 = tpu.matmul %650, %652, %cst_324 {dimension_numbers = #tpu.dot_dimension_numbers<[1], [0], [0], [1], [0, 0, 1, 1], [], []>} : vector<8x8xbf16>, vector<8x8xbf16>, vector<8x8xf32> -> vector<8x8xf32>
    %654 = vector.broadcast %3 : vector<1x8xf32> to vector<8x8xf32>
    %655 = arith.addf %653, %654 : vector<8x8xf32>
    %cst_325 = arith.constant dense<0xFF800000> : vector<8xf32>
    %656 = vector.multi_reduction <maximumf>, %655, %cst_325 [1] : vector<8x8xf32> to vector<8xf32>
    %cst_326 = arith.constant 0xFF800000 : f32
    %657 = vector.broadcast %cst_326 : f32 to vector<8xf32>
    %658 = arith.maximumf %657, %656 : vector<8xf32>
    %659 = vector.shape_cast %658 : vector<8xf32> to vector<8x1xf32>
    %660 = vector.broadcast %659 : vector<8x1xf32> to vector<8x8xf32>
    %661 = arith.subf %655, %660 : vector<8x8xf32>
    %662 = math.exp %661 : vector<8x8xf32>
    %cst_327 = arith.constant dense<0.000000e+00> : vector<8xf32>
    %663 = vector.multi_reduction <add>, %662, %cst_327 [1] : vector<8x8xf32> to vector<8xf32>
    %664 = vector.shape_cast %663 : vector<8xf32> to vector<8x1xf32>
    %665 = vector.broadcast %664 : vector<8x1xf32> to vector<8x8xf32>
    %666 = arith.divf %662, %665 : vector<8x8xf32>
    %667 = vector.broadcast %1 : vector<8x1xf32> to vector<8x8xf32>
    %668 = arith.mulf %666, %667 : vector<8x8xf32>
    %669 = arith.truncf %668 : vector<8x8xf32> to vector<8x8xbf16>
    %670 = arith.truncf %649 : vector<8x8xf32> to vector<8x8xbf16>
    %cst_328 = arith.constant dense<0.000000e+00> : vector<8x8xf32>
    %671 = tpu.matmul %669, %670, %cst_328 {dimension_numbers = #tpu.dot_dimension_numbers<[1], [0], [0], [1], [0, 0, 1, 1], [], []>} : vector<8x8xbf16>, vector<8x8xbf16>, vector<8x8xf32> -> vector<8x8xf32>
    %672 = arith.truncf %671 : vector<8x8xf32> to vector<8x8xbf16>
    %c2_329 = arith.constant 2 : index
    %c1_330 = arith.constant 1 : index
    %c0_331 = arith.constant 0 : index
    %c0_332 = arith.constant 0 : index
    %673 = vector.load %arg8[%c2_329, %c1_330, %c0_331, %c0_332] : memref<4x4x8x32xbf16, #tpu.memory_space<vmem>>, vector<1x1x8x32xbf16>
    %674 = vector.shape_cast %673 : vector<1x1x8x32xbf16> to vector<8x32xbf16>
    %cst_333 = arith.constant dense<0.000000e+00> : vector<8x32xf32>
    %675 = tpu.matmul %672, %674, %cst_333 {dimension_numbers = #tpu.dot_dimension_numbers<[1], [0], [0], [1], [0, 0, 1, 1], [], []>} : vector<8x8xbf16>, vector<8x32xbf16>, vector<8x32xf32> -> vector<8x32xf32>
    %676 = arith.addf %629, %675 : vector<8x32xf32>
    %c2_334 = arith.constant 2 : index
    %c2_335 = arith.constant 2 : index
    %c0_336 = arith.constant 0 : index
    %c0_337 = arith.constant 0 : index
    %677 = vector.load %arg5[%c2_334, %c2_335, %c0_336, %c0_337] : memref<4x4x32x8xbf16, #tpu.memory_space<vmem>>, vector<1x1x32x8xbf16>
    %678 = vector.shape_cast %677 : vector<1x1x32x8xbf16> to vector<32x8xbf16>
    %cst_338 = arith.constant dense<0.000000e+00> : vector<8x8xf32>
    %679 = tpu.matmul %583, %678, %cst_338 {dimension_numbers = #tpu.dot_dimension_numbers<[1], [0], [0], [1], [0, 0, 1, 1], [], []>} : vector<8x32xbf16>, vector<32x8xbf16>, vector<8x8xf32> -> vector<8x8xf32>
    %680 = vector.extract_strided_slice %572 {offsets = [0, 16], sizes = [1, 8], strides = [1, 1]} : vector<1x32xf32> to vector<1x8xf32>
    %681 = vector.broadcast %680 : vector<1x8xf32> to vector<8x8xf32>
    %682 = arith.addf %679, %681 : vector<8x8xf32>
    %cst_339 = arith.constant 0.353553385 : f32
    %683 = vector.broadcast %cst_339 : f32 to vector<8x8xf32>
    %684 = arith.mulf %682, %683 : vector<8x8xf32>
    %c2_340 = arith.constant 2 : index
    %c2_341 = arith.constant 2 : index
    %c0_342 = arith.constant 0 : index
    %c0_343 = arith.constant 0 : index
    %685 = vector.load %arg6[%c2_340, %c2_341, %c0_342, %c0_343] : memref<4x4x32x8xbf16, #tpu.memory_space<vmem>>, vector<1x1x32x8xbf16>
    %686 = vector.shape_cast %685 : vector<1x1x32x8xbf16> to vector<32x8xbf16>
    %cst_344 = arith.constant dense<0.000000e+00> : vector<8x8xf32>
    %687 = tpu.matmul %583, %686, %cst_344 {dimension_numbers = #tpu.dot_dimension_numbers<[1], [0], [0], [1], [0, 0, 1, 1], [], []>} : vector<8x32xbf16>, vector<32x8xbf16>, vector<8x8xf32> -> vector<8x8xf32>
    %688 = vector.extract_strided_slice %573 {offsets = [0, 16], sizes = [1, 8], strides = [1, 1]} : vector<1x32xf32> to vector<1x8xf32>
    %689 = vector.broadcast %688 : vector<1x8xf32> to vector<8x8xf32>
    %690 = arith.addf %687, %689 : vector<8x8xf32>
    %c2_345 = arith.constant 2 : index
    %c2_346 = arith.constant 2 : index
    %c0_347 = arith.constant 0 : index
    %c0_348 = arith.constant 0 : index
    %691 = vector.load %arg7[%c2_345, %c2_346, %c0_347, %c0_348] : memref<4x4x32x8xbf16, #tpu.memory_space<vmem>>, vector<1x1x32x8xbf16>
    %692 = vector.shape_cast %691 : vector<1x1x32x8xbf16> to vector<32x8xbf16>
    %cst_349 = arith.constant dense<0.000000e+00> : vector<8x8xf32>
    %693 = tpu.matmul %583, %692, %cst_349 {dimension_numbers = #tpu.dot_dimension_numbers<[1], [0], [0], [1], [0, 0, 1, 1], [], []>} : vector<8x32xbf16>, vector<32x8xbf16>, vector<8x8xf32> -> vector<8x8xf32>
    %694 = vector.extract_strided_slice %574 {offsets = [0, 16], sizes = [1, 8], strides = [1, 1]} : vector<1x32xf32> to vector<1x8xf32>
    %695 = vector.broadcast %694 : vector<1x8xf32> to vector<8x8xf32>
    %696 = arith.addf %693, %695 : vector<8x8xf32>
    %697 = arith.truncf %684 : vector<8x8xf32> to vector<8x8xbf16>
    %698 = arith.truncf %690 : vector<8x8xf32> to vector<8x8xbf16>
    %699 = tpu.transpose %698, [1, 0] : vector<8x8xbf16> -> vector<8x8xbf16>
    %cst_350 = arith.constant dense<0.000000e+00> : vector<8x8xf32>
    %700 = tpu.matmul %697, %699, %cst_350 {dimension_numbers = #tpu.dot_dimension_numbers<[1], [0], [0], [1], [0, 0, 1, 1], [], []>} : vector<8x8xbf16>, vector<8x8xbf16>, vector<8x8xf32> -> vector<8x8xf32>
    %701 = vector.broadcast %3 : vector<1x8xf32> to vector<8x8xf32>
    %702 = arith.addf %700, %701 : vector<8x8xf32>
    %cst_351 = arith.constant dense<0xFF800000> : vector<8xf32>
    %703 = vector.multi_reduction <maximumf>, %702, %cst_351 [1] : vector<8x8xf32> to vector<8xf32>
    %cst_352 = arith.constant 0xFF800000 : f32
    %704 = vector.broadcast %cst_352 : f32 to vector<8xf32>
    %705 = arith.maximumf %704, %703 : vector<8xf32>
    %706 = vector.shape_cast %705 : vector<8xf32> to vector<8x1xf32>
    %707 = vector.broadcast %706 : vector<8x1xf32> to vector<8x8xf32>
    %708 = arith.subf %702, %707 : vector<8x8xf32>
    %709 = math.exp %708 : vector<8x8xf32>
    %cst_353 = arith.constant dense<0.000000e+00> : vector<8xf32>
    %710 = vector.multi_reduction <add>, %709, %cst_353 [1] : vector<8x8xf32> to vector<8xf32>
    %711 = vector.shape_cast %710 : vector<8xf32> to vector<8x1xf32>
    %712 = vector.broadcast %711 : vector<8x1xf32> to vector<8x8xf32>
    %713 = arith.divf %709, %712 : vector<8x8xf32>
    %714 = vector.broadcast %1 : vector<8x1xf32> to vector<8x8xf32>
    %715 = arith.mulf %713, %714 : vector<8x8xf32>
    %716 = arith.truncf %715 : vector<8x8xf32> to vector<8x8xbf16>
    %717 = arith.truncf %696 : vector<8x8xf32> to vector<8x8xbf16>
    %cst_354 = arith.constant dense<0.000000e+00> : vector<8x8xf32>
    %718 = tpu.matmul %716, %717, %cst_354 {dimension_numbers = #tpu.dot_dimension_numbers<[1], [0], [0], [1], [0, 0, 1, 1], [], []>} : vector<8x8xbf16>, vector<8x8xbf16>, vector<8x8xf32> -> vector<8x8xf32>
    %719 = arith.truncf %718 : vector<8x8xf32> to vector<8x8xbf16>
    %c2_355 = arith.constant 2 : index
    %c2_356 = arith.constant 2 : index
    %c0_357 = arith.constant 0 : index
    %c0_358 = arith.constant 0 : index
    %720 = vector.load %arg8[%c2_355, %c2_356, %c0_357, %c0_358] : memref<4x4x8x32xbf16, #tpu.memory_space<vmem>>, vector<1x1x8x32xbf16>
    %721 = vector.shape_cast %720 : vector<1x1x8x32xbf16> to vector<8x32xbf16>
    %cst_359 = arith.constant dense<0.000000e+00> : vector<8x32xf32>
    %722 = tpu.matmul %719, %721, %cst_359 {dimension_numbers = #tpu.dot_dimension_numbers<[1], [0], [0], [1], [0, 0, 1, 1], [], []>} : vector<8x8xbf16>, vector<8x32xbf16>, vector<8x32xf32> -> vector<8x32xf32>
    %723 = arith.addf %676, %722 : vector<8x32xf32>
    %c2_360 = arith.constant 2 : index
    %c3_361 = arith.constant 3 : index
    %c0_362 = arith.constant 0 : index
    %c0_363 = arith.constant 0 : index
    %724 = vector.load %arg5[%c2_360, %c3_361, %c0_362, %c0_363] : memref<4x4x32x8xbf16, #tpu.memory_space<vmem>>, vector<1x1x32x8xbf16>
    %725 = vector.shape_cast %724 : vector<1x1x32x8xbf16> to vector<32x8xbf16>
    %cst_364 = arith.constant dense<0.000000e+00> : vector<8x8xf32>
    %726 = tpu.matmul %583, %725, %cst_364 {dimension_numbers = #tpu.dot_dimension_numbers<[1], [0], [0], [1], [0, 0, 1, 1], [], []>} : vector<8x32xbf16>, vector<32x8xbf16>, vector<8x8xf32> -> vector<8x8xf32>
    %727 = vector.extract_strided_slice %572 {offsets = [0, 24], sizes = [1, 8], strides = [1, 1]} : vector<1x32xf32> to vector<1x8xf32>
    %728 = vector.broadcast %727 : vector<1x8xf32> to vector<8x8xf32>
    %729 = arith.addf %726, %728 : vector<8x8xf32>
    %cst_365 = arith.constant 0.353553385 : f32
    %730 = vector.broadcast %cst_365 : f32 to vector<8x8xf32>
    %731 = arith.mulf %729, %730 : vector<8x8xf32>
    %c2_366 = arith.constant 2 : index
    %c3_367 = arith.constant 3 : index
    %c0_368 = arith.constant 0 : index
    %c0_369 = arith.constant 0 : index
    %732 = vector.load %arg6[%c2_366, %c3_367, %c0_368, %c0_369] : memref<4x4x32x8xbf16, #tpu.memory_space<vmem>>, vector<1x1x32x8xbf16>
    %733 = vector.shape_cast %732 : vector<1x1x32x8xbf16> to vector<32x8xbf16>
    %cst_370 = arith.constant dense<0.000000e+00> : vector<8x8xf32>
    %734 = tpu.matmul %583, %733, %cst_370 {dimension_numbers = #tpu.dot_dimension_numbers<[1], [0], [0], [1], [0, 0, 1, 1], [], []>} : vector<8x32xbf16>, vector<32x8xbf16>, vector<8x8xf32> -> vector<8x8xf32>
    %735 = vector.extract_strided_slice %573 {offsets = [0, 24], sizes = [1, 8], strides = [1, 1]} : vector<1x32xf32> to vector<1x8xf32>
    %736 = vector.broadcast %735 : vector<1x8xf32> to vector<8x8xf32>
    %737 = arith.addf %734, %736 : vector<8x8xf32>
    %c2_371 = arith.constant 2 : index
    %c3_372 = arith.constant 3 : index
    %c0_373 = arith.constant 0 : index
    %c0_374 = arith.constant 0 : index
    %738 = vector.load %arg7[%c2_371, %c3_372, %c0_373, %c0_374] : memref<4x4x32x8xbf16, #tpu.memory_space<vmem>>, vector<1x1x32x8xbf16>
    %739 = vector.shape_cast %738 : vector<1x1x32x8xbf16> to vector<32x8xbf16>
    %cst_375 = arith.constant dense<0.000000e+00> : vector<8x8xf32>
    %740 = tpu.matmul %583, %739, %cst_375 {dimension_numbers = #tpu.dot_dimension_numbers<[1], [0], [0], [1], [0, 0, 1, 1], [], []>} : vector<8x32xbf16>, vector<32x8xbf16>, vector<8x8xf32> -> vector<8x8xf32>
    %741 = vector.extract_strided_slice %574 {offsets = [0, 24], sizes = [1, 8], strides = [1, 1]} : vector<1x32xf32> to vector<1x8xf32>
    %742 = vector.broadcast %741 : vector<1x8xf32> to vector<8x8xf32>
    %743 = arith.addf %740, %742 : vector<8x8xf32>
    %744 = arith.truncf %731 : vector<8x8xf32> to vector<8x8xbf16>
    %745 = arith.truncf %737 : vector<8x8xf32> to vector<8x8xbf16>
    %746 = tpu.transpose %745, [1, 0] : vector<8x8xbf16> -> vector<8x8xbf16>
    %cst_376 = arith.constant dense<0.000000e+00> : vector<8x8xf32>
    %747 = tpu.matmul %744, %746, %cst_376 {dimension_numbers = #tpu.dot_dimension_numbers<[1], [0], [0], [1], [0, 0, 1, 1], [], []>} : vector<8x8xbf16>, vector<8x8xbf16>, vector<8x8xf32> -> vector<8x8xf32>
    %748 = vector.broadcast %3 : vector<1x8xf32> to vector<8x8xf32>
    %749 = arith.addf %747, %748 : vector<8x8xf32>
    %cst_377 = arith.constant dense<0xFF800000> : vector<8xf32>
    %750 = vector.multi_reduction <maximumf>, %749, %cst_377 [1] : vector<8x8xf32> to vector<8xf32>
    %cst_378 = arith.constant 0xFF800000 : f32
    %751 = vector.broadcast %cst_378 : f32 to vector<8xf32>
    %752 = arith.maximumf %751, %750 : vector<8xf32>
    %753 = vector.shape_cast %752 : vector<8xf32> to vector<8x1xf32>
    %754 = vector.broadcast %753 : vector<8x1xf32> to vector<8x8xf32>
    %755 = arith.subf %749, %754 : vector<8x8xf32>
    %756 = math.exp %755 : vector<8x8xf32>
    %cst_379 = arith.constant dense<0.000000e+00> : vector<8xf32>
    %757 = vector.multi_reduction <add>, %756, %cst_379 [1] : vector<8x8xf32> to vector<8xf32>
    %758 = vector.shape_cast %757 : vector<8xf32> to vector<8x1xf32>
    %759 = vector.broadcast %758 : vector<8x1xf32> to vector<8x8xf32>
    %760 = arith.divf %756, %759 : vector<8x8xf32>
    %761 = vector.broadcast %1 : vector<8x1xf32> to vector<8x8xf32>
    %762 = arith.mulf %760, %761 : vector<8x8xf32>
    %763 = arith.truncf %762 : vector<8x8xf32> to vector<8x8xbf16>
    %764 = arith.truncf %743 : vector<8x8xf32> to vector<8x8xbf16>
    %cst_380 = arith.constant dense<0.000000e+00> : vector<8x8xf32>
    %765 = tpu.matmul %763, %764, %cst_380 {dimension_numbers = #tpu.dot_dimension_numbers<[1], [0], [0], [1], [0, 0, 1, 1], [], []>} : vector<8x8xbf16>, vector<8x8xbf16>, vector<8x8xf32> -> vector<8x8xf32>
    %766 = arith.truncf %765 : vector<8x8xf32> to vector<8x8xbf16>
    %c2_381 = arith.constant 2 : index
    %c3_382 = arith.constant 3 : index
    %c0_383 = arith.constant 0 : index
    %c0_384 = arith.constant 0 : index
    %767 = vector.load %arg8[%c2_381, %c3_382, %c0_383, %c0_384] : memref<4x4x8x32xbf16, #tpu.memory_space<vmem>>, vector<1x1x8x32xbf16>
    %768 = vector.shape_cast %767 : vector<1x1x8x32xbf16> to vector<8x32xbf16>
    %cst_385 = arith.constant dense<0.000000e+00> : vector<8x32xf32>
    %769 = tpu.matmul %766, %768, %cst_385 {dimension_numbers = #tpu.dot_dimension_numbers<[1], [0], [0], [1], [0, 0, 1, 1], [], []>} : vector<8x8xbf16>, vector<8x32xbf16>, vector<8x32xf32> -> vector<8x32xf32>
    %770 = arith.addf %723, %769 : vector<8x32xf32>
    %771 = vector.broadcast %575 : vector<1x32xf32> to vector<8x32xf32>
    %772 = arith.addf %770, %771 : vector<8x32xf32>
    %cst_386 = arith.constant dense<0.000000e+00> : vector<8xf32>
    %773 = vector.multi_reduction <add>, %772, %cst_386 [1] : vector<8x32xf32> to vector<8xf32>
    %774 = vector.shape_cast %773 : vector<8xf32> to vector<8x1xf32>
    %cst_387 = arith.constant 3.200000e+01 : f32
    %775 = vector.broadcast %cst_387 : f32 to vector<8x1xf32>
    %776 = arith.divf %774, %775 : vector<8x1xf32>
    %777 = vector.broadcast %776 : vector<8x1xf32> to vector<8x32xf32>
    %778 = arith.subf %772, %777 : vector<8x32xf32>
    %779 = arith.mulf %778, %778 : vector<8x32xf32>
    %cst_388 = arith.constant dense<0.000000e+00> : vector<8xf32>
    %780 = vector.multi_reduction <add>, %779, %cst_388 [1] : vector<8x32xf32> to vector<8xf32>
    %781 = vector.shape_cast %780 : vector<8xf32> to vector<8x1xf32>
    %cst_389 = arith.constant 3.200000e+01 : f32
    %782 = vector.broadcast %cst_389 : f32 to vector<8x1xf32>
    %783 = arith.divf %781, %782 : vector<8x1xf32>
    %784 = vector.broadcast %776 : vector<8x1xf32> to vector<8x32xf32>
    %785 = arith.subf %772, %784 : vector<8x32xf32>
    %cst_390 = arith.constant 9.99999974E-6 : f32
    %786 = vector.broadcast %cst_390 : f32 to vector<8x1xf32>
    %787 = arith.addf %783, %786 : vector<8x1xf32>
    %788 = math.rsqrt %787 : vector<8x1xf32>
    %789 = vector.broadcast %788 : vector<8x1xf32> to vector<8x32xf32>
    %790 = arith.mulf %785, %789 : vector<8x32xf32>
    %791 = vector.broadcast %576 : vector<1x32xf32> to vector<8x32xf32>
    %792 = arith.mulf %790, %791 : vector<8x32xf32>
    %793 = vector.broadcast %577 : vector<1x32xf32> to vector<8x32xf32>
    %794 = arith.addf %792, %793 : vector<8x32xf32>
    %795 = arith.truncf %794 : vector<8x32xf32> to vector<8x32xbf16>
    %cst_391 = arith.constant dense<0.000000e+00> : vector<8x128xf32>
    %796 = tpu.matmul %795, %567, %cst_391 {dimension_numbers = #tpu.dot_dimension_numbers<[1], [0], [0], [1], [0, 0, 1, 1], [], []>} : vector<8x32xbf16>, vector<32x128xbf16>, vector<8x128xf32> -> vector<8x128xf32>
    %797 = vector.broadcast %582 : vector<1x128xf32> to vector<8x128xf32>
    %798 = arith.addf %796, %797 : vector<8x128xf32>
    %cst_392 = arith.constant 0.000000e+00 : f32
    %799 = vector.broadcast %cst_392 : f32 to vector<8x128xf32>
    %800 = arith.maximumf %798, %799 : vector<8x128xf32>
    %801 = arith.truncf %800 : vector<8x128xf32> to vector<8x128xbf16>
    %cst_393 = arith.constant dense<0.000000e+00> : vector<8x32xf32>
    %802 = tpu.matmul %801, %569, %cst_393 {dimension_numbers = #tpu.dot_dimension_numbers<[1], [0], [0], [1], [0, 0, 1, 1], [], []>} : vector<8x128xbf16>, vector<128x32xbf16>, vector<8x32xf32> -> vector<8x32xf32>
    %803 = vector.broadcast %578 : vector<1x32xf32> to vector<8x32xf32>
    %804 = arith.addf %802, %803 : vector<8x32xf32>
    %805 = arith.addf %804, %794 : vector<8x32xf32>
    %806 = vector.broadcast %1 : vector<8x1xf32> to vector<8x32xf32>
    %807 = arith.mulf %805, %806 : vector<8x32xf32>
    %cst_394 = arith.constant dense<0.000000e+00> : vector<8xf32>
    %808 = vector.multi_reduction <add>, %807, %cst_394 [1] : vector<8x32xf32> to vector<8xf32>
    %809 = vector.shape_cast %808 : vector<8xf32> to vector<8x1xf32>
    %cst_395 = arith.constant 3.200000e+01 : f32
    %810 = vector.broadcast %cst_395 : f32 to vector<8x1xf32>
    %811 = arith.divf %809, %810 : vector<8x1xf32>
    %812 = vector.broadcast %811 : vector<8x1xf32> to vector<8x32xf32>
    %813 = arith.subf %807, %812 : vector<8x32xf32>
    %814 = arith.mulf %813, %813 : vector<8x32xf32>
    %cst_396 = arith.constant dense<0.000000e+00> : vector<8xf32>
    %815 = vector.multi_reduction <add>, %814, %cst_396 [1] : vector<8x32xf32> to vector<8xf32>
    %816 = vector.shape_cast %815 : vector<8xf32> to vector<8x1xf32>
    %cst_397 = arith.constant 3.200000e+01 : f32
    %817 = vector.broadcast %cst_397 : f32 to vector<8x1xf32>
    %818 = arith.divf %816, %817 : vector<8x1xf32>
    %819 = vector.broadcast %811 : vector<8x1xf32> to vector<8x32xf32>
    %820 = arith.subf %807, %819 : vector<8x32xf32>
    %cst_398 = arith.constant 9.99999974E-6 : f32
    %821 = vector.broadcast %cst_398 : f32 to vector<8x1xf32>
    %822 = arith.addf %818, %821 : vector<8x1xf32>
    %823 = math.rsqrt %822 : vector<8x1xf32>
    %824 = vector.broadcast %823 : vector<8x1xf32> to vector<8x32xf32>
    %825 = arith.mulf %820, %824 : vector<8x32xf32>
    %826 = vector.broadcast %579 : vector<1x32xf32> to vector<8x32xf32>
    %827 = arith.mulf %825, %826 : vector<8x32xf32>
    %828 = vector.broadcast %580 : vector<1x32xf32> to vector<8x32xf32>
    %829 = arith.addf %827, %828 : vector<8x32xf32>
    %c3_399 = arith.constant 3 : index
    %c0_400 = arith.constant 0 : index
    %c0_401 = arith.constant 0 : index
    %830 = vector.load %arg9[%c3_399, %c0_400, %c0_401] : memref<4x32x128xbf16, #tpu.memory_space<vmem>>, vector<1x32x128xbf16>
    %831 = vector.shape_cast %830 : vector<1x32x128xbf16> to vector<32x128xbf16>
    %c3_402 = arith.constant 3 : index
    %c0_403 = arith.constant 0 : index
    %c0_404 = arith.constant 0 : index
    %832 = vector.load %arg10[%c3_402, %c0_403, %c0_404] : memref<4x128x32xbf16, #tpu.memory_space<vmem>>, vector<1x128x32xbf16>
    %833 = vector.shape_cast %832 : vector<1x128x32xbf16> to vector<128x32xbf16>
    %c3_405 = arith.constant 3 : index
    %c0_406 = arith.constant 0 : index
    %c0_407 = arith.constant 0 : index
    %834 = vector.load %arg11[%c3_405, %c0_406, %c0_407] : memref<4x11x32xf32, #tpu.memory_space<vmem>>, vector<1x11x32xf32>
    %835 = vector.shape_cast %834 : vector<1x11x32xf32> to vector<11x32xf32>
    %836 = vector.extract_strided_slice %835 {offsets = [0, 0], sizes = [1, 32], strides = [1, 1]} : vector<11x32xf32> to vector<1x32xf32>
    %837 = vector.extract_strided_slice %835 {offsets = [1, 0], sizes = [1, 32], strides = [1, 1]} : vector<11x32xf32> to vector<1x32xf32>
    %838 = vector.extract_strided_slice %835 {offsets = [2, 0], sizes = [1, 32], strides = [1, 1]} : vector<11x32xf32> to vector<1x32xf32>
    %839 = vector.extract_strided_slice %835 {offsets = [3, 0], sizes = [1, 32], strides = [1, 1]} : vector<11x32xf32> to vector<1x32xf32>
    %840 = vector.extract_strided_slice %835 {offsets = [4, 0], sizes = [1, 32], strides = [1, 1]} : vector<11x32xf32> to vector<1x32xf32>
    %841 = vector.extract_strided_slice %835 {offsets = [5, 0], sizes = [1, 32], strides = [1, 1]} : vector<11x32xf32> to vector<1x32xf32>
    %842 = vector.extract_strided_slice %835 {offsets = [6, 0], sizes = [1, 32], strides = [1, 1]} : vector<11x32xf32> to vector<1x32xf32>
    %843 = vector.extract_strided_slice %835 {offsets = [7, 0], sizes = [1, 32], strides = [1, 1]} : vector<11x32xf32> to vector<1x32xf32>
    %844 = vector.extract_strided_slice %835 {offsets = [8, 0], sizes = [1, 32], strides = [1, 1]} : vector<11x32xf32> to vector<1x32xf32>
    %845 = vector.extract_strided_slice %835 {offsets = [9, 0], sizes = [1, 32], strides = [1, 1]} : vector<11x32xf32> to vector<1x32xf32>
    %846 = vector.extract_strided_slice %835 {offsets = [10, 0], sizes = [1, 32], strides = [1, 1]} : vector<11x32xf32> to vector<1x32xf32>
    %c3_408 = arith.constant 3 : index
    %c0_409 = arith.constant 0 : index
    %c0_410 = arith.constant 0 : index
    %847 = vector.load %arg12[%c3_408, %c0_409, %c0_410] : memref<4x1x128xf32, #tpu.memory_space<vmem>>, vector<1x1x128xf32>
    %848 = vector.shape_cast %847 : vector<1x1x128xf32> to vector<1x128xf32>
    %849 = arith.truncf %829 : vector<8x32xf32> to vector<8x32xbf16>
    %c3_411 = arith.constant 3 : index
    %c0_412 = arith.constant 0 : index
    %c0_413 = arith.constant 0 : index
    %c0_414 = arith.constant 0 : index
    %850 = vector.load %arg5[%c3_411, %c0_412, %c0_413, %c0_414] : memref<4x4x32x8xbf16, #tpu.memory_space<vmem>>, vector<1x1x32x8xbf16>
    %851 = vector.shape_cast %850 : vector<1x1x32x8xbf16> to vector<32x8xbf16>
    %cst_415 = arith.constant dense<0.000000e+00> : vector<8x8xf32>
    %852 = tpu.matmul %849, %851, %cst_415 {dimension_numbers = #tpu.dot_dimension_numbers<[1], [0], [0], [1], [0, 0, 1, 1], [], []>} : vector<8x32xbf16>, vector<32x8xbf16>, vector<8x8xf32> -> vector<8x8xf32>
    %853 = vector.extract_strided_slice %836 {offsets = [0, 0], sizes = [1, 8], strides = [1, 1]} : vector<1x32xf32> to vector<1x8xf32>
    %854 = vector.broadcast %853 : vector<1x8xf32> to vector<8x8xf32>
    %855 = arith.addf %852, %854 : vector<8x8xf32>
    %cst_416 = arith.constant 0.353553385 : f32
    %856 = vector.broadcast %cst_416 : f32 to vector<8x8xf32>
    %857 = arith.mulf %855, %856 : vector<8x8xf32>
    %c3_417 = arith.constant 3 : index
    %c0_418 = arith.constant 0 : index
    %c0_419 = arith.constant 0 : index
    %c0_420 = arith.constant 0 : index
    %858 = vector.load %arg6[%c3_417, %c0_418, %c0_419, %c0_420] : memref<4x4x32x8xbf16, #tpu.memory_space<vmem>>, vector<1x1x32x8xbf16>
    %859 = vector.shape_cast %858 : vector<1x1x32x8xbf16> to vector<32x8xbf16>
    %cst_421 = arith.constant dense<0.000000e+00> : vector<8x8xf32>
    %860 = tpu.matmul %849, %859, %cst_421 {dimension_numbers = #tpu.dot_dimension_numbers<[1], [0], [0], [1], [0, 0, 1, 1], [], []>} : vector<8x32xbf16>, vector<32x8xbf16>, vector<8x8xf32> -> vector<8x8xf32>
    %861 = vector.extract_strided_slice %837 {offsets = [0, 0], sizes = [1, 8], strides = [1, 1]} : vector<1x32xf32> to vector<1x8xf32>
    %862 = vector.broadcast %861 : vector<1x8xf32> to vector<8x8xf32>
    %863 = arith.addf %860, %862 : vector<8x8xf32>
    %c3_422 = arith.constant 3 : index
    %c0_423 = arith.constant 0 : index
    %c0_424 = arith.constant 0 : index
    %c0_425 = arith.constant 0 : index
    %864 = vector.load %arg7[%c3_422, %c0_423, %c0_424, %c0_425] : memref<4x4x32x8xbf16, #tpu.memory_space<vmem>>, vector<1x1x32x8xbf16>
    %865 = vector.shape_cast %864 : vector<1x1x32x8xbf16> to vector<32x8xbf16>
    %cst_426 = arith.constant dense<0.000000e+00> : vector<8x8xf32>
    %866 = tpu.matmul %849, %865, %cst_426 {dimension_numbers = #tpu.dot_dimension_numbers<[1], [0], [0], [1], [0, 0, 1, 1], [], []>} : vector<8x32xbf16>, vector<32x8xbf16>, vector<8x8xf32> -> vector<8x8xf32>
    %867 = vector.extract_strided_slice %838 {offsets = [0, 0], sizes = [1, 8], strides = [1, 1]} : vector<1x32xf32> to vector<1x8xf32>
    %868 = vector.broadcast %867 : vector<1x8xf32> to vector<8x8xf32>
    %869 = arith.addf %866, %868 : vector<8x8xf32>
    %870 = arith.truncf %857 : vector<8x8xf32> to vector<8x8xbf16>
    %871 = arith.truncf %863 : vector<8x8xf32> to vector<8x8xbf16>
    %872 = tpu.transpose %871, [1, 0] : vector<8x8xbf16> -> vector<8x8xbf16>
    %cst_427 = arith.constant dense<0.000000e+00> : vector<8x8xf32>
    %873 = tpu.matmul %870, %872, %cst_427 {dimension_numbers = #tpu.dot_dimension_numbers<[1], [0], [0], [1], [0, 0, 1, 1], [], []>} : vector<8x8xbf16>, vector<8x8xbf16>, vector<8x8xf32> -> vector<8x8xf32>
    %874 = vector.broadcast %3 : vector<1x8xf32> to vector<8x8xf32>
    %875 = arith.addf %873, %874 : vector<8x8xf32>
    %cst_428 = arith.constant dense<0xFF800000> : vector<8xf32>
    %876 = vector.multi_reduction <maximumf>, %875, %cst_428 [1] : vector<8x8xf32> to vector<8xf32>
    %cst_429 = arith.constant 0xFF800000 : f32
    %877 = vector.broadcast %cst_429 : f32 to vector<8xf32>
    %878 = arith.maximumf %877, %876 : vector<8xf32>
    %879 = vector.shape_cast %878 : vector<8xf32> to vector<8x1xf32>
    %880 = vector.broadcast %879 : vector<8x1xf32> to vector<8x8xf32>
    %881 = arith.subf %875, %880 : vector<8x8xf32>
    %882 = math.exp %881 : vector<8x8xf32>
    %cst_430 = arith.constant dense<0.000000e+00> : vector<8xf32>
    %883 = vector.multi_reduction <add>, %882, %cst_430 [1] : vector<8x8xf32> to vector<8xf32>
    %884 = vector.shape_cast %883 : vector<8xf32> to vector<8x1xf32>
    %885 = vector.broadcast %884 : vector<8x1xf32> to vector<8x8xf32>
    %886 = arith.divf %882, %885 : vector<8x8xf32>
    %887 = vector.broadcast %1 : vector<8x1xf32> to vector<8x8xf32>
    %888 = arith.mulf %886, %887 : vector<8x8xf32>
    %889 = arith.truncf %888 : vector<8x8xf32> to vector<8x8xbf16>
    %890 = arith.truncf %869 : vector<8x8xf32> to vector<8x8xbf16>
    %cst_431 = arith.constant dense<0.000000e+00> : vector<8x8xf32>
    %891 = tpu.matmul %889, %890, %cst_431 {dimension_numbers = #tpu.dot_dimension_numbers<[1], [0], [0], [1], [0, 0, 1, 1], [], []>} : vector<8x8xbf16>, vector<8x8xbf16>, vector<8x8xf32> -> vector<8x8xf32>
    %892 = arith.truncf %891 : vector<8x8xf32> to vector<8x8xbf16>
    %c3_432 = arith.constant 3 : index
    %c0_433 = arith.constant 0 : index
    %c0_434 = arith.constant 0 : index
    %c0_435 = arith.constant 0 : index
    %893 = vector.load %arg8[%c3_432, %c0_433, %c0_434, %c0_435] : memref<4x4x8x32xbf16, #tpu.memory_space<vmem>>, vector<1x1x8x32xbf16>
    %894 = vector.shape_cast %893 : vector<1x1x8x32xbf16> to vector<8x32xbf16>
    %cst_436 = arith.constant dense<0.000000e+00> : vector<8x32xf32>
    %895 = tpu.matmul %892, %894, %cst_436 {dimension_numbers = #tpu.dot_dimension_numbers<[1], [0], [0], [1], [0, 0, 1, 1], [], []>} : vector<8x8xbf16>, vector<8x32xbf16>, vector<8x32xf32> -> vector<8x32xf32>
    %c3_437 = arith.constant 3 : index
    %c1_438 = arith.constant 1 : index
    %c0_439 = arith.constant 0 : index
    %c0_440 = arith.constant 0 : index
    %896 = vector.load %arg5[%c3_437, %c1_438, %c0_439, %c0_440] : memref<4x4x32x8xbf16, #tpu.memory_space<vmem>>, vector<1x1x32x8xbf16>
    %897 = vector.shape_cast %896 : vector<1x1x32x8xbf16> to vector<32x8xbf16>
    %cst_441 = arith.constant dense<0.000000e+00> : vector<8x8xf32>
    %898 = tpu.matmul %849, %897, %cst_441 {dimension_numbers = #tpu.dot_dimension_numbers<[1], [0], [0], [1], [0, 0, 1, 1], [], []>} : vector<8x32xbf16>, vector<32x8xbf16>, vector<8x8xf32> -> vector<8x8xf32>
    %899 = vector.extract_strided_slice %836 {offsets = [0, 8], sizes = [1, 8], strides = [1, 1]} : vector<1x32xf32> to vector<1x8xf32>
    %900 = vector.broadcast %899 : vector<1x8xf32> to vector<8x8xf32>
    %901 = arith.addf %898, %900 : vector<8x8xf32>
    %cst_442 = arith.constant 0.353553385 : f32
    %902 = vector.broadcast %cst_442 : f32 to vector<8x8xf32>
    %903 = arith.mulf %901, %902 : vector<8x8xf32>
    %c3_443 = arith.constant 3 : index
    %c1_444 = arith.constant 1 : index
    %c0_445 = arith.constant 0 : index
    %c0_446 = arith.constant 0 : index
    %904 = vector.load %arg6[%c3_443, %c1_444, %c0_445, %c0_446] : memref<4x4x32x8xbf16, #tpu.memory_space<vmem>>, vector<1x1x32x8xbf16>
    %905 = vector.shape_cast %904 : vector<1x1x32x8xbf16> to vector<32x8xbf16>
    %cst_447 = arith.constant dense<0.000000e+00> : vector<8x8xf32>
    %906 = tpu.matmul %849, %905, %cst_447 {dimension_numbers = #tpu.dot_dimension_numbers<[1], [0], [0], [1], [0, 0, 1, 1], [], []>} : vector<8x32xbf16>, vector<32x8xbf16>, vector<8x8xf32> -> vector<8x8xf32>
    %907 = vector.extract_strided_slice %837 {offsets = [0, 8], sizes = [1, 8], strides = [1, 1]} : vector<1x32xf32> to vector<1x8xf32>
    %908 = vector.broadcast %907 : vector<1x8xf32> to vector<8x8xf32>
    %909 = arith.addf %906, %908 : vector<8x8xf32>
    %c3_448 = arith.constant 3 : index
    %c1_449 = arith.constant 1 : index
    %c0_450 = arith.constant 0 : index
    %c0_451 = arith.constant 0 : index
    %910 = vector.load %arg7[%c3_448, %c1_449, %c0_450, %c0_451] : memref<4x4x32x8xbf16, #tpu.memory_space<vmem>>, vector<1x1x32x8xbf16>
    %911 = vector.shape_cast %910 : vector<1x1x32x8xbf16> to vector<32x8xbf16>
    %cst_452 = arith.constant dense<0.000000e+00> : vector<8x8xf32>
    %912 = tpu.matmul %849, %911, %cst_452 {dimension_numbers = #tpu.dot_dimension_numbers<[1], [0], [0], [1], [0, 0, 1, 1], [], []>} : vector<8x32xbf16>, vector<32x8xbf16>, vector<8x8xf32> -> vector<8x8xf32>
    %913 = vector.extract_strided_slice %838 {offsets = [0, 8], sizes = [1, 8], strides = [1, 1]} : vector<1x32xf32> to vector<1x8xf32>
    %914 = vector.broadcast %913 : vector<1x8xf32> to vector<8x8xf32>
    %915 = arith.addf %912, %914 : vector<8x8xf32>
    %916 = arith.truncf %903 : vector<8x8xf32> to vector<8x8xbf16>
    %917 = arith.truncf %909 : vector<8x8xf32> to vector<8x8xbf16>
    %918 = tpu.transpose %917, [1, 0] : vector<8x8xbf16> -> vector<8x8xbf16>
    %cst_453 = arith.constant dense<0.000000e+00> : vector<8x8xf32>
    %919 = tpu.matmul %916, %918, %cst_453 {dimension_numbers = #tpu.dot_dimension_numbers<[1], [0], [0], [1], [0, 0, 1, 1], [], []>} : vector<8x8xbf16>, vector<8x8xbf16>, vector<8x8xf32> -> vector<8x8xf32>
    %920 = vector.broadcast %3 : vector<1x8xf32> to vector<8x8xf32>
    %921 = arith.addf %919, %920 : vector<8x8xf32>
    %cst_454 = arith.constant dense<0xFF800000> : vector<8xf32>
    %922 = vector.multi_reduction <maximumf>, %921, %cst_454 [1] : vector<8x8xf32> to vector<8xf32>
    %cst_455 = arith.constant 0xFF800000 : f32
    %923 = vector.broadcast %cst_455 : f32 to vector<8xf32>
    %924 = arith.maximumf %923, %922 : vector<8xf32>
    %925 = vector.shape_cast %924 : vector<8xf32> to vector<8x1xf32>
    %926 = vector.broadcast %925 : vector<8x1xf32> to vector<8x8xf32>
    %927 = arith.subf %921, %926 : vector<8x8xf32>
    %928 = math.exp %927 : vector<8x8xf32>
    %cst_456 = arith.constant dense<0.000000e+00> : vector<8xf32>
    %929 = vector.multi_reduction <add>, %928, %cst_456 [1] : vector<8x8xf32> to vector<8xf32>
    %930 = vector.shape_cast %929 : vector<8xf32> to vector<8x1xf32>
    %931 = vector.broadcast %930 : vector<8x1xf32> to vector<8x8xf32>
    %932 = arith.divf %928, %931 : vector<8x8xf32>
    %933 = vector.broadcast %1 : vector<8x1xf32> to vector<8x8xf32>
    %934 = arith.mulf %932, %933 : vector<8x8xf32>
    %935 = arith.truncf %934 : vector<8x8xf32> to vector<8x8xbf16>
    %936 = arith.truncf %915 : vector<8x8xf32> to vector<8x8xbf16>
    %cst_457 = arith.constant dense<0.000000e+00> : vector<8x8xf32>
    %937 = tpu.matmul %935, %936, %cst_457 {dimension_numbers = #tpu.dot_dimension_numbers<[1], [0], [0], [1], [0, 0, 1, 1], [], []>} : vector<8x8xbf16>, vector<8x8xbf16>, vector<8x8xf32> -> vector<8x8xf32>
    %938 = arith.truncf %937 : vector<8x8xf32> to vector<8x8xbf16>
    %c3_458 = arith.constant 3 : index
    %c1_459 = arith.constant 1 : index
    %c0_460 = arith.constant 0 : index
    %c0_461 = arith.constant 0 : index
    %939 = vector.load %arg8[%c3_458, %c1_459, %c0_460, %c0_461] : memref<4x4x8x32xbf16, #tpu.memory_space<vmem>>, vector<1x1x8x32xbf16>
    %940 = vector.shape_cast %939 : vector<1x1x8x32xbf16> to vector<8x32xbf16>
    %cst_462 = arith.constant dense<0.000000e+00> : vector<8x32xf32>
    %941 = tpu.matmul %938, %940, %cst_462 {dimension_numbers = #tpu.dot_dimension_numbers<[1], [0], [0], [1], [0, 0, 1, 1], [], []>} : vector<8x8xbf16>, vector<8x32xbf16>, vector<8x32xf32> -> vector<8x32xf32>
    %942 = arith.addf %895, %941 : vector<8x32xf32>
    %c3_463 = arith.constant 3 : index
    %c2_464 = arith.constant 2 : index
    %c0_465 = arith.constant 0 : index
    %c0_466 = arith.constant 0 : index
    %943 = vector.load %arg5[%c3_463, %c2_464, %c0_465, %c0_466] : memref<4x4x32x8xbf16, #tpu.memory_space<vmem>>, vector<1x1x32x8xbf16>
    %944 = vector.shape_cast %943 : vector<1x1x32x8xbf16> to vector<32x8xbf16>
    %cst_467 = arith.constant dense<0.000000e+00> : vector<8x8xf32>
    %945 = tpu.matmul %849, %944, %cst_467 {dimension_numbers = #tpu.dot_dimension_numbers<[1], [0], [0], [1], [0, 0, 1, 1], [], []>} : vector<8x32xbf16>, vector<32x8xbf16>, vector<8x8xf32> -> vector<8x8xf32>
    %946 = vector.extract_strided_slice %836 {offsets = [0, 16], sizes = [1, 8], strides = [1, 1]} : vector<1x32xf32> to vector<1x8xf32>
    %947 = vector.broadcast %946 : vector<1x8xf32> to vector<8x8xf32>
    %948 = arith.addf %945, %947 : vector<8x8xf32>
    %cst_468 = arith.constant 0.353553385 : f32
    %949 = vector.broadcast %cst_468 : f32 to vector<8x8xf32>
    %950 = arith.mulf %948, %949 : vector<8x8xf32>
    %c3_469 = arith.constant 3 : index
    %c2_470 = arith.constant 2 : index
    %c0_471 = arith.constant 0 : index
    %c0_472 = arith.constant 0 : index
    %951 = vector.load %arg6[%c3_469, %c2_470, %c0_471, %c0_472] : memref<4x4x32x8xbf16, #tpu.memory_space<vmem>>, vector<1x1x32x8xbf16>
    %952 = vector.shape_cast %951 : vector<1x1x32x8xbf16> to vector<32x8xbf16>
    %cst_473 = arith.constant dense<0.000000e+00> : vector<8x8xf32>
    %953 = tpu.matmul %849, %952, %cst_473 {dimension_numbers = #tpu.dot_dimension_numbers<[1], [0], [0], [1], [0, 0, 1, 1], [], []>} : vector<8x32xbf16>, vector<32x8xbf16>, vector<8x8xf32> -> vector<8x8xf32>
    %954 = vector.extract_strided_slice %837 {offsets = [0, 16], sizes = [1, 8], strides = [1, 1]} : vector<1x32xf32> to vector<1x8xf32>
    %955 = vector.broadcast %954 : vector<1x8xf32> to vector<8x8xf32>
    %956 = arith.addf %953, %955 : vector<8x8xf32>
    %c3_474 = arith.constant 3 : index
    %c2_475 = arith.constant 2 : index
    %c0_476 = arith.constant 0 : index
    %c0_477 = arith.constant 0 : index
    %957 = vector.load %arg7[%c3_474, %c2_475, %c0_476, %c0_477] : memref<4x4x32x8xbf16, #tpu.memory_space<vmem>>, vector<1x1x32x8xbf16>
    %958 = vector.shape_cast %957 : vector<1x1x32x8xbf16> to vector<32x8xbf16>
    %cst_478 = arith.constant dense<0.000000e+00> : vector<8x8xf32>
    %959 = tpu.matmul %849, %958, %cst_478 {dimension_numbers = #tpu.dot_dimension_numbers<[1], [0], [0], [1], [0, 0, 1, 1], [], []>} : vector<8x32xbf16>, vector<32x8xbf16>, vector<8x8xf32> -> vector<8x8xf32>
    %960 = vector.extract_strided_slice %838 {offsets = [0, 16], sizes = [1, 8], strides = [1, 1]} : vector<1x32xf32> to vector<1x8xf32>
    %961 = vector.broadcast %960 : vector<1x8xf32> to vector<8x8xf32>
    %962 = arith.addf %959, %961 : vector<8x8xf32>
    %963 = arith.truncf %950 : vector<8x8xf32> to vector<8x8xbf16>
    %964 = arith.truncf %956 : vector<8x8xf32> to vector<8x8xbf16>
    %965 = tpu.transpose %964, [1, 0] : vector<8x8xbf16> -> vector<8x8xbf16>
    %cst_479 = arith.constant dense<0.000000e+00> : vector<8x8xf32>
    %966 = tpu.matmul %963, %965, %cst_479 {dimension_numbers = #tpu.dot_dimension_numbers<[1], [0], [0], [1], [0, 0, 1, 1], [], []>} : vector<8x8xbf16>, vector<8x8xbf16>, vector<8x8xf32> -> vector<8x8xf32>
    %967 = vector.broadcast %3 : vector<1x8xf32> to vector<8x8xf32>
    %968 = arith.addf %966, %967 : vector<8x8xf32>
    %cst_480 = arith.constant dense<0xFF800000> : vector<8xf32>
    %969 = vector.multi_reduction <maximumf>, %968, %cst_480 [1] : vector<8x8xf32> to vector<8xf32>
    %cst_481 = arith.constant 0xFF800000 : f32
    %970 = vector.broadcast %cst_481 : f32 to vector<8xf32>
    %971 = arith.maximumf %970, %969 : vector<8xf32>
    %972 = vector.shape_cast %971 : vector<8xf32> to vector<8x1xf32>
    %973 = vector.broadcast %972 : vector<8x1xf32> to vector<8x8xf32>
    %974 = arith.subf %968, %973 : vector<8x8xf32>
    %975 = math.exp %974 : vector<8x8xf32>
    %cst_482 = arith.constant dense<0.000000e+00> : vector<8xf32>
    %976 = vector.multi_reduction <add>, %975, %cst_482 [1] : vector<8x8xf32> to vector<8xf32>
    %977 = vector.shape_cast %976 : vector<8xf32> to vector<8x1xf32>
    %978 = vector.broadcast %977 : vector<8x1xf32> to vector<8x8xf32>
    %979 = arith.divf %975, %978 : vector<8x8xf32>
    %980 = vector.broadcast %1 : vector<8x1xf32> to vector<8x8xf32>
    %981 = arith.mulf %979, %980 : vector<8x8xf32>
    %982 = arith.truncf %981 : vector<8x8xf32> to vector<8x8xbf16>
    %983 = arith.truncf %962 : vector<8x8xf32> to vector<8x8xbf16>
    %cst_483 = arith.constant dense<0.000000e+00> : vector<8x8xf32>
    %984 = tpu.matmul %982, %983, %cst_483 {dimension_numbers = #tpu.dot_dimension_numbers<[1], [0], [0], [1], [0, 0, 1, 1], [], []>} : vector<8x8xbf16>, vector<8x8xbf16>, vector<8x8xf32> -> vector<8x8xf32>
    %985 = arith.truncf %984 : vector<8x8xf32> to vector<8x8xbf16>
    %c3_484 = arith.constant 3 : index
    %c2_485 = arith.constant 2 : index
    %c0_486 = arith.constant 0 : index
    %c0_487 = arith.constant 0 : index
    %986 = vector.load %arg8[%c3_484, %c2_485, %c0_486, %c0_487] : memref<4x4x8x32xbf16, #tpu.memory_space<vmem>>, vector<1x1x8x32xbf16>
    %987 = vector.shape_cast %986 : vector<1x1x8x32xbf16> to vector<8x32xbf16>
    %cst_488 = arith.constant dense<0.000000e+00> : vector<8x32xf32>
    %988 = tpu.matmul %985, %987, %cst_488 {dimension_numbers = #tpu.dot_dimension_numbers<[1], [0], [0], [1], [0, 0, 1, 1], [], []>} : vector<8x8xbf16>, vector<8x32xbf16>, vector<8x32xf32> -> vector<8x32xf32>
    %989 = arith.addf %942, %988 : vector<8x32xf32>
    %c3_489 = arith.constant 3 : index
    %c3_490 = arith.constant 3 : index
    %c0_491 = arith.constant 0 : index
    %c0_492 = arith.constant 0 : index
    %990 = vector.load %arg5[%c3_489, %c3_490, %c0_491, %c0_492] : memref<4x4x32x8xbf16, #tpu.memory_space<vmem>>, vector<1x1x32x8xbf16>
    %991 = vector.shape_cast %990 : vector<1x1x32x8xbf16> to vector<32x8xbf16>
    %cst_493 = arith.constant dense<0.000000e+00> : vector<8x8xf32>
    %992 = tpu.matmul %849, %991, %cst_493 {dimension_numbers = #tpu.dot_dimension_numbers<[1], [0], [0], [1], [0, 0, 1, 1], [], []>} : vector<8x32xbf16>, vector<32x8xbf16>, vector<8x8xf32> -> vector<8x8xf32>
    %993 = vector.extract_strided_slice %836 {offsets = [0, 24], sizes = [1, 8], strides = [1, 1]} : vector<1x32xf32> to vector<1x8xf32>
    %994 = vector.broadcast %993 : vector<1x8xf32> to vector<8x8xf32>
    %995 = arith.addf %992, %994 : vector<8x8xf32>
    %cst_494 = arith.constant 0.353553385 : f32
    %996 = vector.broadcast %cst_494 : f32 to vector<8x8xf32>
    %997 = arith.mulf %995, %996 : vector<8x8xf32>
    %c3_495 = arith.constant 3 : index
    %c3_496 = arith.constant 3 : index
    %c0_497 = arith.constant 0 : index
    %c0_498 = arith.constant 0 : index
    %998 = vector.load %arg6[%c3_495, %c3_496, %c0_497, %c0_498] : memref<4x4x32x8xbf16, #tpu.memory_space<vmem>>, vector<1x1x32x8xbf16>
    %999 = vector.shape_cast %998 : vector<1x1x32x8xbf16> to vector<32x8xbf16>
    %cst_499 = arith.constant dense<0.000000e+00> : vector<8x8xf32>
    %1000 = tpu.matmul %849, %999, %cst_499 {dimension_numbers = #tpu.dot_dimension_numbers<[1], [0], [0], [1], [0, 0, 1, 1], [], []>} : vector<8x32xbf16>, vector<32x8xbf16>, vector<8x8xf32> -> vector<8x8xf32>
    %1001 = vector.extract_strided_slice %837 {offsets = [0, 24], sizes = [1, 8], strides = [1, 1]} : vector<1x32xf32> to vector<1x8xf32>
    %1002 = vector.broadcast %1001 : vector<1x8xf32> to vector<8x8xf32>
    %1003 = arith.addf %1000, %1002 : vector<8x8xf32>
    %c3_500 = arith.constant 3 : index
    %c3_501 = arith.constant 3 : index
    %c0_502 = arith.constant 0 : index
    %c0_503 = arith.constant 0 : index
    %1004 = vector.load %arg7[%c3_500, %c3_501, %c0_502, %c0_503] : memref<4x4x32x8xbf16, #tpu.memory_space<vmem>>, vector<1x1x32x8xbf16>
    %1005 = vector.shape_cast %1004 : vector<1x1x32x8xbf16> to vector<32x8xbf16>
    %cst_504 = arith.constant dense<0.000000e+00> : vector<8x8xf32>
    %1006 = tpu.matmul %849, %1005, %cst_504 {dimension_numbers = #tpu.dot_dimension_numbers<[1], [0], [0], [1], [0, 0, 1, 1], [], []>} : vector<8x32xbf16>, vector<32x8xbf16>, vector<8x8xf32> -> vector<8x8xf32>
    %1007 = vector.extract_strided_slice %838 {offsets = [0, 24], sizes = [1, 8], strides = [1, 1]} : vector<1x32xf32> to vector<1x8xf32>
    %1008 = vector.broadcast %1007 : vector<1x8xf32> to vector<8x8xf32>
    %1009 = arith.addf %1006, %1008 : vector<8x8xf32>
    %1010 = arith.truncf %997 : vector<8x8xf32> to vector<8x8xbf16>
    %1011 = arith.truncf %1003 : vector<8x8xf32> to vector<8x8xbf16>
    %1012 = tpu.transpose %1011, [1, 0] : vector<8x8xbf16> -> vector<8x8xbf16>
    %cst_505 = arith.constant dense<0.000000e+00> : vector<8x8xf32>
    %1013 = tpu.matmul %1010, %1012, %cst_505 {dimension_numbers = #tpu.dot_dimension_numbers<[1], [0], [0], [1], [0, 0, 1, 1], [], []>} : vector<8x8xbf16>, vector<8x8xbf16>, vector<8x8xf32> -> vector<8x8xf32>
    %1014 = vector.broadcast %3 : vector<1x8xf32> to vector<8x8xf32>
    %1015 = arith.addf %1013, %1014 : vector<8x8xf32>
    %cst_506 = arith.constant dense<0xFF800000> : vector<8xf32>
    %1016 = vector.multi_reduction <maximumf>, %1015, %cst_506 [1] : vector<8x8xf32> to vector<8xf32>
    %cst_507 = arith.constant 0xFF800000 : f32
    %1017 = vector.broadcast %cst_507 : f32 to vector<8xf32>
    %1018 = arith.maximumf %1017, %1016 : vector<8xf32>
    %1019 = vector.shape_cast %1018 : vector<8xf32> to vector<8x1xf32>
    %1020 = vector.broadcast %1019 : vector<8x1xf32> to vector<8x8xf32>
    %1021 = arith.subf %1015, %1020 : vector<8x8xf32>
    %1022 = math.exp %1021 : vector<8x8xf32>
    %cst_508 = arith.constant dense<0.000000e+00> : vector<8xf32>
    %1023 = vector.multi_reduction <add>, %1022, %cst_508 [1] : vector<8x8xf32> to vector<8xf32>
    %1024 = vector.shape_cast %1023 : vector<8xf32> to vector<8x1xf32>
    %1025 = vector.broadcast %1024 : vector<8x1xf32> to vector<8x8xf32>
    %1026 = arith.divf %1022, %1025 : vector<8x8xf32>
    %1027 = vector.broadcast %1 : vector<8x1xf32> to vector<8x8xf32>
    %1028 = arith.mulf %1026, %1027 : vector<8x8xf32>
    %1029 = arith.truncf %1028 : vector<8x8xf32> to vector<8x8xbf16>
    %1030 = arith.truncf %1009 : vector<8x8xf32> to vector<8x8xbf16>
    %cst_509 = arith.constant dense<0.000000e+00> : vector<8x8xf32>
    %1031 = tpu.matmul %1029, %1030, %cst_509 {dimension_numbers = #tpu.dot_dimension_numbers<[1], [0], [0], [1], [0, 0, 1, 1], [], []>} : vector<8x8xbf16>, vector<8x8xbf16>, vector<8x8xf32> -> vector<8x8xf32>
    %1032 = arith.truncf %1031 : vector<8x8xf32> to vector<8x8xbf16>
    %c3_510 = arith.constant 3 : index
    %c3_511 = arith.constant 3 : index
    %c0_512 = arith.constant 0 : index
    %c0_513 = arith.constant 0 : index
    %1033 = vector.load %arg8[%c3_510, %c3_511, %c0_512, %c0_513] : memref<4x4x8x32xbf16, #tpu.memory_space<vmem>>, vector<1x1x8x32xbf16>
    %1034 = vector.shape_cast %1033 : vector<1x1x8x32xbf16> to vector<8x32xbf16>
    %cst_514 = arith.constant dense<0.000000e+00> : vector<8x32xf32>
    %1035 = tpu.matmul %1032, %1034, %cst_514 {dimension_numbers = #tpu.dot_dimension_numbers<[1], [0], [0], [1], [0, 0, 1, 1], [], []>} : vector<8x8xbf16>, vector<8x32xbf16>, vector<8x32xf32> -> vector<8x32xf32>
    %1036 = arith.addf %989, %1035 : vector<8x32xf32>
    %1037 = vector.broadcast %839 : vector<1x32xf32> to vector<8x32xf32>
    %1038 = arith.addf %1036, %1037 : vector<8x32xf32>
    %1039 = arith.addf %1038, %829 : vector<8x32xf32>
    %cst_515 = arith.constant dense<0.000000e+00> : vector<8xf32>
    %1040 = vector.multi_reduction <add>, %1039, %cst_515 [1] : vector<8x32xf32> to vector<8xf32>
    %1041 = vector.shape_cast %1040 : vector<8xf32> to vector<8x1xf32>
    %cst_516 = arith.constant 3.200000e+01 : f32
    %1042 = vector.broadcast %cst_516 : f32 to vector<8x1xf32>
    %1043 = arith.divf %1041, %1042 : vector<8x1xf32>
    %1044 = vector.broadcast %1043 : vector<8x1xf32> to vector<8x32xf32>
    %1045 = arith.subf %1039, %1044 : vector<8x32xf32>
    %1046 = arith.mulf %1045, %1045 : vector<8x32xf32>
    %cst_517 = arith.constant dense<0.000000e+00> : vector<8xf32>
    %1047 = vector.multi_reduction <add>, %1046, %cst_517 [1] : vector<8x32xf32> to vector<8xf32>
    %1048 = vector.shape_cast %1047 : vector<8xf32> to vector<8x1xf32>
    %cst_518 = arith.constant 3.200000e+01 : f32
    %1049 = vector.broadcast %cst_518 : f32 to vector<8x1xf32>
    %1050 = arith.divf %1048, %1049 : vector<8x1xf32>
    %1051 = vector.broadcast %1043 : vector<8x1xf32> to vector<8x32xf32>
    %1052 = arith.subf %1039, %1051 : vector<8x32xf32>
    %cst_519 = arith.constant 9.99999974E-6 : f32
    %1053 = vector.broadcast %cst_519 : f32 to vector<8x1xf32>
    %1054 = arith.addf %1050, %1053 : vector<8x1xf32>
    %1055 = math.rsqrt %1054 : vector<8x1xf32>
    %1056 = vector.broadcast %1055 : vector<8x1xf32> to vector<8x32xf32>
    %1057 = arith.mulf %1052, %1056 : vector<8x32xf32>
    %1058 = vector.broadcast %840 : vector<1x32xf32> to vector<8x32xf32>
    %1059 = arith.mulf %1057, %1058 : vector<8x32xf32>
    %1060 = vector.broadcast %841 : vector<1x32xf32> to vector<8x32xf32>
    %1061 = arith.addf %1059, %1060 : vector<8x32xf32>
    %1062 = vector.broadcast %1 : vector<8x1xf32> to vector<8x32xf32>
    %1063 = arith.mulf %9, %1062 : vector<8x32xf32>
    %1064 = arith.addf %1061, %1063 : vector<8x32xf32>
    %cst_520 = arith.constant dense<0.000000e+00> : vector<8xf32>
    %1065 = vector.multi_reduction <add>, %1064, %cst_520 [1] : vector<8x32xf32> to vector<8xf32>
    %1066 = vector.shape_cast %1065 : vector<8xf32> to vector<8x1xf32>
    %cst_521 = arith.constant 3.200000e+01 : f32
    %1067 = vector.broadcast %cst_521 : f32 to vector<8x1xf32>
    %1068 = arith.divf %1066, %1067 : vector<8x1xf32>
    %1069 = vector.broadcast %1068 : vector<8x1xf32> to vector<8x32xf32>
    %1070 = arith.subf %1064, %1069 : vector<8x32xf32>
    %1071 = arith.mulf %1070, %1070 : vector<8x32xf32>
    %cst_522 = arith.constant dense<0.000000e+00> : vector<8xf32>
    %1072 = vector.multi_reduction <add>, %1071, %cst_522 [1] : vector<8x32xf32> to vector<8xf32>
    %1073 = vector.shape_cast %1072 : vector<8xf32> to vector<8x1xf32>
    %cst_523 = arith.constant 3.200000e+01 : f32
    %1074 = vector.broadcast %cst_523 : f32 to vector<8x1xf32>
    %1075 = arith.divf %1073, %1074 : vector<8x1xf32>
    %1076 = vector.broadcast %1068 : vector<8x1xf32> to vector<8x32xf32>
    %1077 = arith.subf %1064, %1076 : vector<8x32xf32>
    %cst_524 = arith.constant 9.99999974E-6 : f32
    %1078 = vector.broadcast %cst_524 : f32 to vector<8x1xf32>
    %1079 = arith.addf %1075, %1078 : vector<8x1xf32>
    %1080 = math.rsqrt %1079 : vector<8x1xf32>
    %1081 = vector.broadcast %1080 : vector<8x1xf32> to vector<8x32xf32>
    %1082 = arith.mulf %1077, %1081 : vector<8x32xf32>
    %1083 = vector.broadcast %842 : vector<1x32xf32> to vector<8x32xf32>
    %1084 = arith.mulf %1082, %1083 : vector<8x32xf32>
    %1085 = vector.broadcast %843 : vector<1x32xf32> to vector<8x32xf32>
    %1086 = arith.addf %1084, %1085 : vector<8x32xf32>
    %1087 = arith.truncf %1086 : vector<8x32xf32> to vector<8x32xbf16>
    %cst_525 = arith.constant dense<0.000000e+00> : vector<8x128xf32>
    %1088 = tpu.matmul %1087, %831, %cst_525 {dimension_numbers = #tpu.dot_dimension_numbers<[1], [0], [0], [1], [0, 0, 1, 1], [], []>} : vector<8x32xbf16>, vector<32x128xbf16>, vector<8x128xf32> -> vector<8x128xf32>
    %1089 = vector.broadcast %848 : vector<1x128xf32> to vector<8x128xf32>
    %1090 = arith.addf %1088, %1089 : vector<8x128xf32>
    %cst_526 = arith.constant 0.000000e+00 : f32
    %1091 = vector.broadcast %cst_526 : f32 to vector<8x128xf32>
    %1092 = arith.maximumf %1090, %1091 : vector<8x128xf32>
    %1093 = arith.truncf %1092 : vector<8x128xf32> to vector<8x128xbf16>
    %cst_527 = arith.constant dense<0.000000e+00> : vector<8x32xf32>
    %1094 = tpu.matmul %1093, %833, %cst_527 {dimension_numbers = #tpu.dot_dimension_numbers<[1], [0], [0], [1], [0, 0, 1, 1], [], []>} : vector<8x128xbf16>, vector<128x32xbf16>, vector<8x32xf32> -> vector<8x32xf32>
    %1095 = vector.broadcast %844 : vector<1x32xf32> to vector<8x32xf32>
    %1096 = arith.addf %1094, %1095 : vector<8x32xf32>
    %1097 = arith.addf %1096, %1086 : vector<8x32xf32>
    %1098 = vector.broadcast %1 : vector<8x1xf32> to vector<8x32xf32>
    %1099 = arith.mulf %1097, %1098 : vector<8x32xf32>
    %cst_528 = arith.constant dense<0.000000e+00> : vector<8xf32>
    %1100 = vector.multi_reduction <add>, %1099, %cst_528 [1] : vector<8x32xf32> to vector<8xf32>
    %1101 = vector.shape_cast %1100 : vector<8xf32> to vector<8x1xf32>
    %cst_529 = arith.constant 3.200000e+01 : f32
    %1102 = vector.broadcast %cst_529 : f32 to vector<8x1xf32>
    %1103 = arith.divf %1101, %1102 : vector<8x1xf32>
    %1104 = vector.broadcast %1103 : vector<8x1xf32> to vector<8x32xf32>
    %1105 = arith.subf %1099, %1104 : vector<8x32xf32>
    %1106 = arith.mulf %1105, %1105 : vector<8x32xf32>
    %cst_530 = arith.constant dense<0.000000e+00> : vector<8xf32>
    %1107 = vector.multi_reduction <add>, %1106, %cst_530 [1] : vector<8x32xf32> to vector<8xf32>
    %1108 = vector.shape_cast %1107 : vector<8xf32> to vector<8x1xf32>
    %cst_531 = arith.constant 3.200000e+01 : f32
    %1109 = vector.broadcast %cst_531 : f32 to vector<8x1xf32>
    %1110 = arith.divf %1108, %1109 : vector<8x1xf32>
    %1111 = vector.broadcast %1103 : vector<8x1xf32> to vector<8x32xf32>
    %1112 = arith.subf %1099, %1111 : vector<8x32xf32>
    %cst_532 = arith.constant 9.99999974E-6 : f32
    %1113 = vector.broadcast %cst_532 : f32 to vector<8x1xf32>
    %1114 = arith.addf %1110, %1113 : vector<8x1xf32>
    %1115 = math.rsqrt %1114 : vector<8x1xf32>
    %1116 = vector.broadcast %1115 : vector<8x1xf32> to vector<8x32xf32>
    %1117 = arith.mulf %1112, %1116 : vector<8x32xf32>
    %1118 = vector.broadcast %845 : vector<1x32xf32> to vector<8x32xf32>
    %1119 = arith.mulf %1117, %1118 : vector<8x32xf32>
    %1120 = vector.broadcast %846 : vector<1x32xf32> to vector<8x32xf32>
    %1121 = arith.addf %1119, %1120 : vector<8x32xf32>
    %c0_533 = arith.constant 0 : index
    %c0_534 = arith.constant 0 : index
    %c0_535 = arith.constant 0 : index
    %1122 = vector.load %arg13[%c0_533, %c0_534, %c0_535] : memref<1x8x32xf32, #tpu.memory_space<vmem>>, vector<1x8x32xf32>
    %1123 = vector.shape_cast %1122 : vector<1x8x32xf32> to vector<8x32xf32>
    %1124 = vector.shape_cast %1121 : vector<8x32xf32> to vector<1x8x32xf32>
    tpu.vector_store %arg13[%c0_533, %c0_534, %c0_535], %1124 {strides = array<i32>} : memref<1x8x32xf32, #tpu.memory_space<vmem>>, vector<1x8x32xf32>,
    return
  }
  func.func @transform_0(%arg0: i32) -> (i32, i32, i32) {
    %c0_i32 = arith.constant 0 : i32
    %c0_i32_0 = arith.constant 0 : i32
    %c0_i32_1 = arith.constant 0 : i32
    return %arg0, %c0_i32, %c0_i32_0 : i32, i32, i32
  }
  func.func @transform_1(%arg0: i32) -> (i32, i32, i32) {
    %c0_i32 = arith.constant 0 : i32
    %c0_i32_0 = arith.constant 0 : i32
    %c0_i32_1 = arith.constant 0 : i32
    return %arg0, %c0_i32, %c0_i32_0 : i32, i32, i32
  }
  func.func @transform_2(%arg0: i32) -> (i32, i32, i32) {
    %c0_i32 = arith.constant 0 : i32
    %c0_i32_0 = arith.constant 0 : i32
    %c0_i32_1 = arith.constant 0 : i32
    return %arg0, %c0_i32, %c0_i32_0 : i32, i32, i32
  }
  func.func @transform_3(%arg0: i32) -> (i32, i32, i32) {
    %c0_i32 = arith.constant 0 : i32
    %c0_i32_0 = arith.constant 0 : i32
    %c0_i32_1 = arith.constant 0 : i32
    return %arg0, %c0_i32, %c0_i32_0 : i32, i32, i32
  }
  func.func @transform_4(%arg0: i32) -> (i32, i32, i32, i32) {
    %c0_i32 = arith.constant 0 : i32
    %c0_i32_0 = arith.constant 0 : i32
    %c0_i32_1 = arith.constant 0 : i32
    %c0_i32_2 = arith.constant 0 : i32
    %c0_i32_3 = arith.constant 0 : i32
    return %c0_i32, %c0_i32_0, %c0_i32_1, %c0_i32_2 : i32, i32, i32, i32
  }
  func.func @transform_5(%arg0: i32) -> (i32, i32, i32, i32) {
    %c0_i32 = arith.constant 0 : i32
    %c0_i32_0 = arith.constant 0 : i32
    %c0_i32_1 = arith.constant 0 : i32
    %c0_i32_2 = arith.constant 0 : i32
    %c0_i32_3 = arith.constant 0 : i32
    return %c0_i32, %c0_i32_0, %c0_i32_1, %c0_i32_2 : i32, i32, i32, i32
  }
  func.func @transform_6(%arg0: i32) -> (i32, i32, i32, i32) {
    %c0_i32 = arith.constant 0 : i32
    %c0_i32_0 = arith.constant 0 : i32
    %c0_i32_1 = arith.constant 0 : i32
    %c0_i32_2 = arith.constant 0 : i32
    %c0_i32_3 = arith.constant 0 : i32
    return %c0_i32, %c0_i32_0, %c0_i32_1, %c0_i32_2 : i32, i32, i32, i32
  }
  func.func @transform_7(%arg0: i32) -> (i32, i32, i32, i32) {
    %c0_i32 = arith.constant 0 : i32
    %c0_i32_0 = arith.constant 0 : i32
    %c0_i32_1 = arith.constant 0 : i32
    %c0_i32_2 = arith.constant 0 : i32
    %c0_i32_3 = arith.constant 0 : i32
    return %c0_i32, %c0_i32_0, %c0_i32_1, %c0_i32_2 : i32, i32, i32, i32
  }
  func.func @transform_8(%arg0: i32) -> (i32, i32, i32) {
    %c0_i32 = arith.constant 0 : i32
    %c0_i32_0 = arith.constant 0 : i32
    %c0_i32_1 = arith.constant 0 : i32
    %c0_i32_2 = arith.constant 0 : i32
    return %c0_i32, %c0_i32_0, %c0_i32_1 : i32, i32, i32
  }
  func.func @transform_9(%arg0: i32) -> (i32, i32, i32) {
    %c0_i32 = arith.constant 0 : i32
    %c0_i32_0 = arith.constant 0 : i32
    %c0_i32_1 = arith.constant 0 : i32
    %c0_i32_2 = arith.constant 0 : i32
    return %c0_i32, %c0_i32_0, %c0_i32_1 : i32, i32, i32
  }
  func.func @transform_10(%arg0: i32) -> (i32, i32, i32) {
    %c0_i32 = arith.constant 0 : i32
    %c0_i32_0 = arith.constant 0 : i32
    %c0_i32_1 = arith.constant 0 : i32
    %c0_i32_2 = arith.constant 0 : i32
    return %c0_i32, %c0_i32_0, %c0_i32_1 : i32, i32, i32
  }
  func.func @transform_11(%arg0: i32) -> (i32, i32, i32) {
    %c0_i32 = arith.constant 0 : i32
    %c0_i32_0 = arith.constant 0 : i32
    %c0_i32_1 = arith.constant 0 : i32
    %c0_i32_2 = arith.constant 0 : i32
    return %c0_i32, %c0_i32_0, %c0_i32_1 : i32, i32, i32
  }
  func.func @transform_12(%arg0: i32) -> (i32, i32, i32) {
    %c0_i32 = arith.constant 0 : i32
    %c0_i32_0 = arith.constant 0 : i32
    %c0_i32_1 = arith.constant 0 : i32
    return %arg0, %c0_i32, %c0_i32_0 : i32, i32, i32
  }
}

</mosaic_0001>

<bundles_post_ra>
// kernel: tpu_custom_call.1
= control target key start
LH: loop header
LB: loop body
LE: loop exit
PB: predicated region body
PF: predicated region fallthrough
CT: control target
= control target key end

     0   :  { %s10589_s0 = inlined_call_operand.vmem [shape: bf16[2,8,32], index: 0, kind: input, shape index: {}]   ;;  %s10590_s1 = inlined_call_operand.vmem [shape: bf16[2,8,32], index: 1, kind: input, shape index: {}]   ;;  %s10591_s2 = inlined_call_operand.vmem [shape: f32[2,8,1], index: 2, kind: input, shape index: {}]   ;;  %s10592_s3 = inlined_call_operand.vmem [shape: f32[2,1,8], index: 3, kind: input, shape index: {}]   ;;  %s10593_s4 = inlined_call_operand.vmem [shape: bf16[4,4,32,8], index: 4, kind: input, shape index: {}]   ;;  %s10594_s5 = inlined_call_operand.vmem [shape: bf16[4,4,32,8], index: 5, kind: input, shape index: {}]   ;;  %s10595_s6 = inlined_call_operand.vmem [shape: bf16[4,4,32,8], index: 6, kind: input, shape index: {}]   ;;  %s10596_s7 = inlined_call_operand.vmem [shape: bf16[4,4,8,32], index: 7, kind: input, shape index: {}]   ;;  %s10597_s8 = inlined_call_operand.vmem [shape: bf16[4,32,128], index: 8, kind: input, shape index: {}]   ;;  %s10598_s9 = inlined_call_operand.vmem [shape: bf16[4,128,32], index: 9, kind: input, shape index: {}]   ;;  %s10599_s10 = inlined_call_operand.vmem [shape: f32[4,11,32], index: 10, kind: input, shape index: {}]   ;;  %s10600_s11 = inlined_call_operand.vmem [shape: f32[4,1,128], index: 11, kind: input, shape index: {}]   ;;  %s10601_s12 = inlined_call_operand.hbm [shape: f32[2,8,32], index: 12, kind: output, shape index: {}]  }
   0x1   :  { %10609 = sst [smem:[#allocation5_spill]] %s10589_s0 }
   0x2   :  { %10610 = sst [smem:[#allocation6_spill]] %s10590_s1 }
   0x3   :  { %10611 = sst [smem:[#allocation7_spill]] %s10591_s2 }
   0x4   :  { %17 = vsyncpa [#allocation3], 0 }
   0x5   :  { %19 = vsyncpa [#allocation3 + $0x1], 0  ;;  %s9023_s21 = smov 0   ;;  %s9025_s22 = smov 0  }
   0x6   :  { %s9027_s23 = smov 0   ;;  %s9029_s24 = smov 0  }
   0x7 LB: > { %s9044_s25 = sadd.s32 4294967295, %s8949_s24   ;;  %s7027_s26 = sadd.s32 4294967294, %s8949_s24   ;;  %s8949_s24 = sphi %s9029_s24, %s10624_s24   ;;  %s8945_s23 = sphi %s9027_s23, %s10623_s23   ;;  %s8941_s22 = sphi %s9025_s22, %s10622_s22   ;;  %s8937_s21 = sphi %s9023_s21, %s10621_s21  }
   0x8   : > { %s9048_s27 = sadd.s32 1, %s8949_s24   ;;  %s304_s28 = sadd.s32 1, %s8945_s23 }
   0x9   : > { %s301_s29 = ssub.s32 %s8949_s24, %s9048_s27  ;;  %p314_p0 = scmp.ne.s32.totalorder %s8945_s23, %s8941_s22 }
   0xa   : > { %p302_p1 = scmp.eq.s32.totalorder %s301_s29, 0  ;;  %p315_p2 = scmp.eq.s32.totalorder %s9044_s25, 1 }
   0xb   : > { %p320_p3 = scmp.ne.s32.totalorder %s8941_s22, %s8937_s21  ;;  %p321_p4 = scmp.eq.s32.totalorder %s7027_s26, 1 }
   0xc   : > { %s9059_s30 = scalar_select %p302_p1, %s8945_s23, %s304_s28  }
   0xd   : > { %p9061_p5 = por %p315_p2, %p314_p0  ;;  %p9065_p6 = por %p321_p4, %p320_p3 }
   0xe   : > { %p7030_p7 = scmp.ge.s32.totalorder %s8949_s24, 1  ;;  %p390_p8 = scmp.lt.s32.totalorder %s8949_s24, 3 }
  0x10   : > { %p391_p9 = pnand %p7030_p7, %p390_p8 }
  0x11   : > { %v8663_v0 = vld [vmem:[%s10593_s4] sm:$0xff] (!%p391_p9)   ;;  %v8951_v1 = vmov (!%p391_p9), 0.0   ;;  %v8664_v2 = vld [vmem:[%s10593_s4 + $0x8] sm:$0xff] (!%p391_p9)   ;;  %vm8952_vm0 = vmmov (!%p391_p9), 0   ;;  %p442_p10 = scmp.lt.s32.totalorder (!%p391_p9), %s9044_s25, 1  ;;  %vm506_vm1 = vcmask (!%p391_p9), 261120   ;;  %v490_v8 = vlaneseq (!%p391_p9) }
  0x12   : > { %394 = sbr.rel (%p391_p9) target bundleno = 20572 (0x505c), region = 68  ;;  %7832 = vmatprep.subr.bf16.mxu1 (!%p391_p9), %v8951_v1  ;;  %7862 = vmatprep.subr.bf16.mxu0 (!%p391_p9), %v8951_v1  ;;  %v8665_v3 = vld [vmem:[%s10594_s5] sm:$0xff] (!%p391_p9)   ;;  %s10614_s0 = sld [smem:[#allocation5_spill]] (!%p391_p9)  ;;  %v8666_v5 = vld [vmem:[%s10594_s5 + $0x8] sm:$0xff] (!%p391_p9)   ;;  %vm679_vm2 = vcmask (!%p391_p9), 64512   ;;  %vm748_vm3 = vcmask (!%p391_p9), 1043456  }
  0x13   : > { %7833 = vmatpush3.bf16.msra.mxu1 (!%p391_p9), %v8663_v0  ;;  %7836 = vmatprep.mubr.msk.bf16.mxu1 (!%p391_p9), %vm8952_vm0, %v8951_v1  ;;  %v8667_v6 = vld [vmem:[%s10595_s6] sm:$0xff] (!%p391_p9)   ;;  %v8668_v7 = vld [vmem:[%s10595_s6 + $0x8] sm:$0xff] (!%p391_p9)   ;;  %v9128_v9 = vshrl.u32 (!%p391_p9), %v490_v8, 7  ;;  %v8953_v45 = vmov (!%p391_p9), 0   ;;  %s10615_s2 = sld [smem:[#allocation7_spill]] (!%p391_p9)  ;;  %v8670_v52 = vld [vmem:[%s10593_s4 + $0x10] sm:$0xff] (!%p391_p9)  }
  0x14   : > { %7834 = vmatprep.subr.bf16.mxu1 (!%p391_p9), %v8951_v1  ;;  %7864 = vmatprep.mubr.msk.bf16.mxu0 (!%p391_p9), %vm8952_vm0, %v8951_v1  ;;  %v9139_v16 = vld [vmem:[%s10599_s10] sm:$0xff] (!%p391_p9)  ;;  %v8672_v53 = vld [vmem:[%s10593_s4 + $0x18] sm:$0xff] (!%p391_p9)   ;;  %s10607_s18 = smov (!%p391_p9), 120   ;;  %v8669_v59 = vld [vmem:[%s10594_s5 + $0x10] sm:$0xff] (!%p391_p9)   ;;  %s10617_s17 = smov (!%p391_p9), 112  }
  0x15   : > { %v9131_v12 = vsub.s32 (!%p391_p9), 1, %v9128_v9  ;;  %v9134_v14 = vsub.s32 (!%p391_p9), 0, %v9128_v9  ;;  %v9157_v29 = vsub.s32 (!%p391_p9), 2, %v9128_v9  ;;  %8661 = vset.pattern.permute.xlu1 (!%p391_p9), %v8953_v45  ;;  %8662 = vset.pattern.permute.xlu0 (!%p391_p9), %v8953_v45  ;;  %v8671_v61 = vld [vmem:[%s10594_s5 + $0x18] sm:$0xff] (!%p391_p9)   ;;  %s10620_s1 = sld [smem:[#allocation6_spill]] (!%p391_p9)  ;;  %s7541_s28 = sshll.u32 (!%p391_p9), %s9044_s25, 7 }
  0x17   : > { %7835 = vmatpush3.bf16.msra.mxu1 (!%p391_p9), %v8664_v2  ;;  %v9143_v17 = vrot.slane (!%p391_p9), %v9139_v16, %v9131_v12  ;;  %v9147_v18 = vrot.slane (!%p391_p9), %v9139_v16, %v9134_v14  ;;  %v9161_v30 = vrot.slane (!%p391_p9), %v9139_v16, %v9157_v29 }
  0x18   : > { %7840 = vmatprep.subr.bf16.mxu1 (!%p391_p9), %v8951_v1 }
  0x19   : > { %s9086_s19 = scalar_select %p442_p10, %s9044_s25, 1 }
  0x1a   : > { %s8957_s25 = smov [#allocation2]  }
  0x1b   : > { %s10602_s20 = sshll.u32 %s9086_s19, 2  ;;  %s9170_s29 = scalar_lea.vmem %s10592_s3, %s9086_s19 }
  0x1c   : > { %s9097_s16 = scalar_lea.vmem %s10614_s0, %s10602_s20  ;;  %v9173_v38 = vld [vmem:[%s9170_s29] ss:$0 sm:$0xff]  ;;  %s7034_s15 = sshll.u32 %s9086_s19, 3 }
  0x1d   : > { %v9101_v4 = vld [vmem:[%s9097_s16] sm:$0xf]  ;;  %s453_s26 = scalar_lea.vmem %s10615_s2, %s7034_s15  ;;  %s10618_s20 = smov 104  }
  0x1e   : > { %7837 = vmatmul.mubr.msk.bf16.vlgmr.msra.gmra.mrb[0].mxu1 %vm506_vm1, %v9101_v4  ;;  %v458_v46 = vld [vmem:[%s453_s26] sm:$0xff]  ;;  %s10603_s26 = smov 112   ;;  %s10619_s2 = sshll.u32 %s9086_s19, 2 }
  0x1f   : > { %7841 = vmatpush3.bf16.msra.mxu1 %v8665_v3  ;;  %7844 = vmatprep.mubr.msk.bf16.mxu1 %vm8952_vm0, %v8951_v1 }
  0x20   : > { %7842 = vmatprep.subr.bf16.mxu1 %v8951_v1  ;;  %739 = vperm.xlu1 %8661, %v458_v46  }
  0x23   : > { %7843 = vmatpush3.bf16.msra.mxu1 %v8666_v5 }
  0x24   : > { %7848 = vmatprep.subr.bf16.mxu1 %v8951_v1  ;;  %874 = vrot.lane.b32.xlu1 %v9143_v17, %s10607_s18 }
  0x26   : > { %7845 = vmatmul.mubr.msk.bf16.vlgmr.msra.gmra.mrb[4].mxu1 %vm506_vm1, %v9101_v4 }
  0x27   : > { %7852 = vmatprep.mubr.msk.bf16.mxu1 %vm8952_vm0, %v8951_v1  ;;  %7849 = vmatpush3.bf16.msra.mxu1 %v8667_v6 }
  0x28   : > { %7850 = vmatprep.subr.bf16.mxu1 %v8951_v1 }
  0x2b   : > { %7851 = vmatpush3.bf16.msra.mxu1 %v8668_v7 }
  0x2c   : > { %7856 = vmatprep.subr.bf16.mxu1 %v8951_v1 }
  0x2e   : > { %7853 = vmatmul.mubr.msk.bf16.vlgmr.msra.gmra.mrb[8].mxu1 %vm506_vm1, %v9101_v4 }
  0x2f   : > { %7858 = vmatprep.mubr.msk.bf16.mxu1 %vm8952_vm0, %v8951_v1 }
  0x9f   : > { %v9198_v56 = vpop.permute.xlu1 %739 }
  0xa3   : > { %v875_v8 = vpop.permute.xlu1 %874 }
  0xf1   : > { %v544_v10 = vpop.f32.mrb[0].mxu1 }
  0xf2   : > { %v7838_v11 = vpop.f32.mrb[1].mxu1  ;;  %v545_v23 = vadd.f32 %v544_v10, %v9147_v18 }
  0xf3   : > { %v547_v13 = vpop.f32.mrb[2].mxu1 }
  0xf4   : > { %v7839_v15 = vpop.f32.mrb[3].mxu1  ;;  %v550_v27 = vmul.f32 0.35355338, %v545_v23 }
  0xf6   : > { %v671_v28 = vpack.c.bf16 %v550_v27, %v550_v27  ;;  %v8674_v27 = vld [vmem:[%s10595_s6 + $0x18] sm:$0xff]  }
  0xf9   : > { %v605_v19 = vpop.f32.mrb[4].mxu1 }
  0xfa   : > { %v606_v20 = vadd.f32 %v605_v19, %v9143_v17  ;;  %v7846_v21 = vpop.f32.mrb[5].mxu1 }
  0xfb   : > { %v608_v22 = vpop.f32.mrb[6].mxu1 }
  0xfc   : > { %v672_v24 = vpack.c.bf16 %v606_v20, %v606_v20  ;;  %v7847_v25 = vpop.f32.mrb[7].mxu1 }
  0xfe   : > { %v684_v26 = vsel %vm679_vm2, %v672_v24, 0 }
  0xff   : > { %7857 = vmatpush3.bf16.xpose.msra.mxu1 %v684_v26  ;;  %v8673_v26 = vld [vmem:[%s10595_s6 + $0x10] sm:$0xff]  }
 0x100   : > { %7868 = vmatprep.subr.bf16.mxu1 %v8951_v1 }
 0x101   : > { %v665_v31 = vpop.f32.mrb[8].mxu1 }
 0x102   : > { %v666_v32 = vadd.f32 %v665_v31, %v9161_v30  ;;  %v7854_v33 = vpop.f32.mrb[9].mxu1 }
 0x103   : > { %v668_v34 = vpop.f32.mrb[10].mxu1 }
 0x104   : > { %v744_v35 = vpack.c.bf16 %v666_v32, %v666_v32  ;;  %v7855_v36 = vpop.f32.mrb[11].mxu1 }
 0x106   : > { %7859 = vmatmul.mubr.msk.bf16.vlgmr.msra.gmra.mrb[12].mxu1 %vm679_vm2, %v671_v28  ;;  %v750_v37 = vsel %vm748_vm3, %v744_v35, 0 }
 0x107   : > { %7872 = vmatprep.mubr.msk.bf16.mxu1 %vm8952_vm0, %v8951_v1  ;;  %7863 = vmatpush3.bf16.msra.mxu0 %v750_v37 }
 0x108   : > { %7876 = vmatprep.subr.bf16.mxu0 %v8951_v1  ;;  %7869 = vmatpush3.bf16.msra.mxu1 %v8670_v52 }
 0x109   : > { %7870 = vmatprep.subr.bf16.mxu1 %v8951_v1 }
 0x10c   : > { %7871 = vmatpush3.bf16.msra.mxu1 %v8672_v53 }
 0x10d   : > { %7884 = vmatprep.subr.bf16.mxu1 %v8951_v1 }
 0x10f   : > { %7873 = vmatmul.mubr.msk.bf16.vlgmr.msra.gmra.mrb[16].mxu1 %vm506_vm1, %v9101_v4 }
 0x110   : > { %7888 = vmatprep.mubr.msk.bf16.mxu1 %vm8952_vm0, %v8951_v1  ;;  %7885 = vmatpush3.bf16.msra.mxu1 %v8673_v26 }
 0x111   : > { %7886 = vmatprep.subr.bf16.mxu1 %v8951_v1 }
 0x114   : > { %7887 = vmatpush3.bf16.msra.mxu1 %v8674_v27 }
 0x115   : > { %7898 = vmatprep.subr.bf16.mxu1 %v8951_v1 }
 0x117   : > { %7889 = vmatmul.mubr.msk.bf16.vlgmr.msra.gmra.mrb[20].mxu1 %vm506_vm1, %v9101_v4 }
 0x118   : > { %7900 = vmatprep.mubr.msk.bf16.mxu1 %vm8952_vm0, %v8951_v1 }
 0x1d9   : > { %v720_v39 = vpop.f32.mrb[12].mxu1 }
 0x1da   : > { %v721_v40 = vadd.f32 %v9173_v38, %v720_v39  ;;  %v7860_v41 = vpop.f32.mrb[13].mxu1 }
 0x1db   : > { %v723_v42 = vpop.f32.mrb[14].mxu1 }
 0x1dc   : > { %v7861_v43 = vpop.f32.mrb[15].mxu1  ;;  %v726_v44 = vsel %vm679_vm2, %v721_v40, -inf }
 0x1dd   : > { %727 = vmax.xlane.f32.xlu0 %v726_v44 }
 0x1e2   : > { %v849_v62 = vpop.f32.mrb[16].mxu1 }
 0x1e3   : > { %v7874_v63 = vpop.f32.mrb[17].mxu1 }
 0x1e4   : > { %v852_v0 = vpop.f32.mrb[18].mxu1 }
 0x1e5   : > { %v7875_v2 = vpop.f32.mrb[19].mxu1  ;;  %v8677_v0 = vld [vmem:[%s10593_s4 + $0x20] sm:$0xff]  }
 0x1ea   : > { %v972_v42 = vpop.f32.mrb[20].mxu1 }
 0x1eb   : > { %v7890_v43 = vpop.f32.mrb[21].mxu1 }
 0x1ec   : > { %v975_v44 = vpop.f32.mrb[22].mxu1  ;;  %v8680_v43 = vld [vmem:[%s10595_s6 + $0x28] sm:$0xff]  }
 0x1ed   : > { %v7891_v46 = vpop.f32.mrb[23].mxu1 }
 0x26a   : > { %v728_v47 = vpop.xlane.xlu0 %727 }
 0x26b   : > { %v729_v48 = vsub.f32 %v721_v40, %v728_v47 }
 0x26d   : > { %v730_v49 = vmul.f32 1.442695, %v729_v48 }
 0x26f   : > { %8799 = vpow2.f32 %v730_v49 }
 0x279   : > { %v8800_v50 = vpop.eup %8799 }
 0x27a   : > { %v732_v51 = vsel %vm679_vm2, %v8800_v50, 0.0 }
 0x27b   : > { %733 = vadd.xlane.f32.xlu0 %v732_v51 }
 0x291   : > { %812 = vrot.lane.b32.xlu0 %v9147_v18, %s10607_s18 }
 0x308   : > { %v734_v54 = vpop.xlane.xlu0 %733 }
 0x309   : > { %8801 = vrcp.f32 %v734_v54 }
 0x30c   : > { %v813_v10 = vpop.permute.xlu0 %812 }
 0x30d   : > { %v850_v19 = vadd.f32 %v849_v62, %v813_v10  ;;  %v8676_v62 = vld [vmem:[%s10594_s5 + $0x28] sm:$0xff]  }
 0x30f   : > { %v855_v24 = vmul.f32 0.35355338, %v850_v19 }
 0x311   : > { %v978_v25 = vpack.c.bf16 %v855_v24, %v855_v24 }
 0x313   : > { %v8802_v55 = vpop.eup %8801 }
 0x314   : > { %v736_v57 = vmul.f32 %v8802_v55, %v8800_v50  ;;  %v7070_v50 = vld [vmem:[%s10596_s7 + $0x4] sm:$0xf]  ;;  %v793_v55 = vld [vmem:[%s10596_s7] sm:$0xf] }
 0x315   : > { %v1093_v51 = vsel %vm748_vm3, %v7070_v50, 0 }
 0x316   : > { %v742_v58 = vmul.f32 %v9198_v56, %v736_v57 }
 0x318   : > { %v743_v60 = vpack.c.bf16 %v742_v58, %v742_v58 }
 0x31a   : > { %7865 = vmatmul.mubr.msk.bf16.vlgmr.msra.gmra.mrb[0].mxu0 %vm679_vm2, %v743_v60  ;;  %v8675_v60 = vld [vmem:[%s10594_s5 + $0x20] sm:$0xff]  }
 0x31b   : > { %7877 = vmatpush3.bf16.msra.mxu0 %v8669_v59  ;;  %7880 = vmatprep.mubr.msk.bf16.mxu0 %vm8952_vm0, %v8951_v1  ;;  %v1139_v59 = vsel %vm748_vm3, %v793_v55, 0 }
 0x31c   : > { %7878 = vmatprep.subr.bf16.mxu0 %v8951_v1 }
 0x31f   : > { %7879 = vmatpush3.bf16.msra.mxu0 %v8671_v61 }
 0x320   : > { %7892 = vmatprep.subr.bf16.mxu0 %v8951_v1 }
 0x322   : > { %7881 = vmatmul.mubr.msk.bf16.vlgmr.msra.gmra.mrb[4].mxu0 %vm506_vm1, %v9101_v4 }
 0x323   : > { %7894 = vmatprep.mubr.msk.bf16.mxu0 %vm8952_vm0, %v8951_v1 }
 0x3ed   : > { %v9216_v3 = vpop.f32.mrb[0].mxu0 }
 0x3ee   : > { %v7866_v5 = vpop.f32.mrb[1].mxu0  ;;  %v792_v61 = vpack.c.bf16 %v9216_v3, %v9216_v3 }
 0x3ef   : > { %v789_v6 = vpop.f32.mrb[2].mxu0 }
 0x3f0   : > { %v7867_v7 = vpop.f32.mrb[3].mxu0 }
 0x3f1   : > { %v8678_v7 = vld [vmem:[%s10593_s4 + $0x28] sm:$0xff]  }
 0x3f5   : > { %v911_v11 = vpop.f32.mrb[4].mxu0 }
 0x3f6   : > { %v912_v13 = vadd.f32 %v911_v11, %v875_v8  ;;  %v7882_v15 = vpop.f32.mrb[5].mxu0 }
 0x3f7   : > { %v914_v20 = vpop.f32.mrb[6].mxu0 }
 0x3f8   : > { %v979_v21 = vpack.c.bf16 %v912_v13, %v912_v13  ;;  %v7883_v22 = vpop.f32.mrb[7].mxu0 }
 0x3fa   : > { %v984_v23 = vsel %vm679_vm2, %v979_v21, 0 }
 0x3fb   : > { %7893 = vmatpush3.bf16.xpose.msra.mxu0 %v984_v23 }
 0x3fc   : > { %7904 = vmatprep.subr.bf16.mxu0 %v8951_v1 }
 0x402   : > { %7895 = vmatmul.mubr.msk.bf16.vlgmr.msra.gmra.mrb[8].mxu0 %vm679_vm2, %v978_v25 }
 0x403   : > { %7906 = vmatprep.mubr.msk.bf16.mxu0 %vm8952_vm0, %v8951_v1  ;;  %7905 = vmatpush3.bf16.msra.mxu0 %v1093_v51 }
 0x404   : > { %7916 = vmatprep.subr.bf16.mxu0 %v8951_v1 }
 0x4d5   : > { %v1020_v28 = vpop.f32.mrb[8].mxu0 }
 0x4d6   : > { %v1021_v31 = vadd.f32 %v9173_v38, %v1020_v28  ;;  %v7896_v32 = vpop.f32.mrb[9].mxu0 }
 0x4d7   : > { %v1023_v33 = vpop.f32.mrb[10].mxu0 }
 0x4d8   : > { %v7897_v34 = vpop.f32.mrb[11].mxu0  ;;  %v1026_v35 = vsel %vm679_vm2, %v1021_v31, -inf }
 0x4d9   : > { %1027 = vmax.xlane.f32.xlu1 %v1026_v35 }
 0x4ea   : > { %935 = vrot.lane.b32.xlu1 %v9161_v30, %s10607_s18  ;;  %s10616_s18 = smov 120  }
 0x4ee   : > { %1198 = vrot.lane.b32.xlu1 %v9147_v18, %s10603_s26 }
 0x566   : > { %v1028_v36 = vpop.xlane.xlu1 %1027 }
 0x567   : > { %v1029_v37 = vsub.f32 %v1021_v31, %v1028_v36 }
 0x569   : > { %v1030_v39 = vmul.f32 1.442695, %v1029_v37 }
 0x56a   : > { %v936_v45 = vpop.permute.xlu1 %935 }
 0x56b   : > { %8803 = vpow2.f32 %v1030_v39  ;;  %v973_v47 = vadd.f32 %v972_v42, %v936_v45  ;;  %v8679_v42 = vld [vmem:[%s10595_s6 + $0x20] sm:$0xff]  }
 0x56d   : > { %v1039_v48 = vpack.c.bf16 %v973_v47, %v973_v47 }
 0x56e   : > { %v1199_v33 = vpop.permute.xlu1 %1198 }
 0x56f   : > { %v1044_v49 = vsel %vm748_vm3, %v1039_v48, 0 }
 0x570   : > { %7899 = vmatpush3.bf16.msra.mxu1 %v1044_v49 }
 0x571   : > { %7910 = vmatprep.subr.bf16.mxu1 %v8951_v1 }
 0x575   : > { %v8804_v40 = vpop.eup %8803 }
 0x576   : > { %v1032_v41 = vsel %vm679_vm2, %v8804_v40, 0.0 }
 0x577   : > { %1033 = vadd.xlane.f32.xlu0 %v1032_v41 }
 0x58d   : > { %1259 = vrot.lane.b32.xlu0 %v9143_v17, %s10603_s26 }
 0x604   : > { %v1034_v52 = vpop.xlane.xlu0 %1033 }
 0x605   : > { %8805 = vrcp.f32 %v1034_v52 }
 0x608   : > { %v1260_v22 = vpop.permute.xlu0 %1259 }
 0x60f   : > { %v8806_v53 = vpop.eup %8805 }
 0x610   : > { %v1036_v54 = vmul.f32 %v8806_v53, %v8804_v40 }
 0x612   : > { %v1037_v57 = vmul.f32 %v1036_v54, %v9198_v56 }
 0x614   : > { %v1038_v58 = vpack.c.bf16 %v1037_v57, %v1037_v57 }
 0x616   : > { %7901 = vmatmul.mubr.msk.bf16.vlgmr.msra.gmra.mrb[24].mxu1 %vm679_vm2, %v1038_v58 }
 0x617   : > { %7911 = vmatpush3.bf16.msra.mxu1 %v1139_v59  ;;  %7912 = vmatprep.mubr.msk.bf16.mxu1 %vm8952_vm0, %v8951_v1 }
 0x618   : > { %7924 = vmatprep.subr.bf16.mxu1 %v8951_v1 }
 0x61e   : > { %7913 = vmatmul.mubr.msk.bf16.vlgmr.msra.gmra.mrb[28].mxu1 %vm679_vm2, %v792_v61 }
 0x61f   : > { %7925 = vmatpush3.bf16.msra.mxu1 %v8675_v60  ;;  %7928 = vmatprep.mubr.msk.bf16.mxu1 %vm8952_vm0, %v8951_v1 }
 0x620   : > { %7926 = vmatprep.subr.bf16.mxu1 %v8951_v1 }
 0x623   : > { %7927 = vmatpush3.bf16.msra.mxu1 %v8676_v62 }
 0x624   : > { %7940 = vmatprep.subr.bf16.mxu1 %v8951_v1 }
 0x626   : > { %7929 = vmatmul.mubr.msk.bf16.vlgmr.msra.gmra.mrb[32].mxu1 %vm506_vm1, %v9101_v4 }
 0x627   : > { %7942 = vmatprep.mubr.msk.bf16.mxu1 %vm8952_vm0, %v8951_v1 }
 0x6e9   : > { %v1080_v63 = vpop.f32.mrb[24].mxu1 }
 0x6ea   : > { %v1086_v2 = vpack.c.bf16 %v1080_v63, %v1080_v63  ;;  %v7902_v3 = vpop.f32.mrb[25].mxu1  ;;  %v7096_v63 = vld [vmem:[%s10596_s7 + $0x8] sm:$0xf] }
 0x6eb   : > { %v1083_v5 = vpop.f32.mrb[26].mxu1 }
 0x6ec   : > { %v7903_v6 = vpop.f32.mrb[27].mxu1  ;;  %7907 = vmatmul.mubr.msk.bf16.vlgmr.msra.gmra.mrb[12].mxu0 %vm679_vm2, %v1086_v2 }
 0x6ed   : > { %7917 = vmatpush3.bf16.msra.mxu0 %v8677_v0  ;;  %7920 = vmatprep.mubr.msk.bf16.mxu0 %vm8952_vm0, %v8951_v1  ;;  %v1477_v0 = vsel %vm748_vm3, %v7096_v63, 0 }
 0x6ee   : > { %7918 = vmatprep.subr.bf16.mxu0 %v8951_v1 }
 0x6f1   : > { %v1175_v8 = vpop.f32.mrb[28].mxu1  ;;  %7919 = vmatpush3.bf16.msra.mxu0 %v8678_v7 }
 0x6f2   : > { %v7914_v10 = vpop.f32.mrb[29].mxu1  ;;  %7932 = vmatprep.subr.bf16.mxu0 %v8951_v1 }
 0x6f3   : > { %v1178_v11 = vpop.f32.mrb[30].mxu1  ;;  %v8684_v10 = vld [vmem:[%s10593_s4 + $0x38] sm:$0xff]  }
 0x6f4   : > { %v7915_v13 = vpop.f32.mrb[31].mxu1  ;;  %7921 = vmatmul.mubr.msk.bf16.vlgmr.msra.gmra.mrb[16].mxu0 %vm506_vm1, %v9101_v4  ;;  %v8883_v11 = vld [vmem:[%s9097_s16] sm:$0xf]  ;;  %s10546_s16 = scalar_lea.hbm %s10601_s12, %s7541_s28 }
 0x6f5   : > { %7936 = vmatprep.mubr.msk.bf16.mxu0 %vm8952_vm0, %v8951_v1  ;;  %7933 = vmatpush3.bf16.msra.mxu0 %v8679_v42 }
 0x6f6   : > { %7934 = vmatprep.subr.bf16.mxu0 %v8951_v1 }
 0x6f9   : > { %v1296_v15 = vpop.f32.mrb[32].mxu1  ;;  %7935 = vmatpush3.bf16.msra.mxu0 %v8680_v43 }
 0x6fa   : > { %v7930_v19 = vpop.f32.mrb[33].mxu1  ;;  %v1297_v23 = vadd.f32 %v1296_v15, %v1260_v22  ;;  %7946 = vmatprep.subr.bf16.mxu0 %v8951_v1  ;;  %v8681_v15 = vld [vmem:[%s10594_s5 + $0x30] sm:$0xff]  }
 0x6fb   : > { %v1299_v20 = vpop.f32.mrb[34].mxu1 }
 0x6fc   : > { %v7931_v21 = vpop.f32.mrb[35].mxu1  ;;  %v1363_v24 = vpack.c.bf16 %v1297_v23, %v1297_v23  ;;  %7937 = vmatmul.mubr.msk.bf16.vlgmr.msra.gmra.mrb[20].mxu0 %vm506_vm1, %v9101_v4 }
 0x6fd   : > { %7948 = vmatprep.mubr.msk.bf16.mxu0 %vm8952_vm0, %v8951_v1 }
 0x6fe   : > { %v1368_v25 = vsel %vm679_vm2, %v1363_v24, 0 }
 0x6ff   : > { %7941 = vmatpush3.bf16.xpose.msra.mxu1 %v1368_v25 }
 0x700   : > { %7952 = vmatprep.subr.bf16.mxu1 %v8951_v1 }
 0x7bf   : > { %v1129_v26 = vpop.f32.mrb[12].mxu0 }
 0x7c0   : > { %v9294_v27 = vadd.f32 %v1175_v8, %v1129_v26  ;;  %v7908_v28 = vpop.f32.mrb[13].mxu0  ;;  %v8682_v8 = vld [vmem:[%s10593_s4 + $0x30] sm:$0xff]  }
 0x7c1   : > { %v1132_v31 = vpop.f32.mrb[14].mxu0 }
 0x7c2   : > { %v7909_v32 = vpop.f32.mrb[15].mxu0 }
 0x7c7   : > { %v1235_v34 = vpop.f32.mrb[16].mxu0 }
 0x7c8   : > { %v1236_v35 = vadd.f32 %v1235_v34, %v1199_v33  ;;  %v7922_v36 = vpop.f32.mrb[17].mxu0 }
 0x7c9   : > { %v1238_v37 = vpop.f32.mrb[18].mxu0 }
 0x7ca   : > { %v1241_v39 = vmul.f32 0.35355338, %v1236_v35  ;;  %v7923_v40 = vpop.f32.mrb[19].mxu0 }
 0x7cc   : > { %v1362_v41 = vpack.c.bf16 %v1241_v39, %v1241_v39 }
 0x7ce   : > { %7943 = vmatmul.mubr.msk.bf16.vlgmr.msra.gmra.mrb[36].mxu1 %vm679_vm2, %v1362_v41 }
 0x7cf   : > { %7954 = vmatprep.mubr.msk.bf16.mxu1 %vm8952_vm0, %v8951_v1  ;;  %v1356_v54 = vpop.f32.mrb[20].mxu0  ;;  %7953 = vmatpush3.bf16.msra.mxu1 %v1477_v0 }
 0x7d0   : > { %v7938_v55 = vpop.f32.mrb[21].mxu0  ;;  %7966 = vmatprep.subr.bf16.mxu1 %v8951_v1 }
 0x7d1   : > { %v1359_v57 = vpop.f32.mrb[22].mxu0 }
 0x7d2   : > { %v7939_v58 = vpop.f32.mrb[23].mxu0 }
 0x8a1   : > { %v1404_v44 = vpop.f32.mrb[36].mxu1 }
 0x8a2   : > { %v1405_v45 = vadd.f32 %v9173_v38, %v1404_v44  ;;  %v7944_v46 = vpop.f32.mrb[37].mxu1 }
 0x8a3   : > { %v1407_v47 = vpop.f32.mrb[38].mxu1  ;;  %v8685_v46 = vld [vmem:[%s10595_s6 + $0x30] sm:$0xff]  }
 0x8a4   : > { %v7945_v48 = vpop.f32.mrb[39].mxu1  ;;  %v1410_v49 = vsel %vm679_vm2, %v1405_v45, -inf  ;;  %v8686_v47 = vld [vmem:[%s10595_s6 + $0x38] sm:$0xff]  }
 0x8a5   : > { %1411 = vmax.xlane.f32.xlu1 %v1410_v49 }
 0x8b6   : > { %1319 = vrot.lane.b32.xlu1 %v9161_v30, %s10603_s26  ;;  %s10605_s26 = smov 104  }
 0x8ba   : > { %1537 = vrot.lane.b32.xlu1 %v9147_v18, %s10605_s26 }
 0x932   : > { %v1412_v50 = vpop.xlane.xlu1 %1411 }
 0x933   : > { %v1413_v51 = vsub.f32 %v1405_v45, %v1412_v50 }
 0x935   : > { %v1414_v52 = vmul.f32 1.442695, %v1413_v51 }
 0x936   : > { %v1320_v59 = vpop.permute.xlu1 %1319 }
 0x937   : > { %8807 = vpow2.f32 %v1414_v52  ;;  %v1357_v60 = vadd.f32 %v1356_v54, %v1320_v59 }
 0x939   : > { %v1423_v61 = vpack.c.bf16 %v1357_v60, %v1357_v60 }
 0x93a   : > { %v1538_v35 = vpop.permute.xlu1 %1537 }
 0x93b   : > { %v1428_v62 = vsel %vm748_vm3, %v1423_v61, 0 }
 0x93c   : > { %7947 = vmatpush3.bf16.msra.mxu0 %v1428_v62 }
 0x93d   : > { %7958 = vmatprep.subr.bf16.mxu0 %v8951_v1 }
 0x941   : > { %v8808_v4 = vpop.eup %8807 }
 0x942   : > { %v1416_v53 = vsel %vm679_vm2, %v8808_v4, 0.0 }
 0x943   : > { %1417 = vadd.xlane.f32.xlu0 %v1416_v53 }
 0x959   : > { %1598 = vrot.lane.b32.xlu0 %v9143_v17, %s10605_s26  ;;  %v8683_v17 = vld [vmem:[%s10594_s5 + $0x38] sm:$0xff]  }
 0x9d0   : > { %v1418_v2 = vpop.xlane.xlu0 %1417 }
 0x9d1   : > { %8809 = vrcp.f32 %v1418_v2 }
 0x9d4   : > { %v1599_v34 = vpop.permute.xlu0 %1598 }
 0x9db   : > { %v8810_v3 = vpop.eup %8809 }
 0x9dc   : > { %v1420_v5 = vmul.f32 %v8810_v3, %v8808_v4 }
 0x9de   : > { %v1421_v6 = vmul.f32 %v1420_v5, %v9198_v56 }
 0x9e0   : > { %v1422_v7 = vpack.c.bf16 %v1421_v6, %v1421_v6 }
 0x9e2   : > { %7949 = vmatmul.mubr.msk.bf16.vlgmr.msra.gmra.mrb[24].mxu0 %vm679_vm2, %v1422_v7 }
 0x9e3   : > { %7962 = vmatprep.mubr.msk.bf16.mxu0 %vm8952_vm0, %v8951_v1  ;;  %7959 = vmatpush3.bf16.msra.mxu0 %v8682_v8 }
 0x9e4   : > { %7960 = vmatprep.subr.bf16.mxu0 %v8951_v1 }
 0x9e7   : > { %7961 = vmatpush3.bf16.msra.mxu0 %v8684_v10 }
 0x9e8   : > { %7974 = vmatprep.subr.bf16.mxu0 %v8951_v1 }
 0x9ea   : > { %7963 = vmatmul.mubr.msk.bf16.vlgmr.msra.gmra.mrb[28].mxu0 %vm506_vm1, %v8883_v11 }
 0x9eb   : > { %7978 = vmatprep.mubr.msk.bf16.mxu0 %vm8952_vm0, %v8951_v1  ;;  %7975 = vmatpush3.bf16.msra.mxu0 %v8685_v46 }
 0x9ec   : > { %7976 = vmatprep.subr.bf16.mxu0 %v8951_v1 }
 0x9ef   : > { %7977 = vmatpush3.bf16.msra.mxu0 %v8686_v47 }
 0x9f0   : > { %7988 = vmatprep.subr.bf16.mxu0 %v8951_v1 }
 0x9f2   : > { %7979 = vmatmul.mubr.msk.bf16.vlgmr.msra.gmra.mrb[32].mxu0 %vm506_vm1, %v8883_v11 }
 0x9f3   : > { %7990 = vmatprep.mubr.msk.bf16.mxu0 %vm8952_vm0, %v8951_v1 }
 0xab5   : > { %v1464_v13 = vpop.f32.mrb[24].mxu0 }
 0xab6   : > { %v1470_v19 = vpack.c.bf16 %v1464_v13, %v1464_v13  ;;  %v7950_v20 = vpop.f32.mrb[25].mxu0 }
 0xab7   : > { %v1467_v21 = vpop.f32.mrb[26].mxu0 }
 0xab8   : > { %v7951_v22 = vpop.f32.mrb[27].mxu0  ;;  %7955 = vmatmul.mubr.msk.bf16.vlgmr.msra.gmra.mrb[40].mxu1 %vm679_vm2, %v1470_v19 }
 0xab9   : > { %7967 = vmatpush3.bf16.msra.mxu1 %v8681_v15  ;;  %7970 = vmatprep.mubr.msk.bf16.mxu1 %vm8952_vm0, %v8951_v1  ;;  %v9396_v22 = vsub.s32 3, %v9128_v9 }
 0xaba   : > { %7968 = vmatprep.subr.bf16.mxu1 %v8951_v1 }
 0xabd   : > { %7969 = vmatpush3.bf16.msra.mxu1 %v8683_v17  ;;  %v1574_v18 = vpop.f32.mrb[28].mxu0  ;;  %v1862_v17 = vrot.slane %v9139_v16, %v9396_v22 }
 0xabe   : > { %7982 = vmatprep.subr.bf16.mxu1 %v8951_v1  ;;  %v7964_v23 = vpop.f32.mrb[29].mxu0  ;;  %v1575_v40 = vadd.f32 %v1574_v18, %v1538_v35 }
 0xabf   : > { %v1577_v24 = vpop.f32.mrb[30].mxu0 }
 0xac0   : > { %7971 = vmatmul.mubr.msk.bf16.vlgmr.msra.gmra.mrb[44].mxu1 %vm506_vm1, %v8883_v11  ;;  %v7965_v25 = vpop.f32.mrb[31].mxu0  ;;  %v1580_v45 = vmul.f32 0.35355338, %v1575_v40  ;;  %v8689_v40 = vld [vmem:[%s10598_s9] sm:$0xff]  }
 0xac1   : > { %7984 = vmatprep.mubr.msk.bf16.mxu1 %vm8952_vm0, %v8951_v1 }
 0xac5   : > { %v1695_v59 = vpop.f32.mrb[32].mxu0 }
 0xac6   : > { %v7980_v60 = vpop.f32.mrb[33].mxu0 }
 0xac7   : > { %v1698_v61 = vpop.f32.mrb[34].mxu0 }
 0xac8   : > { %v7981_v62 = vpop.f32.mrb[35].mxu0 }
 0xb8b   : > { %v1513_v26 = vpop.f32.mrb[40].mxu1 }
 0xb8c   : > { %v9358_v28 = vadd.f32 %v1513_v26, %v9294_v27  ;;  %v7956_v31 = vpop.f32.mrb[41].mxu1  ;;  %v1701_v27 = vpack.c.bf16 %v1580_v45, %v1580_v45  ;;  %v8694_v45 = vld [vmem:[%s10598_s9 + $0x28] sm:$0xff]  }
 0xb8d   : > { %v1516_v32 = vpop.f32.mrb[42].mxu1 }
 0xb8e   : > { %v7957_v33 = vpop.f32.mrb[43].mxu1 }
 0xb93   : > { %v1635_v36 = vpop.f32.mrb[44].mxu1 }
 0xb94   : > { %v1636_v37 = vadd.f32 %v1635_v36, %v1599_v34  ;;  %v7972_v39 = vpop.f32.mrb[45].mxu1 }
 0xb95   : > { %v1638_v41 = vpop.f32.mrb[46].mxu1  ;;  %v8687_v39 = vld [vmem:[%s10597_s8] sm:$0xff]  }
 0xb96   : > { %v1702_v42 = vpack.c.bf16 %v1636_v37, %v1636_v37  ;;  %v7973_v43 = vpop.f32.mrb[47].mxu1  ;;  %v8690_v41 = vld [vmem:[%s10598_s9 + $0x8] sm:$0xff]  }
 0xb97   : > { %v8692_v43 = vld [vmem:[%s10598_s9 + $0x18] sm:$0xff]  }
 0xb98   : > { %v1707_v44 = vsel %vm679_vm2, %v1702_v42, 0  ;;  %v8691_v42 = vld [vmem:[%s10598_s9 + $0x10] sm:$0xff]  }
 0xb99   : > { %7983 = vmatpush3.bf16.xpose.msra.mxu1 %v1707_v44  ;;  %v8693_v44 = vld [vmem:[%s10598_s9 + $0x20] sm:$0xff]  }
 0xb9a   : > { %7994 = vmatprep.subr.bf16.mxu1 %v8951_v1 }
 0xba0   : > { %7985 = vmatmul.mubr.msk.bf16.vlgmr.msra.gmra.mrb[48].mxu1 %vm679_vm2, %v1701_v27 }
 0xba1   : > { %7996 = vmatprep.mubr.msk.bf16.mxu1 %vm8952_vm0, %v8951_v1 }
 0xc73   : > { %v1743_v48 = vpop.f32.mrb[48].mxu1 }
 0xc74   : > { %v1744_v49 = vadd.f32 %v9173_v38, %v1743_v48  ;;  %v7986_v50 = vpop.f32.mrb[49].mxu1  ;;  %v9436_v48 = vsub.s32 4, %v9128_v9 }
 0xc75   : > { %v1746_v51 = vpop.f32.mrb[50].mxu1 }
 0xc76   : > { %v7987_v52 = vpop.f32.mrb[51].mxu1  ;;  %v1749_v4 = vsel %vm679_vm2, %v1744_v49, -inf  ;;  %v1881_v50 = vrot.slane %v9139_v16, %v9436_v48 }
 0xc77   : > { %1750 = vmax.xlane.f32.xlu1 %v1749_v4 }
 0xc88   : > { %1658 = vrot.lane.b32.xlu1 %v9161_v30, %s10605_s26  ;;  %v7121_v30 = vld [vmem:[%s10596_s7 + $0xc] sm:$0xf]  ;;  %s449_s26 = scalar_lea.vmem %s10620_s1, %s10619_s2 }
 0xc89   : > { %v1816_v5 = vsel %vm748_vm3, %v7121_v30, 0 }
 0xc8a   : > { %7995 = vmatpush3.bf16.msra.mxu1 %v1816_v5 }
 0xc8b   : > { %8008 = vmatprep.subr.bf16.mxu1 %v8951_v1 }
 0xd04   : > { %v1751_v53 = vpop.xlane.xlu1 %1750 }
 0xd05   : > { %v1752_v54 = vsub.f32 %v1744_v49, %v1751_v53  ;;  %v9439_v49 = vsub.s32 5, %v9128_v9 }
 0xd07   : > { %v1753_v55 = vmul.f32 1.442695, %v1752_v54  ;;  %v1886_v4 = vrot.slane %v9139_v16, %v9439_v49  ;;  %v7123_v16 = vld [vmem:[%s10600_s11] ss:$0 sm:$0xff] }
 0xd08   : > { %v1659_v63 = vpop.permute.xlu1 %1658 }
 0xd09   : > { %8811 = vpow2.f32 %v1753_v55  ;;  %v1696_v0 = vadd.f32 %v1695_v59, %v1659_v63 }
 0xd0b   : > { %v1762_v2 = vpack.c.bf16 %v1696_v0, %v1696_v0 }
 0xd0d   : > { %v1767_v3 = vsel %vm748_vm3, %v1762_v2, 0 }
 0xd0e   : > { %7989 = vmatpush3.bf16.msra.mxu0 %v1767_v3  ;;  %v484_v3 = vld [vmem:[%s10599_s10 + $0x8] sm:$0x7] }
 0xd0f   : > { %8000 = vmatprep.subr.bf16.mxu0 %v8951_v1  ;;  %v1955_v30 = vrot.slane %v484_v3, %v9134_v14 }
 0xd13   : > { %v8812_v57 = vpop.eup %8811 }
 0xd14   : > { %v1755_v58 = vsel %vm679_vm2, %v8812_v57, 0.0 }
 0xd15   : > { %1756 = vadd.xlane.f32.xlu0 %v1755_v58  ;;  %v8696_v58 = vld [vmem:[%s10598_s9 + $0x38] sm:$0xff]  }
 0xda2   : > { %v1757_v6 = vpop.xlane.xlu0 %1756 }
 0xda3   : > { %8813 = vrcp.f32 %v1757_v6 }
 0xdad   : > { %v8814_v7 = vpop.eup %8813 }
 0xdae   : > { %v1759_v8 = vmul.f32 %v8814_v7, %v8812_v57  ;;  %v8695_v57 = vld [vmem:[%s10598_s9 + $0x30] sm:$0xff]  }
 0xdb0   : > { %v1760_v10 = vmul.f32 %v1759_v8, %v9198_v56 }
 0xdb2   : > { %v1761_v11 = vpack.c.bf16 %v1760_v10, %v1760_v10 }
 0xdb4   : > { %7991 = vmatmul.mubr.msk.bf16.vlgmr.msra.gmra.mrb[36].mxu0 %vm679_vm2, %v1761_v11 }
 0xdb5   : > { %8004 = vmatprep.mubr.msk.bf16.mxu0 %vm8952_vm0, %v8951_v1  ;;  %8001 = vmatpush3.bf16.msra.mxu0 %v8687_v39  ;;  %v8699_v39 = vld [vmem:[%s10594_s5 + $0x40] sm:$0xff]  }
 0xdb6   : > { %8002 = vmatprep.subr.bf16.mxu0 %v8951_v1 }
 0xe87   : > { %v1803_v13 = vpop.f32.mrb[36].mxu0 }
 0xe88   : > { %v1809_v15 = vpack.c.bf16 %v1803_v13, %v1803_v13  ;;  %v7992_v19 = vpop.f32.mrb[37].mxu0 }
 0xe89   : > { %v1806_v20 = vpop.f32.mrb[38].mxu0 }
 0xe8a   : > { %v7993_v21 = vpop.f32.mrb[39].mxu0  ;;  %7997 = vmatmul.mubr.msk.bf16.vlgmr.msra.gmra.mrb[52].mxu1 %vm679_vm2, %v1809_v15 }
 0xe8b   : > { %8024 = vmatprep.mubr.msk.bf16.mxu1 %vm8952_vm0, %v8951_v1  ;;  %8009 = vmatpush3.bf16.msra.mxu1 %v8689_v40  ;;  %v8700_v40 = vld [vmem:[%s10594_s5 + $0x48] sm:$0xff]  }
 0xe8c   : > { %8010 = vmatprep.subr.bf16.mxu1 %v8951_v1 }
 0xe8f   : > { %8011 = vmatpush3.bf16.msra.mxu1 %v8690_v41  ;;  %v8701_v41 = vld [vmem:[%s10595_s6 + $0x40] sm:$0xff]  }
 0xe90   : > { %8012 = vmatprep.subr.bf16.mxu1 %v8951_v1 }
 0xe93   : > { %8013 = vmatpush3.bf16.msra.mxu1 %v8691_v42  ;;  %v8702_v42 = vld [vmem:[%s10595_s6 + $0x48] sm:$0xff]  }
 0xe94   : > { %8014 = vmatprep.subr.bf16.mxu1 %v8951_v1 }
 0xe97   : > { %8015 = vmatpush3.bf16.msra.mxu1 %v8692_v43 }
 0xe98   : > { %8016 = vmatprep.subr.bf16.mxu1 %v8951_v1 }
 0xe9b   : > { %8017 = vmatpush3.bf16.msra.mxu1 %v8693_v44 }
 0xe9c   : > { %8018 = vmatprep.subr.bf16.mxu1 %v8951_v1 }
 0xe9f   : > { %8019 = vmatpush3.bf16.msra.mxu1 %v8694_v45 }
 0xea0   : > { %8020 = vmatprep.subr.bf16.mxu1 %v8951_v1 }
 0xea3   : > { %8021 = vmatpush3.bf16.msra.mxu1 %v8695_v57 }
 0xea4   : > { %8022 = vmatprep.subr.bf16.mxu1 %v8951_v1 }
 0xea7   : > { %8023 = vmatpush3.bf16.msra.mxu1 %v8696_v58 }
 0xea8   : > { %8058 = vmatprep.subr.bf16.mxu1 %v8951_v1 }
 0xf5d   : > { %v1852_v18 = vpop.f32.mrb[52].mxu1 }
 0xf5e   : > { %v1858_v23 = vadd.f32 %v1852_v18, %v9358_v28  ;;  %v7998_v24 = vpop.f32.mrb[53].mxu1  ;;  %v8688_v28 = vld [vmem:[%s10597_s8 + $0x8] sm:$0xff]  }
 0xf5f   : > { %v1855_v25 = vpop.f32.mrb[54].mxu1  ;;  %8003 = vmatpush3.bf16.msra.mxu0 %v8688_v28  ;;  %v8698_v24 = vld [vmem:[%s10593_s4 + $0x48] sm:$0xff]  }
 0xf60   : > { %v7999_v26 = vpop.f32.mrb[55].mxu1  ;;  %v1863_v31 = vadd.f32 %v1862_v17, %v1858_v23  ;;  %8028 = vmatprep.subr.bf16.mxu0 %v8951_v1  ;;  %v8697_v23 = vld [vmem:[%s10593_s4 + $0x40] sm:$0xff]  }
 0xf62   : > { %v1864_v32 = vsel %vm506_vm1, %v1863_v31, 0.0 }
 0xf63   : > { %1865 = vadd.xlane.f32.xlu0 %v1864_v32  ;;  %v2062_v32 = vrot.slane %v484_v3, %v9131_v12 }
 0xff0   : > { %v1866_v33 = vpop.xlane.xlu0 %1865 }
 0xff1   : > { %v1868_v34 = vmul.f32 0.03125, %v1866_v33 }
 0xff3   : > { %v1869_v35 = vsub.f32 %v1863_v31, %v1868_v34  ;;  %v2067_v34 = vrot.slane %v484_v3, %v9157_v29 }
 0xff5   : > { %v1870_v36 = vmul.f32 %v1869_v35, %v1869_v35 }
 0xff7   : > { %v1871_v37 = vsel %vm506_vm1, %v1870_v36, 0.0 }
 0xff8   : > { %1872 = vadd.xlane.f32.xlu0 %v1871_v37 }
0x1085   : > { %v1873_v27 = vpop.xlane.xlu0 %1872 }
0x1086   : > { %v1874_v46 = vmul.f32 0.03125, %v1873_v27 }
0x1088   : > { %v1875_v47 = vadd.f32 1e-05, %v1874_v46  ;;  %v9515_v46 = vld [vmem:[%s10599_s10 + $0x10] sm:$0xff] }
0x108a   : > { %8815 = vrsqrt.f32 %v1875_v47  ;;  %v9519_v47 = vrot.slane %v9515_v46, %v9131_v12 }
0x1094   : > { %v8816_v51 = vpop.eup %8815 }
0x1095   : > { %v1877_v52 = vmul.f32 %v8816_v51, %v1869_v35 }
0x1097   : > { %v1882_v53 = vmul.f32 %v1881_v50, %v1877_v52  ;;  %v9523_v50 = vrot.slane %v9515_v46, %v9134_v14 }
0x1099   : > { %v1887_v54 = vadd.f32 %v1886_v4, %v1882_v53 }
0x109b   : > { %v1888_v55 = vpack.c.bf16 %v1887_v54, %v1887_v54 }
0x109d   : > { %8005 = vmatmul.mubr.msk.bf16.vlgmr.msra.gmra.mrb[40].mxu0 %vm506_vm1, %v1888_v55 }
0x109e   : > { %8032 = vmatprep.mubr.msk.bf16.mxu0 %vm8952_vm0, %v8951_v1  ;;  %8029 = vmatpush3.bf16.msra.mxu0 %v8697_v23 }
0x109f   : > { %8030 = vmatprep.subr.bf16.mxu0 %v8951_v1 }
0x10a2   : > { %8031 = vmatpush3.bf16.msra.mxu0 %v8698_v24 }
0x10a3   : > { %8036 = vmatprep.subr.bf16.mxu0 %v8951_v1 }
0x1170   : > { %v1944_v59 = vpop.f32.mrb[40].mxu0 }
0x1171   : > { %v1945_v60 = vadd.f32 %v7123_v16, %v1944_v59  ;;  %v8006_v61 = vpop.f32.mrb[41].mxu0  ;;  %v9530_v16 = vrot.slane %v9515_v46, %v9157_v29 }
0x1172   : > { %v1947_v62 = vpop.f32.mrb[42].mxu0 }
0x1173   : > { %v1950_v63 = vmax.f32 %v1945_v60, 0.0  ;;  %v8007_v0 = vpop.f32.mrb[43].mxu0 }
0x1174   : > { %v8703_v0 = vld [vmem:[%s10593_s4 + $0x50] sm:$0xff]  }
0x1175   : > { %v1951_v2 = vpack.c.bf16 %v1950_v63, %v1950_v63 }
0x1177   : > { %8025 = vmatmul.mubr.bf16.vlgmr.msra.gmra.mrb[56].mxu1 %v1951_v2 }
0x1178   : > { %8060 = vmatprep.mubr.msk.bf16.mxu1 %vm8952_vm0, %v8951_v1 }
0x124a   : > { %v2038_v5 = vpop.f32.mrb[56].mxu1 }
0x124b   : > { %v2039_v6 = vadd.f32 %v2038_v5, %v1955_v30  ;;  %v8026_v7 = vpop.f32.mrb[57].mxu1 }
0x124c   : > { %v2041_v8 = vpop.f32.mrb[58].mxu1  ;;  %v8705_v7 = vld [vmem:[%s10595_s6 + $0x50] sm:$0xff]  }
0x124d   : > { %v2044_v10 = vadd.f32 %v2039_v6, %v1887_v54  ;;  %v8027_v11 = vpop.f32.mrb[59].mxu1  ;;  %v8704_v6 = vld [vmem:[%s10593_s4 + $0x58] sm:$0xff]  }
0x124e   : > { %v8706_v8 = vld [vmem:[%s10595_s6 + $0x58] sm:$0xff]  }
0x124f   : > { %v2045_v13 = vmul.f32 %v2044_v10, %v9198_v56 }
0x1251   : > { %v2046_v15 = vsel %vm506_vm1, %v2045_v13, 0.0 }
0x1252   : > { %2047 = vadd.xlane.f32.xlu0 %v2046_v15 }
0x12df   : > { %v2048_v19 = vpop.xlane.xlu0 %2047 }
0x12e0   : > { %v2049_v20 = vmul.f32 0.03125, %v2048_v19 }
0x12e2   : > { %v2050_v21 = vsub.f32 %v2045_v13, %v2049_v20 }
0x12e4   : > { %v2051_v17 = vmul.f32 %v2050_v21, %v2050_v21 }
0x12e6   : > { %v2052_v18 = vsel %vm506_vm1, %v2051_v17, 0.0 }
0x12e7   : > { %2053 = vadd.xlane.f32.xlu1 %v2052_v18 }
0x1374   : > { %v2054_v25 = vpop.xlane.xlu1 %2053 }
0x1375   : > { %v2055_v26 = vmul.f32 0.03125, %v2054_v25 }
0x1377   : > { %v2056_v31 = vadd.f32 1e-05, %v2055_v26 }
0x1379   : > { %8817 = vrsqrt.f32 %v2056_v31 }
0x1383   : > { %v8818_v33 = vpop.eup %8817 }
0x1384   : > { %v2058_v35 = vmul.f32 %v8818_v33, %v2050_v21 }
0x1386   : > { %v2063_v36 = vmul.f32 %v2062_v32, %v2058_v35 }
0x1388   : > { %v9478_v37 = vadd.f32 %v2067_v34, %v2063_v36 }
0x138a   : > { %v9485_v28 = vpack.c.bf16 %v9478_v37, %v9478_v37 }
0x138c   : > { %8033 = vmatmul.mubr.msk.bf16.vlgmr.msra.gmra.mrb[44].mxu0 %vm506_vm1, %v9485_v28 }
0x138d   : > { %8037 = vmatpush3.bf16.msra.mxu0 %v8699_v39  ;;  %8040 = vmatprep.mubr.msk.bf16.mxu0 %vm8952_vm0, %v8951_v1 }
0x138e   : > { %8038 = vmatprep.subr.bf16.mxu0 %v8951_v1 }
0x1391   : > { %8039 = vmatpush3.bf16.msra.mxu0 %v8700_v40 }
0x1392   : > { %8044 = vmatprep.subr.bf16.mxu0 %v8951_v1 }
0x1394   : > { %8041 = vmatmul.mubr.msk.bf16.vlgmr.msra.gmra.mrb[48].mxu0 %vm506_vm1, %v9485_v28 }
0x1395   : > { %8045 = vmatpush3.bf16.msra.mxu0 %v8701_v41  ;;  %8048 = vmatprep.mubr.msk.bf16.mxu0 %vm8952_vm0, %v8951_v1 }
0x1396   : > { %8046 = vmatprep.subr.bf16.mxu0 %v8951_v1 }
0x1399   : > { %8047 = vmatpush3.bf16.msra.mxu0 %v8702_v42  ;;  %v8707_v42 = vld [vmem:[%s10594_s5 + $0x50] sm:$0xff]  }
0x139a   : > { %8052 = vmatprep.subr.bf16.mxu0 %v8951_v1 }
0x139c   : > { %8049 = vmatmul.mubr.msk.bf16.vlgmr.msra.gmra.mrb[52].mxu0 %vm506_vm1, %v9485_v28 }
0x139d   : > { %8054 = vmatprep.mubr.msk.bf16.mxu0 %vm8952_vm0, %v8951_v1 }
0x145f   : > { %v2155_v43 = vpop.f32.mrb[44].mxu0 }
0x1460   : > { %v8034_v44 = vpop.f32.mrb[45].mxu0  ;;  %v2156_v54 = vadd.f32 %v2155_v43, %v9523_v50 }
0x1461   : > { %v2158_v45 = vpop.f32.mrb[46].mxu0  ;;  %v8708_v44 = vld [vmem:[%s10594_s5 + $0x58] sm:$0xff]  }
0x1462   : > { %v8035_v27 = vpop.f32.mrb[47].mxu0  ;;  %v2161_v59 = vmul.f32 0.35355338, %v2156_v54 }
0x1464   : > { %v2284_v2 = vpack.c.bf16 %v2161_v59, %v2161_v59 }
0x1467   : > { %v2217_v51 = vpop.f32.mrb[48].mxu0 }
0x1468   : > { %v2218_v52 = vadd.f32 %v2217_v51, %v9519_v47  ;;  %v8042_v4 = vpop.f32.mrb[49].mxu0 }
0x1469   : > { %v2220_v53 = vpop.f32.mrb[50].mxu0 }
0x146a   : > { %v2285_v55 = vpack.c.bf16 %v2218_v52, %v2218_v52  ;;  %v8043_v57 = vpop.f32.mrb[51].mxu0 }
0x146c   : > { %v2290_v58 = vsel %vm679_vm2, %v2285_v55, 0 }
0x146d   : > { %8053 = vmatpush3.bf16.xpose.msra.mxu0 %v2290_v58 }
0x146e   : > { %8064 = vmatprep.subr.bf16.mxu0 %v8951_v1 }
0x146f   : > { %v2278_v60 = vpop.f32.mrb[52].mxu0 }
0x1470   : > { %v2279_v61 = vadd.f32 %v2278_v60, %v9530_v16  ;;  %v8050_v62 = vpop.f32.mrb[53].mxu0 }
0x1471   : > { %v2281_v63 = vpop.f32.mrb[54].mxu0 }
0x1472   : > { %v2345_v3 = vpack.c.bf16 %v2279_v61, %v2279_v61  ;;  %v8051_v30 = vpop.f32.mrb[55].mxu0 }
0x1474   : > { %v2350_v5 = vsel %vm748_vm3, %v2345_v3, 0  ;;  %8055 = vmatmul.mubr.msk.bf16.vlgmr.msra.gmra.mrb[56].mxu0 %vm679_vm2, %v2284_v2  ;;  %v9596_v3 = vld [vmem:[%s9170_s29] ss:$0 sm:$0xff] }
0x1475   : > { %8059 = vmatpush3.bf16.msra.mxu1 %v2350_v5  ;;  %8065 = vmatpush3.bf16.msra.mxu0 %v8703_v0 }
0x1476   : > { %8066 = vmatprep.subr.bf16.mxu0 %v8951_v1  ;;  %8068 = vmatprep.mubr.msk.bf16.mxu0 %vm8952_vm0, %v8951_v1 }
0x1477   : > { %8072 = vmatprep.subr.bf16.mxu1 %v8951_v1 }
0x1479   : > { %8067 = vmatpush3.bf16.msra.mxu0 %v8704_v6 }
0x147a   : > { %8080 = vmatprep.subr.bf16.mxu0 %v8951_v1 }
0x147c   : > { %8069 = vmatmul.mubr.msk.bf16.vlgmr.msra.gmra.mrb[60].mxu0 %vm506_vm1, %v9485_v28 }
0x147d   : > { %8081 = vmatpush3.bf16.msra.mxu0 %v8705_v7  ;;  %8084 = vmatprep.mubr.msk.bf16.mxu0 %vm8952_vm0, %v8951_v1 }
0x147e   : > { %8082 = vmatprep.subr.bf16.mxu0 %v8951_v1 }
0x1481   : > { %8083 = vmatpush3.bf16.msra.mxu0 %v8706_v8 }
0x1482   : > { %8094 = vmatprep.subr.bf16.mxu0 %v8951_v1 }
0x1484   : > { %8085 = vmatmul.mubr.msk.bf16.vlgmr.msra.gmra.mrb[64].mxu0 %vm506_vm1, %v9485_v28 }
0x1485   : > { %8096 = vmatprep.mubr.msk.bf16.mxu0 %vm8952_vm0, %v8951_v1 }
0x1547   : > { %v2326_v10 = vpop.f32.mrb[56].mxu0 }
0x1548   : > { %v2327_v11 = vadd.f32 %v9173_v38, %v2326_v10  ;;  %v8056_v13 = vpop.f32.mrb[57].mxu0 }
0x1549   : > { %v2329_v15 = vpop.f32.mrb[58].mxu0 }
0x154a   : > { %v8057_v19 = vpop.f32.mrb[59].mxu0  ;;  %v2332_v20 = vsel %vm679_vm2, %v2327_v11, -inf }
0x154b   : > { %2333 = vmax.xlane.f32.xlu0 %v2332_v20 }
0x154f   : > { %v2450_v21 = vpop.f32.mrb[60].mxu0 }
0x1550   : > { %v8070_v17 = vpop.f32.mrb[61].mxu0 }
0x1551   : > { %v2453_v18 = vpop.f32.mrb[62].mxu0 }
0x1552   : > { %v8071_v23 = vpop.f32.mrb[63].mxu0 }
0x1553   : > { %v7205_v23 = vld [vmem:[%s10596_s7 + $0x14] sm:$0xf] }
0x1557   : > { %v9565_v24 = vpop.f32.mrb[64].mxu0 }
0x1558   : > { %v8086_v25 = vpop.f32.mrb[65].mxu0 }
0x1559   : > { %v2576_v26 = vpop.f32.mrb[66].mxu0  ;;  %v2694_v25 = vsel %vm748_vm3, %v7205_v23, 0 }
0x155a   : > { %v8087_v31 = vpop.f32.mrb[67].mxu0 }
0x15d8   : > { %v2334_v32 = vpop.xlane.xlu0 %2333 }
0x15d9   : > { %v2335_v33 = vsub.f32 %v2327_v11, %v2334_v32  ;;  %v7181_v32 = vld [vmem:[%s10596_s7 + $0x10] sm:$0xf] }
0x15db   : > { %v2336_v34 = vmul.f32 1.442695, %v2335_v33 }
0x15dd   : > { %8819 = vpow2.f32 %v2336_v34 }
0x15e7   : > { %v8820_v38 = vpop.eup %8819 }
0x15e8   : > { %v2338_v35 = vsel %vm679_vm2, %v8820_v38, 0.0 }
0x15e9   : > { %2339 = vadd.xlane.f32.xlu0 %v2338_v35  ;;  %v8709_v35 = vld [vmem:[%s10594_s5 + $0x60] sm:$0xff]  }
0x15ff   : > { %2475 = vrot.lane.b32.xlu0 %v9519_v47, %s10616_s18 }
0x1603   : > { %2413 = vrot.lane.b32.xlu0 %v9523_v50, %s10616_s18 }
0x1676   : > { %v2340_v36 = vpop.xlane.xlu0 %2339 }
0x1677   : > { %8821 = vrcp.f32 %v2340_v36 }
0x167a   : > { %v2476_v51 = vpop.permute.xlu0 %2475 }
0x167e   : > { %v2414_v53 = vpop.permute.xlu0 %2413 }
0x167f   : > { %v2451_v59 = vadd.f32 %v2450_v21, %v2414_v53 }
0x1681   : > { %v8822_v39 = vpop.eup %8821  ;;  %v2456_v63 = vmul.f32 0.35355338, %v2451_v59 }
0x1682   : > { %v2342_v40 = vmul.f32 %v8822_v39, %v8820_v38  ;;  %v2740_v38 = vsel %vm748_vm3, %v7181_v32, 0  ;;  %v8710_v39 = vld [vmem:[%s10594_s5 + $0x68] sm:$0xff]  }
0x1683   : > { %v2579_v0 = vpack.c.bf16 %v2456_v63, %v2456_v63 }
0x1684   : > { %v2343_v41 = vmul.f32 %v2342_v40, %v9198_v56 }
0x1686   : > { %v2344_v43 = vpack.c.bf16 %v2343_v41, %v2343_v41  ;;  %v8711_v41 = vld [vmem:[%s10593_s4 + $0x60] sm:$0xff]  }
0x1688   : > { %8061 = vmatmul.mubr.msk.bf16.vlgmr.msra.gmra.mrb[60].mxu1 %vm679_vm2, %v2344_v43 }
0x1689   : > { %8073 = vmatpush3.bf16.msra.mxu1 %v8707_v42  ;;  %8076 = vmatprep.mubr.msk.bf16.mxu1 %vm8952_vm0, %v8951_v1 }
0x168a   : > { %8074 = vmatprep.subr.bf16.mxu1 %v8951_v1 }
0x168d   : > { %8075 = vmatpush3.bf16.msra.mxu1 %v8708_v44 }
0x168e   : > { %8088 = vmatprep.subr.bf16.mxu1 %v8951_v1 }
0x1690   : > { %8077 = vmatmul.mubr.msk.bf16.vlgmr.msra.gmra.mrb[64].mxu1 %vm506_vm1, %v9485_v28 }
0x1691   : > { %8090 = vmatprep.mubr.msk.bf16.mxu1 %vm8952_vm0, %v8951_v1 }
0x175b   : > { %v9588_v45 = vpop.f32.mrb[60].mxu1 }
0x175c   : > { %v8062_v27 = vpop.f32.mrb[61].mxu1  ;;  %v2392_v36 = vpack.c.bf16 %v9588_v45, %v9588_v45 }
0x175d   : > { %v2389_v52 = vpop.f32.mrb[62].mxu1  ;;  %v8712_v27 = vld [vmem:[%s10593_s4 + $0x68] sm:$0xff]  }
0x175e   : > { %v8063_v4 = vpop.f32.mrb[63].mxu1  ;;  %v8713_v52 = vld [vmem:[%s10595_s6 + $0x60] sm:$0xff]  }
0x1763   : > { %v2512_v54 = vpop.f32.mrb[64].mxu1 }
0x1764   : > { %v2513_v55 = vadd.f32 %v2512_v54, %v2476_v51  ;;  %v8078_v57 = vpop.f32.mrb[65].mxu1 }
0x1765   : > { %v2515_v58 = vpop.f32.mrb[66].mxu1 }
0x1766   : > { %v2580_v60 = vpack.c.bf16 %v2513_v55, %v2513_v55  ;;  %v8079_v61 = vpop.f32.mrb[67].mxu1  ;;  %v8714_v55 = vld [vmem:[%s10595_s6 + $0x68] sm:$0xff]  }
0x1768   : > { %v2585_v62 = vsel %vm679_vm2, %v2580_v60, 0 }
0x1769   : > { %8089 = vmatpush3.bf16.xpose.msra.mxu1 %v2585_v62 }
0x176a   : > { %8100 = vmatprep.subr.bf16.mxu1 %v8951_v1 }
0x1770   : > { %8091 = vmatmul.mubr.msk.bf16.vlgmr.msra.gmra.mrb[68].mxu1 %vm679_vm2, %v2579_v0 }
0x1771   : > { %8102 = vmatprep.mubr.msk.bf16.mxu1 %vm8952_vm0, %v8951_v1  ;;  %8101 = vmatpush3.bf16.msra.mxu1 %v2694_v25 }
0x1772   : > { %8112 = vmatprep.subr.bf16.mxu1 %v8951_v1 }
0x1843   : > { %v2621_v2 = vpop.f32.mrb[68].mxu1 }
0x1844   : > { %v2622_v30 = vadd.f32 %v9596_v3, %v2621_v2  ;;  %v8092_v5 = vpop.f32.mrb[69].mxu1 }
0x1845   : > { %v2624_v6 = vpop.f32.mrb[70].mxu1 }
0x1846   : > { %v8093_v7 = vpop.f32.mrb[71].mxu1  ;;  %v2627_v8 = vsel %vm679_vm2, %v2622_v30, -inf }
0x1847   : > { %2628 = vmax.xlane.f32.xlu1 %v2627_v8 }
0x1858   : > { %2536 = vrot.lane.b32.xlu1 %v9530_v16, %s10616_s18 }
0x185c   : > { %2860 = vrot.lane.b32.xlu1 %v9519_v47, %s10617_s17 }
0x1860   : > { %2799 = vrot.lane.b32.xlu1 %v9523_v50, %s10617_s17 }
0x18d4   : > { %v2629_v10 = vpop.xlane.xlu1 %2628 }
0x18d5   : > { %v2630_v11 = vsub.f32 %v2622_v30, %v2629_v10 }
0x18d7   : > { %v2631_v13 = vmul.f32 1.442695, %v2630_v11 }
0x18d8   : > { %v2537_v15 = vpop.permute.xlu1 %2536 }
0x18d9   : > { %8823 = vpow2.f32 %v2631_v13  ;;  %v2574_v19 = vadd.f32 %v9565_v24, %v2537_v15 }
0x18db   : > { %v2640_v20 = vpack.c.bf16 %v2574_v19, %v2574_v19 }
0x18dc   : > { %v2861_v57 = vpop.permute.xlu1 %2860 }
0x18dd   : > { %v2645_v21 = vsel %vm748_vm3, %v2640_v20, 0 }
0x18de   : > { %8095 = vmatpush3.bf16.msra.mxu0 %v2645_v21 }
0x18df   : > { %8106 = vmatprep.subr.bf16.mxu0 %v8951_v1 }
0x18e0   : > { %v2800_v8 = vpop.permute.xlu1 %2799 }
0x18e3   : > { %v8824_v17 = vpop.eup %8823 }
0x18e4   : > { %v2633_v18 = vsel %vm679_vm2, %v8824_v17, 0.0 }
0x18e5   : > { %2634 = vadd.xlane.f32.xlu0 %v2633_v18 }
0x1972   : > { %v2635_v24 = vpop.xlane.xlu0 %2634 }
0x1973   : > { %8825 = vrcp.f32 %v2635_v24 }
0x197d   : > { %v8826_v26 = vpop.eup %8825 }
0x197e   : > { %v2637_v31 = vmul.f32 %v8826_v26, %v8824_v17 }
0x1980   : > { %v2638_v33 = vmul.f32 %v2637_v31, %v9198_v56 }
0x1982   : > { %v2639_v34 = vpack.c.bf16 %v2638_v33, %v2638_v33 }
0x1984   : > { %8097 = vmatmul.mubr.msk.bf16.vlgmr.msra.gmra.mrb[68].mxu0 %vm679_vm2, %v2639_v34 }
0x1985   : > { %8107 = vmatpush3.bf16.msra.mxu0 %v2740_v38  ;;  %8108 = vmatprep.mubr.msk.bf16.mxu0 %vm8952_vm0, %v8951_v1 }
0x1986   : > { %8120 = vmatprep.subr.bf16.mxu0 %v8951_v1 }
0x198c   : > { %8109 = vmatmul.mubr.msk.bf16.vlgmr.msra.gmra.mrb[72].mxu0 %vm679_vm2, %v2392_v36 }
0x198d   : > { %8121 = vmatpush3.bf16.msra.mxu0 %v8709_v35  ;;  %8124 = vmatprep.mubr.msk.bf16.mxu0 %vm8952_vm0, %v8951_v1 }
0x198e   : > { %8122 = vmatprep.subr.bf16.mxu0 %v8951_v1 }
0x1991   : > { %8123 = vmatpush3.bf16.msra.mxu0 %v8710_v39 }
0x1992   : > { %8136 = vmatprep.subr.bf16.mxu0 %v8951_v1 }
0x1994   : > { %8125 = vmatmul.mubr.msk.bf16.vlgmr.msra.gmra.mrb[76].mxu0 %vm506_vm1, %v9485_v28 }
0x1995   : > { %8138 = vmatprep.mubr.msk.bf16.mxu0 %vm8952_vm0, %v8951_v1 }
0x1a57   : > { %v2681_v40 = vpop.f32.mrb[68].mxu0 }
0x1a58   : > { %v2687_v42 = vpack.c.bf16 %v2681_v40, %v2681_v40  ;;  %v8098_v43 = vpop.f32.mrb[69].mxu0 }
0x1a59   : > { %v2684_v44 = vpop.f32.mrb[70].mxu0 }
0x1a5a   : > { %v8099_v45 = vpop.f32.mrb[71].mxu0  ;;  %8103 = vmatmul.mubr.msk.bf16.vlgmr.msra.gmra.mrb[72].mxu1 %vm679_vm2, %v2687_v42 }
0x1a5b   : > { %8113 = vmatpush3.bf16.msra.mxu1 %v8711_v41  ;;  %8116 = vmatprep.mubr.msk.bf16.mxu1 %vm8952_vm0, %v8951_v1  ;;  %v7231_v41 = vld [vmem:[%s10596_s7 + $0x18] sm:$0xf] }
0x1a5c   : > { %8114 = vmatprep.subr.bf16.mxu1 %v8951_v1  ;;  %v3078_v42 = vsel %vm748_vm3, %v7231_v41, 0 }
0x1a5f   : > { %v2776_v51 = vpop.f32.mrb[72].mxu0  ;;  %8115 = vmatpush3.bf16.msra.mxu1 %v8712_v27 }
0x1a60   : > { %v8110_v4 = vpop.f32.mrb[73].mxu0  ;;  %8128 = vmatprep.subr.bf16.mxu1 %v8951_v1 }
0x1a61   : > { %v2779_v53 = vpop.f32.mrb[74].mxu0  ;;  %v8715_v4 = vld [vmem:[%s10593_s4 + $0x70] sm:$0xff]  }
0x1a62   : > { %v8111_v54 = vpop.f32.mrb[75].mxu0  ;;  %8117 = vmatmul.mubr.msk.bf16.vlgmr.msra.gmra.mrb[76].mxu1 %vm506_vm1, %v9485_v28 }
0x1a63   : > { %8129 = vmatpush3.bf16.msra.mxu1 %v8713_v52  ;;  %8132 = vmatprep.mubr.msk.bf16.mxu1 %vm8952_vm0, %v8951_v1  ;;  %v8716_v54 = vld [vmem:[%s10593_s4 + $0x78] sm:$0xff]  }
0x1a64   : > { %8130 = vmatprep.subr.bf16.mxu1 %v8951_v1 }
0x1a67   : > { %v2897_v58 = vpop.f32.mrb[76].mxu0  ;;  %8131 = vmatpush3.bf16.msra.mxu1 %v8714_v55  ;;  %v8717_v55 = vld [vmem:[%s10595_s6 + $0x70] sm:$0xff]  }
0x1a68   : > { %v2898_v59 = vadd.f32 %v2897_v58, %v2861_v57  ;;  %v8126_v60 = vpop.f32.mrb[77].mxu0  ;;  %8142 = vmatprep.subr.bf16.mxu1 %v8951_v1  ;;  %v8718_v57 = vld [vmem:[%s10595_s6 + $0x78] sm:$0xff]  }
0x1a69   : > { %v2900_v61 = vpop.f32.mrb[78].mxu0 }
0x1a6a   : > { %v2964_v62 = vpack.c.bf16 %v2898_v59, %v2898_v59  ;;  %v8127_v63 = vpop.f32.mrb[79].mxu0  ;;  %8133 = vmatmul.mubr.msk.bf16.vlgmr.msra.gmra.mrb[80].mxu1 %vm506_vm1, %v9485_v28  ;;  %v8719_v59 = vld [vmem:[%s10594_s5 + $0x70] sm:$0xff]  }
0x1a6b   : > { %8144 = vmatprep.mubr.msk.bf16.mxu1 %vm8952_vm0, %v8951_v1 }
0x1a6c   : > { %v2969_v0 = vsel %vm679_vm2, %v2964_v62, 0 }
0x1a6d   : > { %8137 = vmatpush3.bf16.xpose.msra.mxu0 %v2969_v0  ;;  %v8720_v0 = vld [vmem:[%s10594_s5 + $0x78] sm:$0xff]  }
0x1a6e   : > { %8148 = vmatprep.subr.bf16.mxu0 %v8951_v1 }
0x1b2d   : > { %v2730_v2 = vpop.f32.mrb[72].mxu1 }
0x1b2e   : > { %v9670_v30 = vadd.f32 %v2776_v51, %v2730_v2  ;;  %v8104_v5 = vpop.f32.mrb[73].mxu1 }
0x1b2f   : > { %v2733_v6 = vpop.f32.mrb[74].mxu1 }
0x1b30   : > { %v8105_v7 = vpop.f32.mrb[75].mxu1 }
0x1b35   : > { %v2836_v10 = vpop.f32.mrb[76].mxu1 }
0x1b36   : > { %v2837_v11 = vadd.f32 %v2836_v10, %v2800_v8  ;;  %v8118_v13 = vpop.f32.mrb[77].mxu1 }
0x1b37   : > { %v2839_v15 = vpop.f32.mrb[78].mxu1 }
0x1b38   : > { %v2842_v19 = vmul.f32 0.35355338, %v2837_v11  ;;  %v8119_v20 = vpop.f32.mrb[79].mxu1 }
0x1b3a   : > { %v2963_v21 = vpack.c.bf16 %v2842_v19, %v2842_v19 }
0x1b3c   : > { %8139 = vmatmul.mubr.msk.bf16.vlgmr.msra.gmra.mrb[80].mxu0 %vm679_vm2, %v2963_v21 }
0x1b3d   : > { %v2957_v17 = vpop.f32.mrb[80].mxu1  ;;  %8150 = vmatprep.mubr.msk.bf16.mxu0 %vm8952_vm0, %v8951_v1  ;;  %8149 = vmatpush3.bf16.msra.mxu0 %v3078_v42 }
0x1b3e   : > { %v8134_v18 = vpop.f32.mrb[81].mxu1  ;;  %8162 = vmatprep.subr.bf16.mxu0 %v8951_v1 }
0x1b3f   : > { %v2960_v23 = vpop.f32.mrb[82].mxu1 }
0x1b40   : > { %v8135_v25 = vpop.f32.mrb[83].mxu1 }
0x1c0f   : > { %v3005_v24 = vpop.f32.mrb[80].mxu0 }
0x1c10   : > { %v3006_v26 = vadd.f32 %v9596_v3, %v3005_v24  ;;  %v8140_v31 = vpop.f32.mrb[81].mxu0 }
0x1c11   : > { %v3008_v32 = vpop.f32.mrb[82].mxu0 }
0x1c12   : > { %v8141_v33 = vpop.f32.mrb[83].mxu0  ;;  %v3011_v34 = vsel %vm679_vm2, %v3006_v26, -inf }
0x1c13   : > { %3012 = vmax.xlane.f32.xlu1 %v3011_v34 }
0x1ca0   : > { %v3013_v38 = vpop.xlane.xlu1 %3012 }
0x1ca1   : > { %v3014_v35 = vsub.f32 %v3006_v26, %v3013_v38 }
0x1ca3   : > { %v3015_v36 = vmul.f32 1.442695, %v3014_v35 }
0x1ca5   : > { %8827 = vpow2.f32 %v3015_v36 }
0x1caf   : > { %v8828_v39 = vpop.eup %8827 }
0x1cb0   : > { %v3017_v40 = vsel %vm679_vm2, %v8828_v39, 0.0 }
0x1cb1   : > { %3018 = vadd.xlane.f32.xlu0 %v3017_v40 }
0x1cc7   : > { %2920 = vrot.lane.b32.xlu0 %v9530_v16, %s10617_s17 }
0x1ccb   : > { %3199 = vrot.lane.b32.xlu0 %v9519_v47, %s10618_s20 }
0x1ccf   : > { %3138 = vrot.lane.b32.xlu0 %v9523_v50, %s10618_s20 }
0x1d3e   : > { %v3019_v43 = vpop.xlane.xlu0 %3018 }
0x1d3f   : > { %8829 = vrcp.f32 %v3019_v43 }
0x1d42   : > { %v2921_v44 = vpop.permute.xlu0 %2920 }
0x1d43   : > { %v2958_v45 = vadd.f32 %v2957_v17, %v2921_v44 }
0x1d45   : > { %v3024_v27 = vpack.c.bf16 %v2958_v45, %v2958_v45 }
0x1d46   : > { %v3200_v21 = vpop.permute.xlu0 %3199 }
0x1d47   : > { %v3029_v51 = vsel %vm748_vm3, %v3024_v27, 0 }
0x1d48   : > { %8143 = vmatpush3.bf16.msra.mxu1 %v3029_v51 }
0x1d49   : > { %v8830_v47 = vpop.eup %8829  ;;  %8154 = vmatprep.subr.bf16.mxu1 %v8951_v1 }
0x1d4a   : > { %v3021_v50 = vmul.f32 %v8830_v47, %v8828_v39  ;;  %v3139_v23 = vpop.permute.xlu0 %3138 }
0x1d4c   : > { %v3022_v52 = vmul.f32 %v3021_v50, %v9198_v56 }
0x1d4e   : > { %v3023_v53 = vpack.c.bf16 %v3022_v52, %v3022_v52 }
0x1d50   : > { %8145 = vmatmul.mubr.msk.bf16.vlgmr.msra.gmra.mrb[84].mxu1 %vm679_vm2, %v3023_v53 }
0x1d51   : > { %8155 = vmatpush3.bf16.msra.mxu1 %v8715_v4  ;;  %8158 = vmatprep.mubr.msk.bf16.mxu1 %vm8952_vm0, %v8951_v1 }
0x1d52   : > { %8156 = vmatprep.subr.bf16.mxu1 %v8951_v1 }
0x1d55   : > { %8157 = vmatpush3.bf16.msra.mxu1 %v8716_v54 }
0x1d56   : > { %8170 = vmatprep.subr.bf16.mxu1 %v8951_v1 }
0x1d58   : > { %8159 = vmatmul.mubr.msk.bf16.vlgmr.msra.gmra.mrb[88].mxu1 %vm506_vm1, %v9485_v28 }
0x1d59   : > { %8171 = vmatpush3.bf16.msra.mxu1 %v8717_v55  ;;  %8174 = vmatprep.mubr.msk.bf16.mxu1 %vm8952_vm0, %v8951_v1 }
0x1d5a   : > { %8172 = vmatprep.subr.bf16.mxu1 %v8951_v1 }
0x1d5d   : > { %8173 = vmatpush3.bf16.msra.mxu1 %v8718_v57 }
0x1d5e   : > { %8184 = vmatprep.subr.bf16.mxu1 %v8951_v1 }
0x1d60   : > { %8175 = vmatmul.mubr.msk.bf16.vlgmr.msra.gmra.mrb[92].mxu1 %vm506_vm1, %v9485_v28 }
0x1d61   : > { %8186 = vmatprep.mubr.msk.bf16.mxu1 %vm8952_vm0, %v8951_v1 }
0x1e23   : > { %v3065_v58 = vpop.f32.mrb[84].mxu1 }
0x1e24   : > { %v3071_v60 = vpack.c.bf16 %v3065_v58, %v3065_v58  ;;  %v8146_v61 = vpop.f32.mrb[85].mxu1 }
0x1e25   : > { %v3068_v62 = vpop.f32.mrb[86].mxu1 }
0x1e26   : > { %v8147_v63 = vpop.f32.mrb[87].mxu1  ;;  %8151 = vmatmul.mubr.msk.bf16.vlgmr.msra.gmra.mrb[84].mxu0 %vm679_vm2, %v3071_v60 }
0x1e27   : > { %8163 = vmatpush3.bf16.msra.mxu0 %v8719_v59  ;;  %8166 = vmatprep.mubr.msk.bf16.mxu0 %vm8952_vm0, %v8951_v1 }
0x1e28   : > { %8164 = vmatprep.subr.bf16.mxu0 %v8951_v1 }
0x1e2b   : > { %v3175_v2 = vpop.f32.mrb[88].mxu1  ;;  %8165 = vmatpush3.bf16.msra.mxu0 %v8720_v0 }
0x1e2c   : > { %v8160_v5 = vpop.f32.mrb[89].mxu1  ;;  %8178 = vmatprep.subr.bf16.mxu0 %v8951_v1 }
0x1e2d   : > { %v3178_v6 = vpop.f32.mrb[90].mxu1 }
0x1e2e   : > { %v8161_v7 = vpop.f32.mrb[91].mxu1  ;;  %8167 = vmatmul.mubr.msk.bf16.vlgmr.msra.gmra.mrb[88].mxu0 %vm506_vm1, %v9485_v28  ;;  %v3176_v28 = vadd.f32 %v3175_v2, %v3139_v23  ;;  %v3463_v2 = vrot.slane %v9515_v46, %v9396_v22 }
0x1e2f   : > { %8180 = vmatprep.mubr.msk.bf16.mxu0 %vm8952_vm0, %v8951_v1 }
0x1e30   : > { %v3181_v38 = vmul.f32 0.35355338, %v3176_v28 }
0x1e32   : > { %v3302_v35 = vpack.c.bf16 %v3181_v38, %v3181_v38 }
0x1e33   : > { %v3296_v8 = vpop.f32.mrb[92].mxu1 }
0x1e34   : > { %v8176_v10 = vpop.f32.mrb[93].mxu1 }
0x1e35   : > { %v3299_v11 = vpop.f32.mrb[94].mxu1 }
0x1e36   : > { %v8177_v13 = vpop.f32.mrb[95].mxu1 }
0x1ef9   : > { %v3114_v15 = vpop.f32.mrb[84].mxu0 }
0x1efa   : > { %v3120_v19 = vadd.f32 %v3114_v15, %v9670_v30  ;;  %v8152_v20 = vpop.f32.mrb[85].mxu0 }
0x1efb   : > { %v3117_v17 = vpop.f32.mrb[86].mxu0 }
0x1efc   : > { %v8153_v18 = vpop.f32.mrb[87].mxu0 }
0x1f01   : > { %v3236_v25 = vpop.f32.mrb[88].mxu0 }
0x1f02   : > { %v3237_v24 = vadd.f32 %v3236_v25, %v3200_v21  ;;  %v8168_v26 = vpop.f32.mrb[89].mxu0 }
0x1f03   : > { %v3239_v31 = vpop.f32.mrb[90].mxu0  ;;  %v3482_v26 = vrot.slane %v9515_v46, %v9436_v48 }
0x1f04   : > { %v3303_v32 = vpack.c.bf16 %v3237_v24, %v3237_v24  ;;  %v8169_v33 = vpop.f32.mrb[91].mxu0 }
0x1f05   : > { %v3487_v33 = vrot.slane %v9515_v46, %v9439_v49 }
0x1f06   : > { %v3308_v34 = vsel %vm679_vm2, %v3303_v32, 0 }
0x1f07   : > { %8179 = vmatpush3.bf16.xpose.msra.mxu0 %v3308_v34 }
0x1f08   : > { %8190 = vmatprep.subr.bf16.mxu0 %v8951_v1 }
0x1f0e   : > { %8181 = vmatmul.mubr.msk.bf16.vlgmr.msra.gmra.mrb[92].mxu0 %vm679_vm2, %v3302_v35 }
0x1f0f   : > { %8192 = vmatprep.mubr.msk.bf16.mxu0 %vm8952_vm0, %v8951_v1 }
0x1fe1   : > { %v3344_v30 = vpop.f32.mrb[92].mxu0 }
0x1fe2   : > { %v3345_v36 = vadd.f32 %v9596_v3, %v3344_v30  ;;  %v8182_v39 = vpop.f32.mrb[93].mxu0 }
0x1fe3   : > { %v3347_v40 = vpop.f32.mrb[94].mxu0 }
0x1fe4   : > { %v8183_v41 = vpop.f32.mrb[95].mxu0  ;;  %v3350_v42 = vsel %vm679_vm2, %v3345_v36, -inf }
0x1fe5   : > { %3351 = vmax.xlane.f32.xlu1 %v3350_v42 }
0x1ff6   : > { %3259 = vrot.lane.b32.xlu1 %v9530_v16, %s10618_s20  ;;  %v7256_v16 = vld [vmem:[%s10596_s7 + $0x1c] sm:$0xf] }
0x1ff7   : > { %v3417_v53 = vsel %vm748_vm3, %v7256_v16, 0 }
0x1ff8   : > { %8191 = vmatpush3.bf16.msra.mxu0 %v3417_v53 }
0x1ff9   : > { %8204 = vmatprep.subr.bf16.mxu0 %v8951_v1 }
0x2072   : > { %v3352_v43 = vpop.xlane.xlu1 %3351 }
0x2073   : > { %v3353_v44 = vsub.f32 %v3345_v36, %v3352_v43 }
0x2075   : > { %v3354_v45 = vmul.f32 1.442695, %v3353_v44  ;;  %v8721_v44 = vld [vmem:[%s10597_s8 + $0x10] sm:$0xff]  }
0x2076   : > { %v3260_v27 = vpop.permute.xlu1 %3259 }
0x2077   : > { %8831 = vpow2.f32 %v3354_v45  ;;  %v3297_v51 = vadd.f32 %v3296_v8, %v3260_v27  ;;  %v8722_v45 = vld [vmem:[%s10597_s8 + $0x18] sm:$0xff]   ;;  %v8723_v27 = vld [vmem:[%s10598_s9 + $0x40] sm:$0xff]  }
0x2079   : > { %v3363_v47 = vpack.c.bf16 %v3297_v51, %v3297_v51  ;;  %v8724_v51 = vld [vmem:[%s10598_s9 + $0x48] sm:$0xff]  }
0x207b   : > { %v3368_v50 = vsel %vm748_vm3, %v3363_v47, 0  ;;  %v8725_v47 = vld [vmem:[%s10598_s9 + $0x50] sm:$0xff]  }
0x207c   : > { %8185 = vmatpush3.bf16.msra.mxu1 %v3368_v50  ;;  %v8726_v50 = vld [vmem:[%s10598_s9 + $0x58] sm:$0xff]  }
0x207d   : > { %8196 = vmatprep.subr.bf16.mxu1 %v8951_v1 }
0x2081   : > { %v8832_v52 = vpop.eup %8831 }
0x2082   : > { %v3356_v4 = vsel %vm679_vm2, %v8832_v52, 0.0 }
0x2083   : > { %3357 = vadd.xlane.f32.xlu0 %v3356_v4  ;;  %v8728_v4 = vld [vmem:[%s10598_s9 + $0x68] sm:$0xff]  }
0x2110   : > { %v3358_v54 = vpop.xlane.xlu0 %3357 }
0x2111   : > { %8833 = vrcp.f32 %v3358_v54 }
0x211b   : > { %v8834_v55 = vpop.eup %8833 }
0x211c   : > { %v3360_v57 = vmul.f32 %v8834_v55, %v8832_v52  ;;  %v8727_v52 = vld [vmem:[%s10598_s9 + $0x60] sm:$0xff]   ;;  %v3506_v55 = vsub.s32 6, %v9128_v9 }
0x211e   : > { %v3361_v58 = vmul.f32 %v3360_v57, %v9198_v56  ;;  %v3511_v57 = vsub.s32 7, %v9128_v9  ;;  %v7528_v9 = vld [vmem:[%s10600_s11 + $0x3] ss:$0 sm:$0xff] }
0x2120   : > { %v3362_v59 = vpack.c.bf16 %v3361_v58, %v3361_v58  ;;  %v3507_v58 = vrot.slane %v9515_v46, %v3506_v55 }
0x2122   : > { %8187 = vmatmul.mubr.msk.bf16.vlgmr.msra.gmra.mrb[96].mxu1 %vm679_vm2, %v3362_v59 }
0x2123   : > { %8200 = vmatprep.mubr.msk.bf16.mxu1 %vm8952_vm0, %v8951_v1  ;;  %8197 = vmatpush3.bf16.msra.mxu1 %v8721_v44 }
0x2124   : > { %8198 = vmatprep.subr.bf16.mxu1 %v8951_v1 }
0x2127   : > { %8199 = vmatpush3.bf16.msra.mxu1 %v8722_v45 }
0x2128   : > { %8224 = vmatprep.subr.bf16.mxu1 %v8951_v1 }
0x21f5   : > { %v3404_v60 = vpop.f32.mrb[96].mxu1 }
0x21f6   : > { %v3410_v61 = vpack.c.bf16 %v3404_v60, %v3404_v60  ;;  %v8188_v62 = vpop.f32.mrb[97].mxu1 }
0x21f7   : > { %v3407_v63 = vpop.f32.mrb[98].mxu1 }
0x21f8   : > { %v8189_v0 = vpop.f32.mrb[99].mxu1  ;;  %8193 = vmatmul.mubr.msk.bf16.vlgmr.msra.gmra.mrb[96].mxu0 %vm679_vm2, %v3410_v61  ;;  %v3512_v61 = vrot.slane %v9515_v46, %v3511_v57  ;;  %v7258_v46 = vld [vmem:[%s10600_s11 + $0x1] ss:$0 sm:$0xff] }
0x21f9   : > { %8220 = vmatprep.mubr.msk.bf16.mxu0 %vm8952_vm0, %v8951_v1  ;;  %8205 = vmatpush3.bf16.msra.mxu0 %v8723_v27 }
0x21fa   : > { %8206 = vmatprep.subr.bf16.mxu0 %v8951_v1 }
0x21fd   : > { %8207 = vmatpush3.bf16.msra.mxu0 %v8724_v51  ;;  %v8733_v51 = vld [vmem:[%s10594_s5 + $0x80] sm:$0xff]  }
0x21fe   : > { %8208 = vmatprep.subr.bf16.mxu0 %v8951_v1 }
0x2201   : > { %8209 = vmatpush3.bf16.msra.mxu0 %v8725_v47 }
0x2202   : > { %8210 = vmatprep.subr.bf16.mxu0 %v8951_v1 }
0x2205   : > { %8211 = vmatpush3.bf16.msra.mxu0 %v8726_v50  ;;  %v8734_v50 = vld [vmem:[%s10594_s5 + $0x88] sm:$0xff]  }
0x2206   : > { %8212 = vmatprep.subr.bf16.mxu0 %v8951_v1 }
0x2209   : > { %8213 = vmatpush3.bf16.msra.mxu0 %v8727_v52  ;;  %v8735_v52 = vld [vmem:[%s10595_s6 + $0x80] sm:$0xff]  }
0x220a   : > { %8214 = vmatprep.subr.bf16.mxu0 %v8951_v1 }
0x220d   : > { %8215 = vmatpush3.bf16.msra.mxu0 %v8728_v4  ;;  %v8736_v4 = vld [vmem:[%s10595_s6 + $0x88] sm:$0xff]  }
0x220e   : > { %8216 = vmatprep.subr.bf16.mxu0 %v8951_v1 }
0x22cb   : > { %v3453_v5 = vpop.f32.mrb[96].mxu0 }
0x22cc   : > { %v3459_v6 = vadd.f32 %v3453_v5, %v3120_v19  ;;  %v8194_v7 = vpop.f32.mrb[97].mxu0  ;;  %v8730_v5 = vld [vmem:[%s10598_s9 + $0x78] sm:$0xff]  }
0x22cd   : > { %v3456_v8 = vpop.f32.mrb[98].mxu0 }
0x22ce   : > { %v3464_v10 = vadd.f32 %v3463_v2, %v3459_v6  ;;  %v8195_v11 = vpop.f32.mrb[99].mxu0  ;;  %v8729_v2 = vld [vmem:[%s10598_s9 + $0x70] sm:$0xff]  }
0x22cf   : > { %8217 = vmatpush3.bf16.msra.mxu0 %v8729_v2 }
0x22d0   : > { %v3465_v13 = vadd.f32 %v3464_v10, %v9478_v37  ;;  %v461_v37 = vld [vmem:[%s449_s26] sm:$0xf]  ;;  %8218 = vmatprep.subr.bf16.mxu0 %v8951_v1 }
0x22d1   : > { %v462_v28 = vunpack.c.l.bf16 %v461_v37 }
0x22d2   : > { %v3466_v15 = vsel %vm506_vm1, %v3465_v13, 0.0 }
0x22d3   : > { %3467 = vadd.xlane.f32.xlu1 %v3466_v15  ;;  %v9774_v35 = vmul.f32 %v9198_v56, %v462_v28  ;;  %8219 = vmatpush3.bf16.msra.mxu0 %v8730_v5 }
0x22d4   : > { %8254 = vmatprep.subr.bf16.mxu0 %v8951_v1 }
0x2360   : > { %v3468_v20 = vpop.xlane.xlu1 %3467 }
0x2361   : > { %v3469_v21 = vmul.f32 0.03125, %v3468_v20  ;;  %v7156_v20 = vld [vmem:[%s10599_s10 + $0x18] sm:$0x7] }
0x2363   : > { %v3470_v17 = vsub.f32 %v3465_v13, %v3469_v21  ;;  %v3581_v21 = vrot.slane %v7156_v20, %v9134_v14 }
0x2365   : > { %v3471_v18 = vmul.f32 %v3470_v17, %v3470_v17 }
0x2367   : > { %v3472_v23 = vsel %vm506_vm1, %v3471_v18, 0.0 }
0x2368   : > { %3473 = vadd.xlane.f32.xlu0 %v3472_v23 }
0x23f5   : > { %v3474_v25 = vpop.xlane.xlu0 %3473 }
0x23f6   : > { %v3475_v24 = vmul.f32 0.03125, %v3474_v25 }
0x23f8   : > { %v3476_v19 = vadd.f32 1e-05, %v3475_v24 }
0x23fa   : > { %8835 = vrsqrt.f32 %v3476_v19 }
0x2404   : > { %v8836_v31 = vpop.eup %8835 }
0x2405   : > { %v3478_v32 = vmul.f32 %v8836_v31, %v3470_v17 }
0x2407   : > { %v3483_v34 = vmul.f32 %v3482_v26, %v3478_v32 }
0x2409   : > { %v3488_v38 = vadd.f32 %v3487_v33, %v3483_v34 }
0x240b   : > { %v3490_v30 = vadd.f32 %v9774_v35, %v3488_v38  ;;  %v8731_v38 = vld [vmem:[%s10593_s4 + $0x80] sm:$0xff]  }
0x240d   : > { %v3491_v36 = vsel %vm506_vm1, %v3490_v30, 0.0 }
0x240e   : > { %3492 = vadd.xlane.f32.xlu0 %v3491_v36 }
0x249b   : > { %v3493_v39 = vpop.xlane.xlu0 %3492 }
0x249c   : > { %v3494_v40 = vmul.f32 0.03125, %v3493_v39 }
0x249e   : > { %v3495_v41 = vsub.f32 %v3490_v30, %v3494_v40  ;;  %v8732_v30 = vld [vmem:[%s10593_s4 + $0x88] sm:$0xff]  }
0x24a0   : > { %v3496_v42 = vmul.f32 %v3495_v41, %v3495_v41 }
0x24a2   : > { %v3497_v43 = vsel %vm506_vm1, %v3496_v42, 0.0 }
0x24a3   : > { %3498 = vadd.xlane.f32.xlu0 %v3497_v43  ;;  %v3693_v43 = vrot.slane %v7156_v20, %v9157_v29 }
0x2530   : > { %v3499_v16 = vpop.xlane.xlu0 %3498 }
0x2531   : > { %v3500_v53 = vmul.f32 0.03125, %v3499_v16  ;;  %v9885_v16 = vld [vmem:[%s10599_s10 + $0x20] sm:$0xff] }
0x2533   : > { %v3501_v54 = vadd.f32 1e-05, %v3500_v53  ;;  %v9889_v53 = vrot.slane %v9885_v16, %v9131_v12 }
0x2535   : > { %8837 = vrsqrt.f32 %v3501_v54  ;;  %4101 = vrot.lane.b32.xlu1 %v9889_v53, %s10616_s18 }
0x253f   : > { %v8838_v59 = vpop.eup %8837 }
0x2540   : > { %v3503_v60 = vmul.f32 %v8838_v59, %v3495_v41  ;;  %v3688_v41 = vrot.slane %v7156_v20, %v9131_v12 }
0x2542   : > { %v3508_v62 = vmul.f32 %v3507_v58, %v3503_v60 }
0x2544   : > { %v3513_v63 = vadd.f32 %v3512_v61, %v3508_v62  ;;  %v9895_v61 = vrot.slane %v9885_v16, %v9134_v14 }
0x2546   : > { %v3514_v0 = vpack.c.bf16 %v3513_v63, %v3513_v63 }
0x2548   : > { %8201 = vmatmul.mubr.msk.bf16.vlgmr.msra.gmra.mrb[100].mxu1 %vm506_vm1, %v3514_v0 }
0x2549   : > { %8228 = vmatprep.mubr.msk.bf16.mxu1 %vm8952_vm0, %v8951_v1  ;;  %8225 = vmatpush3.bf16.msra.mxu1 %v8731_v38 }
0x254a   : > { %8226 = vmatprep.subr.bf16.mxu1 %v8951_v1 }
0x254d   : > { %8227 = vmatpush3.bf16.msra.mxu1 %v8732_v30 }
0x254e   : > { %8232 = vmatprep.subr.bf16.mxu1 %v8951_v1 }
0x261b   : > { %v3570_v6 = vpop.f32.mrb[100].mxu1 }
0x261c   : > { %v3571_v7 = vadd.f32 %v7258_v46, %v3570_v6  ;;  %v8202_v8 = vpop.f32.mrb[101].mxu1 }
0x261d   : > { %v3573_v10 = vpop.f32.mrb[102].mxu1  ;;  %v9902_v8 = vrot.slane %v9885_v16, %v9157_v29 }
0x261e   : > { %v3576_v11 = vmax.f32 %v3571_v7, 0.0  ;;  %v8203_v13 = vpop.f32.mrb[103].mxu1 }
0x2620   : > { %v3577_v15 = vpack.c.bf16 %v3576_v11, %v3576_v11 }
0x2622   : > { %8221 = vmatmul.mubr.bf16.vlgmr.msra.gmra.mrb[100].mxu0 %v3577_v15 }
0x2623   : > { %8256 = vmatprep.mubr.msk.bf16.mxu0 %vm8952_vm0, %v8951_v1 }
0x26f5   : > { %v3664_v17 = vpop.f32.mrb[100].mxu0 }
0x26f6   : > { %v3665_v18 = vadd.f32 %v3664_v17, %v3581_v21  ;;  %v8222_v23 = vpop.f32.mrb[101].mxu0  ;;  %v8737_v21 = vld [vmem:[%s10593_s4 + $0x90] sm:$0xff]  }
0x26f7   : > { %v3667_v25 = vpop.f32.mrb[102].mxu0 }
0x26f8   : > { %v3670_v24 = vadd.f32 %v3665_v18, %v3513_v63  ;;  %v8223_v19 = vpop.f32.mrb[103].mxu0 }
0x26f9   : > { %v8739_v19 = vld [vmem:[%s10595_s6 + $0x90] sm:$0xff]  }
0x26fa   : > { %v3671_v37 = vmul.f32 %v3670_v24, %v9198_v56  ;;  %v8738_v24 = vld [vmem:[%s10593_s4 + $0x98] sm:$0xff]  }
0x26fc   : > { %v3672_v26 = vsel %vm506_vm1, %v3671_v37, 0.0 }
0x26fd   : > { %3673 = vadd.xlane.f32.xlu0 %v3672_v26 }
0x278a   : > { %v3674_v31 = vpop.xlane.xlu0 %3673 }
0x278b   : > { %v3675_v28 = vmul.f32 0.03125, %v3674_v31 }
0x278d   : > { %v3676_v32 = vsub.f32 %v3671_v37, %v3675_v28  ;;  %v8740_v37 = vld [vmem:[%s10595_s6 + $0x98] sm:$0xff]  }
0x278f   : > { %v3677_v33 = vmul.f32 %v3676_v32, %v3676_v32 }
0x2791   : > { %v3678_v34 = vsel %vm506_vm1, %v3677_v33, 0.0 }
0x2792   : > { %3679 = vadd.xlane.f32.xlu0 %v3678_v34 }
0x281f   : > { %v3680_v36 = vpop.xlane.xlu0 %3679 }
0x2820   : > { %v3681_v39 = vmul.f32 0.03125, %v3680_v36 }
0x2822   : > { %v3682_v40 = vadd.f32 1e-05, %v3681_v39 }
0x2824   : > { %8839 = vrsqrt.f32 %v3682_v40 }
0x282e   : > { %v8840_v42 = vpop.eup %8839 }
0x282f   : > { %v3684_v44 = vmul.f32 %v8840_v42, %v3676_v32 }
0x2831   : > { %v3689_v45 = vmul.f32 %v3688_v41, %v3684_v44 }
0x2833   : > { %v3694_v27 = vadd.f32 %v3693_v43, %v3689_v45 }
0x2835   : > { %v9855_v47 = vpack.c.bf16 %v3694_v27, %v3694_v27 }
0x2837   : > { %8229 = vmatmul.mubr.msk.bf16.vlgmr.msra.gmra.mrb[104].mxu1 %vm506_vm1, %v9855_v47 }
0x2838   : > { %8233 = vmatpush3.bf16.msra.mxu1 %v8733_v51  ;;  %8236 = vmatprep.mubr.msk.bf16.mxu1 %vm8952_vm0, %v8951_v1 }
0x2839   : > { %8234 = vmatprep.subr.bf16.mxu1 %v8951_v1 }
0x283c   : > { %8235 = vmatpush3.bf16.msra.mxu1 %v8734_v50 }
0x283d   : > { %8240 = vmatprep.subr.bf16.mxu1 %v8951_v1 }
0x283f   : > { %8237 = vmatmul.mubr.msk.bf16.vlgmr.msra.gmra.mrb[108].mxu1 %vm506_vm1, %v9855_v47 }
0x2840   : > { %8241 = vmatpush3.bf16.msra.mxu1 %v8735_v52  ;;  %8244 = vmatprep.mubr.msk.bf16.mxu1 %vm8952_vm0, %v8951_v1 }
0x2841   : > { %8242 = vmatprep.subr.bf16.mxu1 %v8951_v1 }
0x2844   : > { %8243 = vmatpush3.bf16.msra.mxu1 %v8736_v4 }
0x2845   : > { %8248 = vmatprep.subr.bf16.mxu1 %v8951_v1 }
0x2847   : > { %8245 = vmatmul.mubr.msk.bf16.vlgmr.msra.gmra.mrb[112].mxu1 %vm506_vm1, %v9855_v47 }
0x2848   : > { %8250 = vmatprep.mubr.msk.bf16.mxu1 %vm8952_vm0, %v8951_v1 }
0x290a   : > { %v3781_v54 = vpop.f32.mrb[104].mxu1 }
0x290b   : > { %v8230_v58 = vpop.f32.mrb[105].mxu1  ;;  %v3782_v5 = vadd.f32 %v3781_v54, %v9895_v61 }
0x290c   : > { %v3784_v59 = vpop.f32.mrb[106].mxu1 }
0x290d   : > { %v8231_v60 = vpop.f32.mrb[107].mxu1  ;;  %v3787_v10 = vmul.f32 0.35355338, %v3782_v5  ;;  %v8741_v59 = vld [vmem:[%s10594_s5 + $0x90] sm:$0xff]  }
0x290f   : > { %v3910_v17 = vpack.c.bf16 %v3787_v10, %v3787_v10 }
0x2912   : > { %v3843_v62 = vpop.f32.mrb[108].mxu1 }
0x2913   : > { %v3844_v63 = vadd.f32 %v3843_v62, %v9889_v53  ;;  %v8238_v0 = vpop.f32.mrb[109].mxu1  ;;  %v8742_v62 = vld [vmem:[%s10594_s5 + $0x98] sm:$0xff]  }
0x2914   : > { %v3846_v2 = vpop.f32.mrb[110].mxu1 }
0x2915   : > { %v3911_v46 = vpack.c.bf16 %v3844_v63, %v3844_v63  ;;  %v8239_v6 = vpop.f32.mrb[111].mxu1 }
0x2917   : > { %v3916_v7 = vsel %vm679_vm2, %v3911_v46, 0  ;;  %v4102_v46 = vpop.permute.xlu1 %4101 }
0x2918   : > { %8249 = vmatpush3.bf16.xpose.msra.mxu1 %v3916_v7 }
0x2919   : > { %8260 = vmatprep.subr.bf16.mxu1 %v8951_v1 }
0x291a   : > { %v3904_v11 = vpop.f32.mrb[112].mxu1 }
0x291b   : > { %v3905_v13 = vadd.f32 %v3904_v11, %v9902_v8  ;;  %v8246_v15 = vpop.f32.mrb[113].mxu1 }
0x291c   : > { %v3907_v20 = vpop.f32.mrb[114].mxu1 }
0x291d   : > { %v3971_v18 = vpack.c.bf16 %v3905_v13, %v3905_v13  ;;  %v8247_v23 = vpop.f32.mrb[115].mxu1 }
0x291f   : > { %v3976_v25 = vsel %vm748_vm3, %v3971_v18, 0  ;;  %8251 = vmatmul.mubr.msk.bf16.vlgmr.msra.gmra.mrb[116].mxu1 %vm679_vm2, %v3910_v17 }
0x2920   : > { %8255 = vmatpush3.bf16.msra.mxu0 %v3976_v25  ;;  %8261 = vmatpush3.bf16.msra.mxu1 %v8737_v21 }
0x2921   : > { %8262 = vmatprep.subr.bf16.mxu1 %v8951_v1  ;;  %8264 = vmatprep.mubr.msk.bf16.mxu1 %vm8952_vm0, %v8951_v1 }
0x2922   : > { %8268 = vmatprep.subr.bf16.mxu0 %v8951_v1 }
0x2924   : > { %8263 = vmatpush3.bf16.msra.mxu1 %v8738_v24 }
0x2925   : > { %8276 = vmatprep.subr.bf16.mxu1 %v8951_v1 }
0x2927   : > { %8265 = vmatmul.mubr.msk.bf16.vlgmr.msra.gmra.mrb[120].mxu1 %vm506_vm1, %v9855_v47 }
0x2928   : > { %8277 = vmatpush3.bf16.msra.mxu1 %v8739_v19  ;;  %8280 = vmatprep.mubr.msk.bf16.mxu1 %vm8952_vm0, %v8951_v1 }
0x2929   : > { %8278 = vmatprep.subr.bf16.mxu1 %v8951_v1 }
0x292c   : > { %8279 = vmatpush3.bf16.msra.mxu1 %v8740_v37 }
0x292d   : > { %8290 = vmatprep.subr.bf16.mxu1 %v8951_v1 }
0x292f   : > { %8281 = vmatmul.mubr.msk.bf16.vlgmr.msra.gmra.mrb[124].mxu1 %vm506_vm1, %v9855_v47 }
0x2930   : > { %8292 = vmatprep.mubr.msk.bf16.mxu1 %vm8952_vm0, %v8951_v1 }
0x29f2   : > { %v3952_v26 = vpop.f32.mrb[116].mxu1 }
0x29f3   : > { %v3953_v31 = vadd.f32 %v9596_v3, %v3952_v26  ;;  %v8252_v28 = vpop.f32.mrb[117].mxu1 }
0x29f4   : > { %v3955_v32 = vpop.f32.mrb[118].mxu1 }
0x29f5   : > { %v8253_v33 = vpop.f32.mrb[119].mxu1  ;;  %v3958_v34 = vsel %vm679_vm2, %v3953_v31, -inf }
0x29f6   : > { %3959 = vmax.xlane.f32.xlu0 %v3958_v34 }
0x29fa   : > { %v4076_v38 = vpop.f32.mrb[120].mxu1 }
0x29fb   : > { %v8266_v30 = vpop.f32.mrb[121].mxu1 }
0x29fc   : > { %v4079_v36 = vpop.f32.mrb[122].mxu1 }
0x29fd   : > { %v8267_v39 = vpop.f32.mrb[123].mxu1 }
0x2a02   : > { %v4199_v40 = vpop.f32.mrb[124].mxu1 }
0x2a03   : > { %v8282_v41 = vpop.f32.mrb[125].mxu1 }
0x2a04   : > { %v4202_v42 = vpop.f32.mrb[126].mxu1  ;;  %v7340_v41 = vld [vmem:[%s10596_s7 + $0x24] sm:$0xf] }
0x2a05   : > { %v8283_v43 = vpop.f32.mrb[127].mxu1  ;;  %v4320_v42 = vsel %vm748_vm3, %v7340_v41, 0 }
0x2a83   : > { %v3960_v44 = vpop.xlane.xlu0 %3959 }
0x2a84   : > { %v3961_v45 = vsub.f32 %v3953_v31, %v3960_v44 }
0x2a86   : > { %v3962_v27 = vmul.f32 1.442695, %v3961_v45  ;;  %v7316_v45 = vld [vmem:[%s10596_s7 + $0x20] sm:$0xf] }
0x2a88   : > { %8841 = vpow2.f32 %v3962_v27 }
0x2a92   : > { %v8842_v51 = vpop.eup %8841 }
0x2a93   : > { %v3964_v50 = vsel %vm679_vm2, %v8842_v51, 0.0 }
0x2a94   : > { %3965 = vadd.xlane.f32.xlu0 %v3964_v50  ;;  %v4366_v50 = vsel %vm748_vm3, %v7316_v45, 0 }
0x2aaa   : > { %4039 = vrot.lane.b32.xlu0 %v9895_v61, %s10616_s18 }
0x2b21   : > { %v3966_v52 = vpop.xlane.xlu0 %3965 }
0x2b22   : > { %8843 = vrcp.f32 %v3966_v52  ;;  %v8743_v52 = vld [vmem:[%s10594_s5 + $0xa0] sm:$0xff]  }
0x2b25   : > { %v4040_v6 = vpop.permute.xlu0 %4039 }
0x2b26   : > { %v4077_v15 = vadd.f32 %v4076_v38, %v4040_v6 }
0x2b28   : > { %v4082_v18 = vmul.f32 0.35355338, %v4077_v15 }
0x2b2a   : > { %v4205_v23 = vpack.c.bf16 %v4082_v18, %v4082_v18 }
0x2b2c   : > { %v8844_v4 = vpop.eup %8843 }
0x2b2d   : > { %v3968_v54 = vmul.f32 %v8844_v4, %v8842_v51 }
0x2b2f   : > { %v3969_v58 = vmul.f32 %v3968_v54, %v9198_v56  ;;  %v8744_v54 = vld [vmem:[%s10594_s5 + $0xa8] sm:$0xff]  }
0x2b31   : > { %v3970_v60 = vpack.c.bf16 %v3969_v58, %v3969_v58 }
0x2b33   : > { %8257 = vmatmul.mubr.msk.bf16.vlgmr.msra.gmra.mrb[104].mxu0 %vm679_vm2, %v3970_v60 }
0x2b34   : > { %8269 = vmatpush3.bf16.msra.mxu0 %v8741_v59  ;;  %8272 = vmatprep.mubr.msk.bf16.mxu0 %vm8952_vm0, %v8951_v1  ;;  %v8745_v59 = vld [vmem:[%s10593_s4 + $0xa0] sm:$0xff]  }
0x2b35   : > { %8270 = vmatprep.subr.bf16.mxu0 %v8951_v1 }
0x2b38   : > { %8271 = vmatpush3.bf16.msra.mxu0 %v8742_v62 }
0x2b39   : > { %8284 = vmatprep.subr.bf16.mxu0 %v8951_v1 }
0x2b3b   : > { %8273 = vmatmul.mubr.msk.bf16.vlgmr.msra.gmra.mrb[108].mxu0 %vm506_vm1, %v9855_v47 }
0x2b3c   : > { %8286 = vmatprep.mubr.msk.bf16.mxu0 %vm8952_vm0, %v8951_v1 }
0x2c06   : > { %v4012_v63 = vpop.f32.mrb[104].mxu0 }
0x2c07   : > { %v8258_v0 = vpop.f32.mrb[105].mxu0  ;;  %v4018_v4 = vpack.c.bf16 %v4012_v63, %v4012_v63 }
0x2c08   : > { %v4015_v2 = vpop.f32.mrb[106].mxu0 }
0x2c09   : > { %v8259_v5 = vpop.f32.mrb[107].mxu0  ;;  %v8746_v2 = vld [vmem:[%s10593_s4 + $0xa8] sm:$0xff]  }
0x2c0e   : > { %v4138_v7 = vpop.f32.mrb[108].mxu0 }
0x2c0f   : > { %v4139_v10 = vadd.f32 %v4138_v7, %v4102_v46  ;;  %v8274_v11 = vpop.f32.mrb[109].mxu0  ;;  %v8747_v46 = vld [vmem:[%s10595_s6 + $0xa0] sm:$0xff]  }
0x2c10   : > { %v4141_v13 = vpop.f32.mrb[110].mxu0  ;;  %v8748_v11 = vld [vmem:[%s10595_s6 + $0xa8] sm:$0xff]  }
0x2c11   : > { %v4206_v20 = vpack.c.bf16 %v4139_v10, %v4139_v10  ;;  %v8275_v21 = vpop.f32.mrb[111].mxu0 }
0x2c13   : > { %v4211_v17 = vsel %vm679_vm2, %v4206_v20, 0 }
0x2c14   : > { %8285 = vmatpush3.bf16.xpose.msra.mxu0 %v4211_v17 }
0x2c15   : > { %8296 = vmatprep.subr.bf16.mxu0 %v8951_v1 }
0x2c1b   : > { %8287 = vmatmul.mubr.msk.bf16.vlgmr.msra.gmra.mrb[112].mxu0 %vm679_vm2, %v4205_v23 }
0x2c1c   : > { %8298 = vmatprep.mubr.msk.bf16.mxu0 %vm8952_vm0, %v8951_v1  ;;  %8297 = vmatpush3.bf16.msra.mxu0 %v4320_v42 }
0x2c1d   : > { %8308 = vmatprep.subr.bf16.mxu0 %v8951_v1 }
0x2cee   : > { %v4247_v25 = vpop.f32.mrb[112].mxu0 }
0x2cef   : > { %v4248_v24 = vadd.f32 %v9596_v3, %v4247_v25  ;;  %v8288_v19 = vpop.f32.mrb[113].mxu0 }
0x2cf0   : > { %v4250_v37 = vpop.f32.mrb[114].mxu0 }
0x2cf1   : > { %v8289_v26 = vpop.f32.mrb[115].mxu0  ;;  %v4253_v31 = vsel %vm679_vm2, %v4248_v24, -inf }
0x2cf2   : > { %4254 = vmax.xlane.f32.xlu1 %v4253_v31 }
0x2d03   : > { %4162 = vrot.lane.b32.xlu1 %v9902_v8, %s10616_s18 }
0x2d07   : > { %4425 = vrot.lane.b32.xlu1 %v9895_v61, %s10617_s17 }
0x2d7f   : > { %v4255_v28 = vpop.xlane.xlu1 %4254 }
0x2d80   : > { %v4256_v32 = vsub.f32 %v4248_v24, %v4255_v28 }
0x2d82   : > { %v4257_v33 = vmul.f32 1.442695, %v4256_v32 }
0x2d83   : > { %v4163_v34 = vpop.permute.xlu1 %4162 }
0x2d84   : > { %8845 = vpow2.f32 %v4257_v33  ;;  %v4200_v38 = vadd.f32 %v4199_v40, %v4163_v34 }
0x2d86   : > { %v4266_v30 = vpack.c.bf16 %v4200_v38, %v4200_v38 }
0x2d87   : > { %v4426_v28 = vpop.permute.xlu1 %4425 }
0x2d88   : > { %v4271_v3 = vsel %vm748_vm3, %v4266_v30, 0 }
0x2d89   : > { %8291 = vmatpush3.bf16.msra.mxu1 %v4271_v3 }
0x2d8a   : > { %8302 = vmatprep.subr.bf16.mxu1 %v8951_v1 }
0x2d8e   : > { %v8846_v36 = vpop.eup %8845 }
0x2d8f   : > { %v4259_v39 = vsel %vm679_vm2, %v8846_v36, 0.0 }
0x2d90   : > { %4260 = vadd.xlane.f32.xlu0 %v4259_v39 }
0x2da6   : > { %4486 = vrot.lane.b32.xlu0 %v9889_v53, %s10617_s17 }
0x2e1d   : > { %v4261_v40 = vpop.xlane.xlu0 %4260 }
0x2e1e   : > { %8847 = vrcp.f32 %v4261_v40 }
0x2e21   : > { %v4487_v13 = vpop.permute.xlu0 %4486 }
0x2e28   : > { %v8848_v43 = vpop.eup %8847 }
0x2e29   : > { %v4263_v44 = vmul.f32 %v8848_v43, %v8846_v36 }
0x2e2b   : > { %v4264_v27 = vmul.f32 %v4263_v44, %v9198_v56  ;;  %v10036_v44 = vld [vmem:[%s9170_s29] ss:$0 sm:$0xff] }
0x2e2d   : > { %v4265_v51 = vpack.c.bf16 %v4264_v27, %v4264_v27 }
0x2e2f   : > { %8293 = vmatmul.mubr.msk.bf16.vlgmr.msra.gmra.mrb[128].mxu1 %vm679_vm2, %v4265_v51 }
0x2e30   : > { %8303 = vmatpush3.bf16.msra.mxu1 %v4366_v50  ;;  %8304 = vmatprep.mubr.msk.bf16.mxu1 %vm8952_vm0, %v8951_v1 }
0x2e31   : > { %8316 = vmatprep.subr.bf16.mxu1 %v8951_v1 }
0x2e37   : > { %8305 = vmatmul.mubr.msk.bf16.vlgmr.msra.gmra.mrb[132].mxu1 %vm679_vm2, %v4018_v4 }
0x2e38   : > { %8317 = vmatpush3.bf16.msra.mxu1 %v8743_v52  ;;  %8320 = vmatprep.mubr.msk.bf16.mxu1 %vm8952_vm0, %v8951_v1 }
0x2e39   : > { %8318 = vmatprep.subr.bf16.mxu1 %v8951_v1 }
0x2e3c   : > { %8319 = vmatpush3.bf16.msra.mxu1 %v8744_v54 }
0x2e3d   : > { %8332 = vmatprep.subr.bf16.mxu1 %v8951_v1 }
0x2e3f   : > { %8321 = vmatmul.mubr.msk.bf16.vlgmr.msra.gmra.mrb[136].mxu1 %vm506_vm1, %v9855_v47 }
0x2e40   : > { %8334 = vmatprep.mubr.msk.bf16.mxu1 %vm8952_vm0, %v8951_v1 }
0x2f02   : > { %v4307_v58 = vpop.f32.mrb[128].mxu1 }
0x2f03   : > { %v4313_v60 = vpack.c.bf16 %v4307_v58, %v4307_v58  ;;  %v8294_v62 = vpop.f32.mrb[129].mxu1 }
0x2f04   : > { %v4310_v63 = vpop.f32.mrb[130].mxu1  ;;  %v7366_v62 = vld [vmem:[%s10596_s7 + $0x28] sm:$0xf] }
0x2f05   : > { %v8295_v0 = vpop.f32.mrb[131].mxu1  ;;  %8299 = vmatmul.mubr.msk.bf16.vlgmr.msra.gmra.mrb[116].mxu0 %vm679_vm2, %v4313_v60 }
0x2f06   : > { %8309 = vmatpush3.bf16.msra.mxu0 %v8745_v59  ;;  %8312 = vmatprep.mubr.msk.bf16.mxu0 %vm8952_vm0, %v8951_v1 }
0x2f07   : > { %8310 = vmatprep.subr.bf16.mxu0 %v8951_v1 }
0x2f0a   : > { %v4402_v5 = vpop.f32.mrb[132].mxu1  ;;  %8311 = vmatpush3.bf16.msra.mxu0 %v8746_v2 }
0x2f0b   : > { %v8306_v6 = vpop.f32.mrb[133].mxu1  ;;  %8324 = vmatprep.subr.bf16.mxu0 %v8951_v1 }
0x2f0c   : > { %v4405_v7 = vpop.f32.mrb[134].mxu1 }
0x2f0d   : > { %v8307_v10 = vpop.f32.mrb[135].mxu1  ;;  %8313 = vmatmul.mubr.msk.bf16.vlgmr.msra.gmra.mrb[120].mxu0 %vm506_vm1, %v9855_v47 }
0x2f0e   : > { %8325 = vmatpush3.bf16.msra.mxu0 %v8747_v46  ;;  %8328 = vmatprep.mubr.msk.bf16.mxu0 %vm8952_vm0, %v8951_v1  ;;  %v8749_v10 = vld [vmem:[%s10593_s4 + $0xb0] sm:$0xff]  }
0x2f0f   : > { %8326 = vmatprep.subr.bf16.mxu0 %v8951_v1 }
0x2f12   : > { %v4523_v15 = vpop.f32.mrb[136].mxu1  ;;  %8327 = vmatpush3.bf16.msra.mxu0 %v8748_v11 }
0x2f13   : > { %v4524_v20 = vadd.f32 %v4523_v15, %v4487_v13  ;;  %v8322_v21 = vpop.f32.mrb[137].mxu1  ;;  %8338 = vmatprep.subr.bf16.mxu0 %v8951_v1  ;;  %v8750_v13 = vld [vmem:[%s10593_s4 + $0xb8] sm:$0xff]   ;;  %v8751_v15 = vld [vmem:[%s10595_s6 + $0xb0] sm:$0xff]  }
0x2f14   : > { %v4526_v17 = vpop.f32.mrb[138].mxu1 }
0x2f15   : > { %v4590_v18 = vpack.c.bf16 %v4524_v20, %v4524_v20  ;;  %v8323_v23 = vpop.f32.mrb[139].mxu1  ;;  %8329 = vmatmul.mubr.msk.bf16.vlgmr.msra.gmra.mrb[124].mxu0 %vm506_vm1, %v9855_v47  ;;  %v8752_v20 = vld [vmem:[%s10595_s6 + $0xb8] sm:$0xff]   ;;  %v8753_v17 = vld [vmem:[%s10594_s5 + $0xb0] sm:$0xff]  }
0x2f16   : > { %8340 = vmatprep.mubr.msk.bf16.mxu0 %vm8952_vm0, %v8951_v1 }
0x2f17   : > { %v4595_v25 = vsel %vm679_vm2, %v4590_v18, 0 }
0x2f18   : > { %8333 = vmatpush3.bf16.xpose.msra.mxu1 %v4595_v25 }
0x2f19   : > { %8344 = vmatprep.subr.bf16.mxu1 %v8951_v1 }
0x2fd8   : > { %v4356_v24 = vpop.f32.mrb[116].mxu0 }
0x2fd9   : > { %v10030_v19 = vadd.f32 %v4402_v5, %v4356_v24  ;;  %v8300_v37 = vpop.f32.mrb[117].mxu0 }
0x2fda   : > { %v4359_v26 = vpop.f32.mrb[118].mxu0  ;;  %v8754_v37 = vld [vmem:[%s10594_s5 + $0xb8] sm:$0xff]  }
0x2fdb   : > { %v8301_v31 = vpop.f32.mrb[119].mxu0 }
0x2fe0   : > { %v4462_v32 = vpop.f32.mrb[120].mxu0 }
0x2fe1   : > { %v4463_v33 = vadd.f32 %v4462_v32, %v4426_v28  ;;  %v8314_v34 = vpop.f32.mrb[121].mxu0 }
0x2fe2   : > { %v4465_v38 = vpop.f32.mrb[122].mxu0 }
0x2fe3   : > { %v4468_v30 = vmul.f32 0.35355338, %v4463_v33  ;;  %v8315_v3 = vpop.f32.mrb[123].mxu0 }
0x2fe5   : > { %v4589_v36 = vpack.c.bf16 %v4468_v30, %v4468_v30 }
0x2fe7   : > { %8335 = vmatmul.mubr.msk.bf16.vlgmr.msra.gmra.mrb[140].mxu1 %vm679_vm2, %v4589_v36 }
0x2fe8   : > { %v4583_v39 = vpop.f32.mrb[124].mxu0  ;;  %8346 = vmatprep.mubr.msk.bf16.mxu1 %vm8952_vm0, %v8951_v1 }
0x2fe9   : > { %v8330_v41 = vpop.f32.mrb[125].mxu0 }
0x2fea   : > { %v4586_v42 = vpop.f32.mrb[126].mxu0 }
0x2feb   : > { %v8331_v40 = vpop.f32.mrb[127].mxu0 }
0x30ba   : > { %v4631_v43 = vpop.f32.mrb[140].mxu1 }
0x30bb   : > { %v4632_v45 = vadd.f32 %v10036_v44, %v4631_v43  ;;  %v8336_v27 = vpop.f32.mrb[141].mxu1 }
0x30bc   : > { %v4634_v51 = vpop.f32.mrb[142].mxu1 }
0x30bd   : > { %v8337_v50 = vpop.f32.mrb[143].mxu1  ;;  %v4637_v52 = vsel %vm679_vm2, %v4632_v45, -inf }
0x30be   : > { %4638 = vmax.xlane.f32.xlu1 %v4637_v52 }
0x30cf   : > { %4825 = vrot.lane.b32.xlu1 %v9889_v53, %s10618_s20  ;;  %v4704_v53 = vsel %vm748_vm3, %v7366_v62, 0 }
0x30d0   : > { %8345 = vmatpush3.bf16.msra.mxu1 %v4704_v53 }
0x30d1   : > { %8358 = vmatprep.subr.bf16.mxu1 %v8951_v1 }
0x30d3   : > { %4764 = vrot.lane.b32.xlu1 %v9895_v61, %s10618_s20 }
0x314b   : > { %v4639_v4 = vpop.xlane.xlu1 %4638 }
0x314c   : > { %v4640_v54 = vsub.f32 %v4632_v45, %v4639_v4 }
0x314e   : > { %v4641_v58 = vmul.f32 1.442695, %v4640_v54 }
0x314f   : > { %v4826_v41 = vpop.permute.xlu1 %4825 }
0x3150   : > { %8849 = vpow2.f32 %v4641_v58 }
0x3153   : > { %v4765_v43 = vpop.permute.xlu1 %4764 }
0x315a   : > { %v8850_v59 = vpop.eup %8849 }
0x315b   : > { %v4643_v60 = vsel %vm679_vm2, %v8850_v59, 0.0 }
0x315c   : > { %4644 = vadd.xlane.f32.xlu0 %v4643_v60 }
0x3172   : > { %4546 = vrot.lane.b32.xlu0 %v9902_v8, %s10617_s17 }
0x31e9   : > { %v4645_v61 = vpop.xlane.xlu0 %4644 }
0x31ea   : > { %8851 = vrcp.f32 %v4645_v61 }
0x31ed   : > { %v4547_v63 = vpop.permute.xlu0 %4546 }
0x31ee   : > { %v4584_v0 = vadd.f32 %v4583_v39, %v4547_v63 }
0x31f0   : > { %v4650_v2 = vpack.c.bf16 %v4584_v0, %v4584_v0 }
0x31f2   : > { %v4655_v5 = vsel %vm748_vm3, %v4650_v2, 0 }
0x31f3   : > { %8339 = vmatpush3.bf16.msra.mxu0 %v4655_v5 }
0x31f4   : > { %v8852_v46 = vpop.eup %8851  ;;  %8350 = vmatprep.subr.bf16.mxu0 %v8951_v1 }
0x31f5   : > { %v4647_v6 = vmul.f32 %v8852_v46, %v8850_v59 }
0x31f7   : > { %v4648_v7 = vmul.f32 %v4647_v6, %v9198_v56 }
0x31f9   : > { %v4649_v11 = vpack.c.bf16 %v4648_v7, %v4648_v7  ;;  %v7391_v7 = vld [vmem:[%s10596_s7 + $0x2c] sm:$0xf] }
0x31fb   : > { %8341 = vmatmul.mubr.msk.bf16.vlgmr.msra.gmra.mrb[128].mxu0 %vm679_vm2, %v4649_v11 }
0x31fc   : > { %8351 = vmatpush3.bf16.msra.mxu0 %v8749_v10  ;;  %8354 = vmatprep.mubr.msk.bf16.mxu0 %vm8952_vm0, %v8951_v1  ;;  %v5043_v10 = vsel %vm748_vm3, %v7391_v7, 0 }
0x31fd   : > { %8352 = vmatprep.subr.bf16.mxu0 %v8951_v1 }
0x3200   : > { %8353 = vmatpush3.bf16.msra.mxu0 %v8750_v13 }
0x3201   : > { %8366 = vmatprep.subr.bf16.mxu0 %v8951_v1 }
0x3203   : > { %8355 = vmatmul.mubr.msk.bf16.vlgmr.msra.gmra.mrb[132].mxu0 %vm506_vm1, %v9855_v47 }
0x3204   : > { %8367 = vmatpush3.bf16.msra.mxu0 %v8751_v15  ;;  %8370 = vmatprep.mubr.msk.bf16.mxu0 %vm8952_vm0, %v8951_v1 }
0x3205   : > { %8368 = vmatprep.subr.bf16.mxu0 %v8951_v1 }
0x3208   : > { %8369 = vmatpush3.bf16.msra.mxu0 %v8752_v20 }
0x3209   : > { %8380 = vmatprep.subr.bf16.mxu0 %v8951_v1 }
0x320b   : > { %8371 = vmatmul.mubr.msk.bf16.vlgmr.msra.gmra.mrb[136].mxu0 %vm506_vm1, %v9855_v47 }
0x320c   : > { %8382 = vmatprep.mubr.msk.bf16.mxu0 %vm8952_vm0, %v8951_v1 }
0x32ce   : > { %v4691_v21 = vpop.f32.mrb[128].mxu0 }
0x32cf   : > { %v4697_v18 = vpack.c.bf16 %v4691_v21, %v4691_v21  ;;  %v8342_v23 = vpop.f32.mrb[129].mxu0 }
0x32d0   : > { %v4694_v25 = vpop.f32.mrb[130].mxu0 }
0x32d1   : > { %v8343_v24 = vpop.f32.mrb[131].mxu0  ;;  %8347 = vmatmul.mubr.msk.bf16.vlgmr.msra.gmra.mrb[144].mxu1 %vm679_vm2, %v4697_v18 }
0x32d2   : > { %8359 = vmatpush3.bf16.msra.mxu1 %v8753_v17  ;;  %8362 = vmatprep.mubr.msk.bf16.mxu1 %vm8952_vm0, %v8951_v1 }
0x32d3   : > { %8360 = vmatprep.subr.bf16.mxu1 %v8951_v1 }
0x32d6   : > { %v4801_v26 = vpop.f32.mrb[132].mxu0  ;;  %8361 = vmatpush3.bf16.msra.mxu1 %v8754_v37 }
0x32d7   : > { %v8356_v31 = vpop.f32.mrb[133].mxu0  ;;  %8374 = vmatprep.subr.bf16.mxu1 %v8951_v1 }
0x32d8   : > { %v4804_v28 = vpop.f32.mrb[134].mxu0 }
0x32d9   : > { %v8357_v32 = vpop.f32.mrb[135].mxu0  ;;  %8363 = vmatmul.mubr.msk.bf16.vlgmr.msra.gmra.mrb[148].mxu1 %vm506_vm1, %v9855_v47  ;;  %v4802_v47 = vadd.f32 %v4801_v26, %v4765_v43  ;;  %v5089_v28 = vrot.slane %v9885_v16, %v9396_v22 }
0x32da   : > { %8376 = vmatprep.mubr.msk.bf16.mxu1 %vm8952_vm0, %v8951_v1 }
0x32db   : > { %v4807_v58 = vmul.f32 0.35355338, %v4802_v47  ;;  %v8759_v47 = vld [vmem:[%s10598_s9 + $0x90] sm:$0xff]  }
0x32dd   : > { %v4928_v59 = vpack.c.bf16 %v4807_v58, %v4807_v58 }
0x32de   : > { %v4922_v33 = vpop.f32.mrb[136].mxu0 }
0x32df   : > { %v8372_v34 = vpop.f32.mrb[137].mxu0 }
0x32e0   : > { %v4925_v38 = vpop.f32.mrb[138].mxu0 }
0x32e1   : > { %v8373_v30 = vpop.f32.mrb[139].mxu0 }
0x33a4   : > { %v4740_v3 = vpop.f32.mrb[144].mxu1 }
0x33a5   : > { %v4746_v36 = vadd.f32 %v4740_v3, %v10030_v19  ;;  %v8348_v39 = vpop.f32.mrb[145].mxu1 }
0x33a6   : > { %v4743_v42 = vpop.f32.mrb[146].mxu1 }
0x33a7   : > { %v8349_v40 = vpop.f32.mrb[147].mxu1 }
0x33ac   : > { %v4862_v45 = vpop.f32.mrb[148].mxu1 }
0x33ad   : > { %v4863_v27 = vadd.f32 %v4862_v45, %v4826_v41  ;;  %v8364_v51 = vpop.f32.mrb[149].mxu1 }
0x33ae   : > { %v4865_v50 = vpop.f32.mrb[150].mxu1  ;;  %v8757_v51 = vld [vmem:[%s10598_s9 + $0x80] sm:$0xff]  }
0x33af   : > { %v4929_v52 = vpack.c.bf16 %v4863_v27, %v4863_v27  ;;  %v8365_v4 = vpop.f32.mrb[151].mxu1  ;;  %v8755_v27 = vld [vmem:[%s10597_s8 + $0x20] sm:$0xff]   ;;  %v8758_v50 = vld [vmem:[%s10598_s9 + $0x88] sm:$0xff]  }
0x33b0   : > { %v8761_v4 = vld [vmem:[%s10598_s9 + $0xa0] sm:$0xff]  }
0x33b1   : > { %v4934_v54 = vsel %vm679_vm2, %v4929_v52, 0  ;;  %v8760_v52 = vld [vmem:[%s10598_s9 + $0x98] sm:$0xff]  }
0x33b2   : > { %8375 = vmatpush3.bf16.xpose.msra.mxu1 %v4934_v54  ;;  %v8762_v54 = vld [vmem:[%s10598_s9 + $0xa8] sm:$0xff]  }
0x33b3   : > { %8386 = vmatprep.subr.bf16.mxu1 %v8951_v1 }
0x33b9   : > { %8377 = vmatmul.mubr.msk.bf16.vlgmr.msra.gmra.mrb[152].mxu1 %vm679_vm2, %v4928_v59 }
0x33ba   : > { %8388 = vmatprep.mubr.msk.bf16.mxu1 %vm8952_vm0, %v8951_v1  ;;  %8387 = vmatpush3.bf16.msra.mxu1 %v5043_v10 }
0x33bb   : > { %8400 = vmatprep.subr.bf16.mxu1 %v8951_v1 }
0x348c   : > { %v4970_v19 = vpop.f32.mrb[152].mxu1 }
0x348d   : > { %v4971_v60 = vadd.f32 %v10036_v44, %v4970_v19  ;;  %v8378_v62 = vpop.f32.mrb[153].mxu1 }
0x348e   : > { %v4973_v53 = vpop.f32.mrb[154].mxu1 }
0x348f   : > { %v8379_v61 = vpop.f32.mrb[155].mxu1  ;;  %v4976_v63 = vsel %vm679_vm2, %v4971_v60, -inf }
0x3490   : > { %4977 = vmax.xlane.f32.xlu1 %v4976_v63  ;;  %v5112_v61 = vrot.slane %v9885_v16, %v9439_v49 }
0x351d   : > { %v4978_v0 = vpop.xlane.xlu1 %4977 }
0x351e   : > { %v4979_v2 = vsub.f32 %v4971_v60, %v4978_v0  ;;  %v5107_v60 = vrot.slane %v9885_v16, %v9436_v48  ;;  %v7393_v16 = vld [vmem:[%s10600_s11 + $0x2] ss:$0 sm:$0xff] }
0x3520   : > { %v4980_v5 = vmul.f32 1.442695, %v4979_v2 }
0x3522   : > { %8853 = vpow2.f32 %v4980_v5  ;;  %v8763_v5 = vld [vmem:[%s10598_s9 + $0xb0] sm:$0xff]  }
0x352c   : > { %v8854_v46 = vpop.eup %8853 }
0x352d   : > { %v4982_v6 = vsel %vm679_vm2, %v8854_v46, 0.0 }
0x352e   : > { %4983 = vadd.xlane.f32.xlu0 %v4982_v6 }
0x3544   : > { %4885 = vrot.lane.b32.xlu0 %v9902_v8, %s10618_s20 }
0x35bb   : > { %v4984_v11 = vpop.xlane.xlu0 %4983 }
0x35bc   : > { %8855 = vrcp.f32 %v4984_v11 }
0x35bf   : > { %v4886_v13 = vpop.permute.xlu0 %4885 }
0x35c0   : > { %v4923_v15 = vadd.f32 %v4922_v33, %v4886_v13 }
0x35c2   : > { %v4989_v20 = vpack.c.bf16 %v4923_v15, %v4923_v15 }
0x35c4   : > { %v4994_v21 = vsel %vm748_vm3, %v4989_v20, 0 }
0x35c5   : > { %8381 = vmatpush3.bf16.msra.mxu0 %v4994_v21  ;;  %v7291_v21 = vld [vmem:[%s10599_s10 + $0x28] sm:$0x7] }
0x35c6   : > { %v8856_v17 = vpop.eup %8855  ;;  %8392 = vmatprep.subr.bf16.mxu0 %v8951_v1 }
0x35c7   : > { %v4986_v8 = vmul.f32 %v8856_v17, %v8854_v46  ;;  %v8764_v46 = vld [vmem:[%s10598_s9 + $0xb8] sm:$0xff]   ;;  %v5181_v17 = vrot.slane %v7291_v21, %v9134_v14 }
0x35c9   : > { %v4987_v18 = vmul.f32 %v4986_v8, %v9198_v56 }
0x35cb   : > { %v4988_v23 = vpack.c.bf16 %v4987_v18, %v4987_v18 }
0x35cd   : > { %8383 = vmatmul.mubr.msk.bf16.vlgmr.msra.gmra.mrb[140].mxu0 %vm679_vm2, %v4988_v23 }
0x35ce   : > { %8396 = vmatprep.mubr.msk.bf16.mxu0 %vm8952_vm0, %v8951_v1  ;;  %8393 = vmatpush3.bf16.msra.mxu0 %v8755_v27 }
0x35cf   : > { %8394 = vmatprep.subr.bf16.mxu0 %v8951_v1 }
0x36a0   : > { %v5030_v25 = vpop.f32.mrb[140].mxu0 }
0x36a1   : > { %v5036_v24 = vpack.c.bf16 %v5030_v25, %v5030_v25  ;;  %v8384_v37 = vpop.f32.mrb[141].mxu0 }
0x36a2   : > { %v5033_v26 = vpop.f32.mrb[142].mxu0 }
0x36a3   : > { %v8385_v31 = vpop.f32.mrb[143].mxu0  ;;  %8389 = vmatmul.mubr.msk.bf16.vlgmr.msra.gmra.mrb[156].mxu1 %vm679_vm2, %v5036_v24 }
0x36a4   : > { %8416 = vmatprep.mubr.msk.bf16.mxu1 %vm8952_vm0, %v8951_v1  ;;  %8401 = vmatpush3.bf16.msra.mxu1 %v8757_v51 }
0x36a5   : > { %8402 = vmatprep.subr.bf16.mxu1 %v8951_v1 }
0x36a8   : > { %8403 = vmatpush3.bf16.msra.mxu1 %v8758_v50  ;;  %v8767_v50 = vld [vmem:[%s10594_s5 + $0xc0] sm:$0xff]  }
0x36a9   : > { %8404 = vmatprep.subr.bf16.mxu1 %v8951_v1 }
0x36ac   : > { %8405 = vmatpush3.bf16.msra.mxu1 %v8759_v47 }
0x36ad   : > { %8406 = vmatprep.subr.bf16.mxu1 %v8951_v1 }
0x36b0   : > { %8407 = vmatpush3.bf16.msra.mxu1 %v8760_v52  ;;  %v8768_v52 = vld [vmem:[%s10594_s5 + $0xc8] sm:$0xff]  }
0x36b1   : > { %8408 = vmatprep.subr.bf16.mxu1 %v8951_v1 }
0x36b4   : > { %8409 = vmatpush3.bf16.msra.mxu1 %v8761_v4  ;;  %v8769_v4 = vld [vmem:[%s10595_s6 + $0xc0] sm:$0xff]  }
0x36b5   : > { %8410 = vmatprep.subr.bf16.mxu1 %v8951_v1 }
0x36b8   : > { %8411 = vmatpush3.bf16.msra.mxu1 %v8762_v54  ;;  %v8770_v54 = vld [vmem:[%s10595_s6 + $0xc8] sm:$0xff]  }
0x36b9   : > { %8412 = vmatprep.subr.bf16.mxu1 %v8951_v1 }
0x36bc   : > { %8413 = vmatpush3.bf16.msra.mxu1 %v8763_v5 }
0x36bd   : > { %8414 = vmatprep.subr.bf16.mxu1 %v8951_v1 }
0x36c0   : > { %8415 = vmatpush3.bf16.msra.mxu1 %v8764_v46 }
0x36c1   : > { %8450 = vmatprep.subr.bf16.mxu1 %v8951_v1 }
0x3776   : > { %v5079_v32 = vpop.f32.mrb[156].mxu1 }
0x3777   : > { %v5085_v33 = vadd.f32 %v5079_v32, %v4746_v36  ;;  %v8390_v34 = vpop.f32.mrb[157].mxu1  ;;  %v8756_v36 = vld [vmem:[%s10597_s8 + $0x28] sm:$0xff]  }
0x3778   : > { %v5082_v38 = vpop.f32.mrb[158].mxu1  ;;  %8395 = vmatpush3.bf16.msra.mxu0 %v8756_v36 }
0x3779   : > { %v8391_v30 = vpop.f32.mrb[159].mxu1  ;;  %v5090_v3 = vadd.f32 %v5089_v28, %v5085_v33  ;;  %8420 = vmatprep.subr.bf16.mxu0 %v8951_v1 }
0x377a   : > { %v8765_v30 = vld [vmem:[%s10593_s4 + $0xc0] sm:$0xff]  }
0x377b   : > { %v5091_v39 = vsel %vm506_vm1, %v5090_v3, 0.0 }
0x377c   : > { %5092 = vadd.xlane.f32.xlu1 %v5091_v39 }
0x3809   : > { %v5093_v41 = vpop.xlane.xlu1 %5092 }
0x380a   : > { %v5094_v42 = vmul.f32 0.03125, %v5093_v41 }
0x380c   : > { %v5095_v40 = vsub.f32 %v5090_v3, %v5094_v42  ;;  %v8766_v3 = vld [vmem:[%s10593_s4 + $0xc8] sm:$0xff]  }
0x380e   : > { %v5096_v43 = vmul.f32 %v5095_v40, %v5095_v40 }
0x3810   : > { %v5097_v45 = vsel %vm506_vm1, %v5096_v43, 0.0 }
0x3811   : > { %5098 = vadd.xlane.f32.xlu1 %v5097_v45  ;;  %v5293_v45 = vrot.slane %v7291_v21, %v9157_v29 }
0x389e   : > { %v5099_v58 = vpop.xlane.xlu1 %5098 }
0x389f   : > { %v5100_v59 = vmul.f32 0.03125, %v5099_v58 }
0x38a1   : > { %v5101_v19 = vadd.f32 1e-05, %v5100_v59 }
0x38a3   : > { %8857 = vrsqrt.f32 %v5101_v19 }
0x38ad   : > { %v8858_v62 = vpop.eup %8857 }
0x38ae   : > { %v5103_v53 = vmul.f32 %v8858_v62, %v5095_v40  ;;  %v5288_v40 = vrot.slane %v7291_v21, %v9131_v12  ;;  %v10232_v62 = vld [vmem:[%s10599_s10 + $0x30] sm:$0xff] }
0x38b0   : > { %v5108_v63 = vmul.f32 %v5107_v60, %v5103_v53  ;;  %v10236_v53 = vrot.slane %v10232_v62, %v9131_v12 }
0x38b2   : > { %v5113_v0 = vadd.f32 %v5112_v61, %v5108_v63  ;;  %v10240_v61 = vrot.slane %v10232_v62, %v9134_v14 }
0x38b4   : > { %v5114_v2 = vpack.c.bf16 %v5113_v0, %v5113_v0 }
0x38b6   : > { %8397 = vmatmul.mubr.msk.bf16.vlgmr.msra.gmra.mrb[144].mxu0 %vm506_vm1, %v5114_v2 }
0x38b7   : > { %8424 = vmatprep.mubr.msk.bf16.mxu0 %vm8952_vm0, %v8951_v1  ;;  %8421 = vmatpush3.bf16.msra.mxu0 %v8765_v30 }
0x38b8   : > { %8422 = vmatprep.subr.bf16.mxu0 %v8951_v1 }
0x38bb   : > { %8423 = vmatpush3.bf16.msra.mxu0 %v8766_v3 }
0x38bc   : > { %8428 = vmatprep.subr.bf16.mxu0 %v8951_v1 }
0x3989   : > { %v5170_v6 = vpop.f32.mrb[144].mxu0 }
0x398a   : > { %v5171_v7 = vadd.f32 %v7393_v16, %v5170_v6  ;;  %v8398_v10 = vpop.f32.mrb[145].mxu0 }
0x398b   : > { %v5173_v11 = vpop.f32.mrb[146].mxu0  ;;  %v10247_v10 = vrot.slane %v10232_v62, %v9157_v29 }
0x398c   : > { %v5176_v13 = vmax.f32 %v5171_v7, 0.0  ;;  %v8399_v15 = vpop.f32.mrb[147].mxu0 }
0x398e   : > { %v5177_v20 = vpack.c.bf16 %v5176_v13, %v5176_v13 }
0x3990   : > { %8417 = vmatmul.mubr.bf16.vlgmr.msra.gmra.mrb[160].mxu1 %v5177_v20 }
0x3991   : > { %8452 = vmatprep.mubr.msk.bf16.mxu1 %vm8952_vm0, %v8951_v1 }
0x3a63   : > { %v5264_v8 = vpop.f32.mrb[160].mxu1 }
0x3a64   : > { %v5265_v18 = vadd.f32 %v5264_v8, %v5181_v17  ;;  %v8418_v23 = vpop.f32.mrb[161].mxu1  ;;  %v8771_v17 = vld [vmem:[%s10593_s4 + $0xd0] sm:$0xff]  }
0x3a65   : > { %v5267_v25 = vpop.f32.mrb[162].mxu1 }
0x3a66   : > { %v5270_v24 = vadd.f32 %v5265_v18, %v5113_v0  ;;  %v8419_v37 = vpop.f32.mrb[163].mxu1 }
0x3a67   : > { %v8773_v37 = vld [vmem:[%s10595_s6 + $0xd0] sm:$0xff]  }
0x3a68   : > { %v5271_v26 = vmul.f32 %v5270_v24, %v9198_v56  ;;  %v8772_v24 = vld [vmem:[%s10593_s4 + $0xd8] sm:$0xff]  }
0x3a6a   : > { %v5272_v31 = vsel %vm506_vm1, %v5271_v26, 0.0 }
0x3a6b   : > { %5273 = vadd.xlane.f32.xlu1 %v5272_v31 }
0x3af8   : > { %v5274_v28 = vpop.xlane.xlu1 %5273 }
0x3af9   : > { %v5275_v32 = vmul.f32 0.03125, %v5274_v28 }
0x3afb   : > { %v5276_v33 = vsub.f32 %v5271_v26, %v5275_v32  ;;  %v8774_v26 = vld [vmem:[%s10595_s6 + $0xd8] sm:$0xff]  }
0x3afd   : > { %v5277_v34 = vmul.f32 %v5276_v33, %v5276_v33 }
0x3aff   : > { %v5278_v38 = vsel %vm506_vm1, %v5277_v34, 0.0 }
0x3b00   : > { %5279 = vadd.xlane.f32.xlu1 %v5278_v38 }
0x3b8d   : > { %v5280_v39 = vpop.xlane.xlu1 %5279 }
0x3b8e   : > { %v5281_v41 = vmul.f32 0.03125, %v5280_v39 }
0x3b90   : > { %v5282_v42 = vadd.f32 1e-05, %v5281_v41 }
0x3b92   : > { %8859 = vrsqrt.f32 %v5282_v42 }
0x3b9c   : > { %v8860_v43 = vpop.eup %8859 }
0x3b9d   : > { %v5284_v27 = vmul.f32 %v8860_v43, %v5276_v33 }
0x3b9f   : > { %v5289_v36 = vmul.f32 %v5288_v40, %v5284_v27 }
0x3ba1   : > { %v10195_v51 = vadd.f32 %v5293_v45, %v5289_v36 }
0x3ba3   : > { %v10202_v47 = vpack.c.bf16 %v10195_v51, %v10195_v51 }
0x3ba5   : > { %8425 = vmatmul.mubr.msk.bf16.vlgmr.msra.gmra.mrb[148].mxu0 %vm506_vm1, %v10202_v47 }
0x3ba6   : > { %8429 = vmatpush3.bf16.msra.mxu0 %v8767_v50  ;;  %8432 = vmatprep.mubr.msk.bf16.mxu0 %vm8952_vm0, %v8951_v1 }
0x3ba7   : > { %8430 = vmatprep.subr.bf16.mxu0 %v8951_v1 }
0x3baa   : > { %8431 = vmatpush3.bf16.msra.mxu0 %v8768_v52 }
0x3bab   : > { %8436 = vmatprep.subr.bf16.mxu0 %v8951_v1 }
0x3bad   : > { %8433 = vmatmul.mubr.msk.bf16.vlgmr.msra.gmra.mrb[152].mxu0 %vm506_vm1, %v10202_v47 }
0x3bae   : > { %8437 = vmatpush3.bf16.msra.mxu0 %v8769_v4  ;;  %8440 = vmatprep.mubr.msk.bf16.mxu0 %vm8952_vm0, %v8951_v1 }
0x3baf   : > { %8438 = vmatprep.subr.bf16.mxu0 %v8951_v1 }
0x3bb2   : > { %8439 = vmatpush3.bf16.msra.mxu0 %v8770_v54 }
0x3bb3   : > { %8444 = vmatprep.subr.bf16.mxu0 %v8951_v1 }
0x3bb5   : > { %8441 = vmatmul.mubr.msk.bf16.vlgmr.msra.gmra.mrb[156].mxu0 %vm506_vm1, %v10202_v47 }
0x3bb6   : > { %8446 = vmatprep.mubr.msk.bf16.mxu0 %vm8952_vm0, %v8951_v1 }
0x3c78   : > { %v5381_v58 = vpop.f32.mrb[148].mxu0 }
0x3c79   : > { %v8426_v59 = vpop.f32.mrb[149].mxu0  ;;  %v5382_v46 = vadd.f32 %v5381_v58, %v10240_v61 }
0x3c7a   : > { %v5384_v19 = vpop.f32.mrb[150].mxu0 }
0x3c7b   : > { %v8427_v60 = vpop.f32.mrb[151].mxu0  ;;  %v5387_v11 = vmul.f32 0.35355338, %v5382_v46 }
0x3c7c   : > { %v8775_v60 = vld [vmem:[%s10594_s5 + $0xd0] sm:$0xff]  }
0x3c7d   : > { %v5510_v8 = vpack.c.bf16 %v5387_v11, %v5387_v11 }
0x3c80   : > { %v5443_v63 = vpop.f32.mrb[152].mxu0 }
0x3c81   : > { %v5444_v0 = vadd.f32 %v5443_v63, %v10236_v53  ;;  %v8434_v2 = vpop.f32.mrb[153].mxu0 }
0x3c82   : > { %v5446_v5 = vpop.f32.mrb[154].mxu0 }
0x3c83   : > { %v5511_v16 = vpack.c.bf16 %v5444_v0, %v5444_v0  ;;  %v8435_v6 = vpop.f32.mrb[155].mxu0  ;;  %v8776_v0 = vld [vmem:[%s10594_s5 + $0xd8] sm:$0xff]  }
0x3c85   : > { %v5516_v7 = vsel %vm679_vm2, %v5511_v16, 0 }
0x3c86   : > { %8445 = vmatpush3.bf16.xpose.msra.mxu0 %v5516_v7 }
0x3c87   : > { %8456 = vmatprep.subr.bf16.mxu0 %v8951_v1 }
0x3c88   : > { %v5504_v13 = vpop.f32.mrb[156].mxu0 }
0x3c89   : > { %v5505_v15 = vadd.f32 %v5504_v13, %v10247_v10  ;;  %v8442_v20 = vpop.f32.mrb[157].mxu0 }
0x3c8a   : > { %v5507_v21 = vpop.f32.mrb[158].mxu0 }
0x3c8b   : > { %v5571_v18 = vpack.c.bf16 %v5505_v15, %v5505_v15  ;;  %v8443_v23 = vpop.f32.mrb[159].mxu0 }
0x3c8d   : > { %v5576_v25 = vsel %vm748_vm3, %v5571_v18, 0  ;;  %8447 = vmatmul.mubr.msk.bf16.vlgmr.msra.gmra.mrb[160].mxu0 %vm679_vm2, %v5510_v8 }
0x3c8e   : > { %8451 = vmatpush3.bf16.msra.mxu1 %v5576_v25  ;;  %8457 = vmatpush3.bf16.msra.mxu0 %v8771_v17 }
0x3c8f   : > { %8458 = vmatprep.subr.bf16.mxu0 %v8951_v1  ;;  %8460 = vmatprep.mubr.msk.bf16.mxu0 %vm8952_vm0, %v8951_v1 }
0x3c90   : > { %8464 = vmatprep.subr.bf16.mxu1 %v8951_v1 }
0x3c92   : > { %8459 = vmatpush3.bf16.msra.mxu0 %v8772_v24 }
0x3c93   : > { %8472 = vmatprep.subr.bf16.mxu0 %v8951_v1 }
0x3c95   : > { %8461 = vmatmul.mubr.msk.bf16.vlgmr.msra.gmra.mrb[164].mxu0 %vm506_vm1, %v10202_v47 }
0x3c96   : > { %8473 = vmatpush3.bf16.msra.mxu0 %v8773_v37  ;;  %8476 = vmatprep.mubr.msk.bf16.mxu0 %vm8952_vm0, %v8951_v1 }
0x3c97   : > { %8474 = vmatprep.subr.bf16.mxu0 %v8951_v1 }
0x3c9a   : > { %8475 = vmatpush3.bf16.msra.mxu0 %v8774_v26 }
0x3c9b   : > { %8486 = vmatprep.subr.bf16.mxu0 %v8951_v1 }
0x3c9d   : > { %8477 = vmatmul.mubr.msk.bf16.vlgmr.msra.gmra.mrb[168].mxu0 %vm506_vm1, %v10202_v47 }
0x3c9e   : > { %8488 = vmatprep.mubr.msk.bf16.mxu0 %vm8952_vm0, %v8951_v1 }
0x3d60   : > { %v5552_v31 = vpop.f32.mrb[160].mxu0 }
0x3d61   : > { %v5553_v28 = vadd.f32 %v10036_v44, %v5552_v31  ;;  %v8448_v32 = vpop.f32.mrb[161].mxu0 }
0x3d62   : > { %v5555_v33 = vpop.f32.mrb[162].mxu0 }
0x3d63   : > { %v8449_v34 = vpop.f32.mrb[163].mxu0  ;;  %v5558_v38 = vsel %vm679_vm2, %v5553_v28, -inf }
0x3d64   : > { %5559 = vmax.xlane.f32.xlu1 %v5558_v38 }
0x3d68   : > { %v5676_v30 = vpop.f32.mrb[164].mxu0 }
0x3d69   : > { %v8462_v3 = vpop.f32.mrb[165].mxu0 }
0x3d6a   : > { %v5679_v39 = vpop.f32.mrb[166].mxu0 }
0x3d6b   : > { %v8463_v41 = vpop.f32.mrb[167].mxu0  ;;  %v7475_v39 = vld [vmem:[%s10596_s7 + $0x34] sm:$0xf] }
0x3d6c   : > { %v5920_v41 = vsel %vm748_vm3, %v7475_v39, 0 }
0x3d70   : > { %v10282_v42 = vpop.f32.mrb[168].mxu0 }
0x3d71   : > { %v8478_v40 = vpop.f32.mrb[169].mxu0 }
0x3d72   : > { %v5802_v43 = vpop.f32.mrb[170].mxu0 }
0x3d73   : > { %v8479_v45 = vpop.f32.mrb[171].mxu0 }
0x3d75   : > { %5701 = vrot.lane.b32.xlu1 %v10236_v53, %s10616_s18 }
0x3d79   : > { %5639 = vrot.lane.b32.xlu1 %v10240_v61, %s10616_s18 }
0x3df1   : > { %v5560_v27 = vpop.xlane.xlu1 %5559 }
0x3df2   : > { %v5561_v36 = vsub.f32 %v5553_v28, %v5560_v27 }
0x3df4   : > { %v5562_v50 = vmul.f32 1.442695, %v5561_v36 }
0x3df5   : > { %v5702_v46 = vpop.permute.xlu1 %5701 }
0x3df6   : > { %8861 = vpow2.f32 %v5562_v50 }
0x3df9   : > { %v5640_v7 = vpop.permute.xlu1 %5639 }
0x3dfa   : > { %v5677_v21 = vadd.f32 %v5676_v30, %v5640_v7 }
0x3dfc   : > { %v5682_v23 = vmul.f32 0.35355338, %v5677_v21  ;;  %v8782_v21 = vld [vmem:[%s10595_s6 + $0xe8] sm:$0xff]  }
0x3dfe   : > { %v5805_v25 = vpack.c.bf16 %v5682_v23, %v5682_v23 }
0x3e00   : > { %v8862_v52 = vpop.eup %8861 }
0x3e01   : > { %v5564_v4 = vsel %vm679_vm2, %v8862_v52, 0.0 }
0x3e02   : > { %5565 = vadd.xlane.f32.xlu0 %v5564_v4  ;;  %v7451_v4 = vld [vmem:[%s10596_s7 + $0x30] sm:$0xf] }
0x3e8f   : > { %v5566_v54 = vpop.xlane.xlu0 %5565 }
0x3e90   : > { %8863 = vrcp.f32 %v5566_v54 }
0x3e9a   : > { %v8864_v58 = vpop.eup %8863 }
0x3e9b   : > { %v5568_v59 = vmul.f32 %v8864_v58, %v8862_v52 }
0x3e9d   : > { %v5569_v19 = vmul.f32 %v5568_v59, %v9198_v56  ;;  %v5966_v59 = vsel %vm748_vm3, %v7451_v4, 0 }
0x3e9f   : > { %v5570_v63 = vpack.c.bf16 %v5569_v19, %v5569_v19 }
0x3ea1   : > { %8453 = vmatmul.mubr.msk.bf16.vlgmr.msra.gmra.mrb[164].mxu1 %vm679_vm2, %v5570_v63 }
0x3ea2   : > { %8465 = vmatpush3.bf16.msra.mxu1 %v8775_v60  ;;  %8468 = vmatprep.mubr.msk.bf16.mxu1 %vm8952_vm0, %v8951_v1  ;;  %v8778_v60 = vld [vmem:[%s10594_s5 + $0xe8] sm:$0xff]  }
0x3ea3   : > { %8466 = vmatprep.subr.bf16.mxu1 %v8951_v1 }
0x3ea6   : > { %8467 = vmatpush3.bf16.msra.mxu1 %v8776_v0  ;;  %v8779_v0 = vld [vmem:[%s10593_s4 + $0xe0] sm:$0xff]  }
0x3ea7   : > { %8480 = vmatprep.subr.bf16.mxu1 %v8951_v1 }
0x3ea9   : > { %8469 = vmatmul.mubr.msk.bf16.vlgmr.msra.gmra.mrb[168].mxu1 %vm506_vm1, %v10202_v47 }
0x3eaa   : > { %8482 = vmatprep.mubr.msk.bf16.mxu1 %vm8952_vm0, %v8951_v1 }
0x3f74   : > { %v5612_v2 = vpop.f32.mrb[164].mxu1 }
0x3f75   : > { %v8454_v5 = vpop.f32.mrb[165].mxu1  ;;  %v5618_v19 = vpack.c.bf16 %v5612_v2, %v5612_v2 }
0x3f76   : > { %v5615_v16 = vpop.f32.mrb[166].mxu1 }
0x3f77   : > { %v8455_v6 = vpop.f32.mrb[167].mxu1 }
0x3f78   : > { %v8780_v6 = vld [vmem:[%s10593_s4 + $0xe8] sm:$0xff]  }
0x3f7c   : > { %v5738_v11 = vpop.f32.mrb[168].mxu1 }
0x3f7d   : > { %v5739_v13 = vadd.f32 %v5738_v11, %v5702_v46  ;;  %v8470_v15 = vpop.f32.mrb[169].mxu1  ;;  %v8781_v11 = vld [vmem:[%s10595_s6 + $0xe0] sm:$0xff]  }
0x3f7e   : > { %v5741_v20 = vpop.f32.mrb[170].mxu1 }
0x3f7f   : > { %v5806_v17 = vpack.c.bf16 %v5739_v13, %v5739_v13  ;;  %v8471_v8 = vpop.f32.mrb[171].mxu1 }
0x3f81   : > { %v5811_v18 = vsel %vm679_vm2, %v5806_v17, 0 }
0x3f82   : > { %8481 = vmatpush3.bf16.xpose.msra.mxu1 %v5811_v18 }
0x3f83   : > { %8492 = vmatprep.subr.bf16.mxu1 %v8951_v1 }
0x3f89   : > { %8483 = vmatmul.mubr.msk.bf16.vlgmr.msra.gmra.mrb[172].mxu1 %vm679_vm2, %v5805_v25 }
0x3f8a   : > { %8494 = vmatprep.mubr.msk.bf16.mxu1 %vm8952_vm0, %v8951_v1  ;;  %8493 = vmatpush3.bf16.msra.mxu1 %v5920_v41 }
0x3f8b   : > { %8504 = vmatprep.subr.bf16.mxu1 %v8951_v1 }
0x405c   : > { %v5847_v24 = vpop.f32.mrb[172].mxu1 }
0x405d   : > { %v5848_v37 = vadd.f32 %v10036_v44, %v5847_v24  ;;  %v8484_v26 = vpop.f32.mrb[173].mxu1 }
0x405e   : > { %v5850_v31 = vpop.f32.mrb[174].mxu1 }
0x405f   : > { %v8485_v28 = vpop.f32.mrb[175].mxu1  ;;  %v5853_v32 = vsel %vm679_vm2, %v5848_v37, -inf }
0x4060   : > { %5854 = vmax.xlane.f32.xlu1 %v5853_v32 }
0x4071   : > { %6025 = vrot.lane.b32.xlu1 %v10240_v61, %s10617_s17 }
0x40ed   : > { %v5855_v33 = vpop.xlane.xlu1 %5854 }
0x40ee   : > { %v5856_v34 = vsub.f32 %v5848_v37, %v5855_v33 }
0x40f0   : > { %v5857_v38 = vmul.f32 1.442695, %v5856_v34 }
0x40f2   : > { %8865 = vpow2.f32 %v5857_v38  ;;  %v6026_v38 = vpop.permute.xlu1 %6025 }
0x40fc   : > { %v8866_v30 = vpop.eup %8865 }
0x40fd   : > { %v5859_v3 = vsel %vm679_vm2, %v8866_v30, 0.0 }
0x40fe   : > { %5860 = vadd.xlane.f32.xlu0 %v5859_v3 }
0x4114   : > { %5762 = vrot.lane.b32.xlu0 %v10247_v10, %s10616_s18 }
0x4118   : > { %6086 = vrot.lane.b32.xlu0 %v10236_v53, %s10617_s17 }
0x418b   : > { %v5861_v40 = vpop.xlane.xlu0 %5860 }
0x418c   : > { %8867 = vrcp.f32 %v5861_v40 }
0x418f   : > { %v5763_v43 = vpop.permute.xlu0 %5762 }
0x4190   : > { %v5800_v45 = vadd.f32 %v10282_v42, %v5763_v43  ;;  %v8777_v42 = vld [vmem:[%s10594_s5 + $0xe0] sm:$0xff]  }
0x4192   : > { %v5866_v27 = vpack.c.bf16 %v5800_v45, %v5800_v45 }
0x4193   : > { %v6087_v17 = vpop.permute.xlu0 %6086 }
0x4194   : > { %v5871_v36 = vsel %vm748_vm3, %v5866_v27, 0 }
0x4195   : > { %8487 = vmatpush3.bf16.msra.mxu0 %v5871_v36 }
0x4196   : > { %v8868_v50 = vpop.eup %8867  ;;  %8498 = vmatprep.subr.bf16.mxu0 %v8951_v1 }
0x4197   : > { %v5863_v52 = vmul.f32 %v8868_v50, %v8866_v30 }
0x4199   : > { %v5864_v54 = vmul.f32 %v5863_v52, %v9198_v56 }
0x419b   : > { %v5865_v58 = vpack.c.bf16 %v5864_v54, %v5864_v54 }
0x419d   : > { %8489 = vmatmul.mubr.msk.bf16.vlgmr.msra.gmra.mrb[172].mxu0 %vm679_vm2, %v5865_v58 }
0x419e   : > { %8499 = vmatpush3.bf16.msra.mxu0 %v5966_v59  ;;  %8500 = vmatprep.mubr.msk.bf16.mxu0 %vm8952_vm0, %v8951_v1 }
0x419f   : > { %8512 = vmatprep.subr.bf16.mxu0 %v8951_v1 }
0x41a5   : > { %8501 = vmatmul.mubr.msk.bf16.vlgmr.msra.gmra.mrb[176].mxu0 %vm679_vm2, %v5618_v19 }
0x41a6   : > { %8513 = vmatpush3.bf16.msra.mxu0 %v8777_v42  ;;  %8516 = vmatprep.mubr.msk.bf16.mxu0 %vm8952_vm0, %v8951_v1 }
0x41a7   : > { %8514 = vmatprep.subr.bf16.mxu0 %v8951_v1 }
0x41aa   : > { %8515 = vmatpush3.bf16.msra.mxu0 %v8778_v60 }
0x41ab   : > { %8528 = vmatprep.subr.bf16.mxu0 %v8951_v1 }
0x41ad   : > { %8517 = vmatmul.mubr.msk.bf16.vlgmr.msra.gmra.mrb[180].mxu0 %vm506_vm1, %v10202_v47 }
0x41ae   : > { %8530 = vmatprep.mubr.msk.bf16.mxu0 %vm8952_vm0, %v8951_v1 }
0x4270   : > { %v5907_v63 = vpop.f32.mrb[172].mxu0 }
0x4271   : > { %v5913_v2 = vpack.c.bf16 %v5907_v63, %v5907_v63  ;;  %v8490_v5 = vpop.f32.mrb[173].mxu0 }
0x4272   : > { %v5910_v46 = vpop.f32.mrb[174].mxu0 }
0x4273   : > { %v8491_v16 = vpop.f32.mrb[175].mxu0  ;;  %8495 = vmatmul.mubr.msk.bf16.vlgmr.msra.gmra.mrb[176].mxu1 %vm679_vm2, %v5913_v2 }
0x4274   : > { %8505 = vmatpush3.bf16.msra.mxu1 %v8779_v0  ;;  %8508 = vmatprep.mubr.msk.bf16.mxu1 %vm8952_vm0, %v8951_v1 }
0x4275   : > { %8506 = vmatprep.subr.bf16.mxu1 %v8951_v1 }
0x4278   : > { %v6002_v7 = vpop.f32.mrb[176].mxu0  ;;  %8507 = vmatpush3.bf16.msra.mxu1 %v8780_v6 }
0x4279   : > { %v8502_v13 = vpop.f32.mrb[177].mxu0  ;;  %8520 = vmatprep.subr.bf16.mxu1 %v8951_v1 }
0x427a   : > { %v6005_v15 = vpop.f32.mrb[178].mxu0 }
0x427b   : > { %v8503_v20 = vpop.f32.mrb[179].mxu0  ;;  %8509 = vmatmul.mubr.msk.bf16.vlgmr.msra.gmra.mrb[180].mxu1 %vm506_vm1, %v10202_v47 }
0x427c   : > { %8521 = vmatpush3.bf16.msra.mxu1 %v8781_v11  ;;  %8524 = vmatprep.mubr.msk.bf16.mxu1 %vm8952_vm0, %v8951_v1 }
0x427d   : > { %8522 = vmatprep.subr.bf16.mxu1 %v8951_v1 }
0x4280   : > { %v6123_v8 = vpop.f32.mrb[180].mxu0  ;;  %8523 = vmatpush3.bf16.msra.mxu1 %v8782_v21  ;;  %v8783_v21 = vld [vmem:[%s10593_s4 + $0xf0] sm:$0xff]  }
0x4281   : > { %v6124_v18 = vadd.f32 %v6123_v8, %v6087_v17  ;;  %v8518_v23 = vpop.f32.mrb[181].mxu0  ;;  %8534 = vmatprep.subr.bf16.mxu1 %v8951_v1  ;;  %v8784_v17 = vld [vmem:[%s10593_s4 + $0xf8] sm:$0xff]   ;;  %v8785_v8 = vld [vmem:[%s10595_s6 + $0xf0] sm:$0xff]  }
0x4282   : > { %v6126_v25 = vpop.f32.mrb[182].mxu0 }
0x4283   : > { %v6190_v24 = vpack.c.bf16 %v6124_v18, %v6124_v18  ;;  %v8519_v37 = vpop.f32.mrb[183].mxu0  ;;  %8525 = vmatmul.mubr.msk.bf16.vlgmr.msra.gmra.mrb[184].mxu1 %vm506_vm1, %v10202_v47  ;;  %v8786_v18 = vld [vmem:[%s10595_s6 + $0xf8] sm:$0xff]   ;;  %v8787_v25 = vld [vmem:[%s10594_s5 + $0xf0] sm:$0xff]  }
0x4284   : > { %8536 = vmatprep.mubr.msk.bf16.mxu1 %vm8952_vm0, %v8951_v1 }
0x4285   : > { %v6195_v26 = vsel %vm679_vm2, %v6190_v24, 0 }
0x4286   : > { %8529 = vmatpush3.bf16.xpose.msra.mxu0 %v6195_v26 }
0x4287   : > { %8540 = vmatprep.subr.bf16.mxu0 %v8951_v1 }
0x4346   : > { %v5956_v31 = vpop.f32.mrb[176].mxu1 }
0x4347   : > { %v10380_v28 = vadd.f32 %v6002_v7, %v5956_v31  ;;  %v8496_v32 = vpop.f32.mrb[177].mxu1 }
0x4348   : > { %v5959_v33 = vpop.f32.mrb[178].mxu1  ;;  %v8788_v32 = vld [vmem:[%s10594_s5 + $0xf8] sm:$0xff]  }
0x4349   : > { %v8497_v34 = vpop.f32.mrb[179].mxu1 }
0x434e   : > { %v6062_v30 = vpop.f32.mrb[180].mxu1 }
0x434f   : > { %v6063_v3 = vadd.f32 %v6062_v30, %v6026_v38  ;;  %v8510_v39 = vpop.f32.mrb[181].mxu1 }
0x4350   : > { %v6065_v41 = vpop.f32.mrb[182].mxu1 }
0x4351   : > { %v6068_v40 = vmul.f32 0.35355338, %v6063_v3  ;;  %v8511_v43 = vpop.f32.mrb[183].mxu1 }
0x4353   : > { %v6189_v45 = vpack.c.bf16 %v6068_v40, %v6068_v40 }
0x4355   : > { %8531 = vmatmul.mubr.msk.bf16.vlgmr.msra.gmra.mrb[184].mxu0 %vm679_vm2, %v6189_v45 }
0x4356   : > { %v6183_v27 = vpop.f32.mrb[184].mxu1  ;;  %8542 = vmatprep.mubr.msk.bf16.mxu0 %vm8952_vm0, %v8951_v1 }
0x4357   : > { %v8526_v36 = vpop.f32.mrb[185].mxu1 }
0x4358   : > { %v6186_v50 = vpop.f32.mrb[186].mxu1 }
0x4359   : > { %v8527_v52 = vpop.f32.mrb[187].mxu1 }
0x4428   : > { %v6231_v4 = vpop.f32.mrb[184].mxu0 }
0x4429   : > { %v6232_v54 = vadd.f32 %v10036_v44, %v6231_v4  ;;  %v8532_v58 = vpop.f32.mrb[185].mxu0 }
0x442a   : > { %v6234_v59 = vpop.f32.mrb[186].mxu0 }
0x442b   : > { %v8533_v42 = vpop.f32.mrb[187].mxu0  ;;  %v6237_v19 = vsel %vm679_vm2, %v6232_v54, -inf }
0x442c   : > { %6238 = vmax.xlane.f32.xlu0 %v6237_v19 }
0x4442   : > { %6146 = vrot.lane.b32.xlu0 %v10247_v10, %s10617_s17 }
0x4446   : > { %6364 = vrot.lane.b32.xlu0 %v10240_v61, %s10618_s20  ;;  %v7501_v61 = vld [vmem:[%s10596_s7 + $0x38] sm:$0xf] }
0x4447   : > { %v6304_v7 = vsel %vm748_vm3, %v7501_v61, 0 }
0x4448   : > { %8541 = vmatpush3.bf16.msra.mxu0 %v6304_v7 }
0x4449   : > { %8554 = vmatprep.subr.bf16.mxu0 %v8951_v1 }
0x44b9   : > { %v6239_v60 = vpop.xlane.xlu0 %6238 }
0x44ba   : > { %v6240_v63 = vsub.f32 %v6232_v54, %v6239_v60 }
0x44bc   : > { %v6241_v0 = vmul.f32 1.442695, %v6240_v63 }
0x44bd   : > { %v6147_v2 = vpop.permute.xlu0 %6146 }
0x44be   : > { %8869 = vpow2.f32 %v6241_v0  ;;  %v6184_v5 = vadd.f32 %v6183_v27, %v6147_v2 }
0x44c0   : > { %v6250_v46 = vpack.c.bf16 %v6184_v5, %v6184_v5  ;;  %v8886_v5 = vld [vmem:[%s9170_s29] ss:$0 sm:$0xff]  ;;  %s8891_s29 = sshll.u32 %s8957_s25, 4  ;;  %s8892_s29 = int_to_ptr.vmem [resolvable:$false] %s8891_s29 }
0x44c1   : > { %v6365_v4 = vpop.permute.xlu0 %6364  ;;  %s8893_s1 = scalar_lea.vmem %s8892_s29, 256 }
0x44c2   : > { %v6255_v44 = vsel %vm748_vm3, %v6250_v46, 0 }
0x44c3   : > { %8535 = vmatpush3.bf16.msra.mxu1 %v6255_v44 }
0x44c4   : > { %8546 = vmatprep.subr.bf16.mxu1 %v8951_v1 }
0x44c8   : > { %v8870_v16 = vpop.eup %8869 }
0x44c9   : > { %v6243_v6 = vsel %vm679_vm2, %v8870_v16, 0.0 }
0x44ca   : > { %6244 = vadd.xlane.f32.xlu1 %v6243_v6 }
0x44db   : > { %6425 = vrot.lane.b32.xlu1 %v10236_v53, %s10618_s20 }
0x4557   : > { %v6245_v11 = vpop.xlane.xlu1 %6244 }
0x4558   : > { %8871 = vrcp.f32 %v6245_v11 }
0x455b   : > { %v6426_v52 = vpop.permute.xlu1 %6425 }
0x4562   : > { %v8872_v13 = vpop.eup %8871 }
0x4563   : > { %v6247_v15 = vmul.f32 %v8872_v13, %v8870_v16 }
0x4565   : > { %v6248_v20 = vmul.f32 %v6247_v15, %v9198_v56 }
0x4567   : > { %v6249_v53 = vpack.c.bf16 %v6248_v20, %v6248_v20 }
0x4569   : > { %8537 = vmatmul.mubr.msk.bf16.vlgmr.msra.gmra.mrb[188].mxu1 %vm679_vm2, %v6249_v53 }
0x456a   : > { %8547 = vmatpush3.bf16.msra.mxu1 %v8783_v21  ;;  %8550 = vmatprep.mubr.msk.bf16.mxu1 %vm8952_vm0, %v8951_v1 }
0x456b   : > { %8548 = vmatprep.subr.bf16.mxu1 %v8951_v1 }
0x456e   : > { %8549 = vmatpush3.bf16.msra.mxu1 %v8784_v17 }
0x456f   : > { %8562 = vmatprep.subr.bf16.mxu1 %v8951_v1 }
0x4571   : > { %8551 = vmatmul.mubr.msk.bf16.vlgmr.msra.gmra.mrb[192].mxu1 %vm506_vm1, %v10202_v47 }
0x4572   : > { %8563 = vmatpush3.bf16.msra.mxu1 %v8785_v8  ;;  %8566 = vmatprep.mubr.msk.bf16.mxu1 %vm8952_vm0, %v8951_v1 }
0x4573   : > { %8564 = vmatprep.subr.bf16.mxu1 %v8951_v1 }
0x4576   : > { %8565 = vmatpush3.bf16.msra.mxu1 %v8786_v18 }
0x4577   : > { %8576 = vmatprep.subr.bf16.mxu1 %v8951_v1 }
0x4579   : > { %8567 = vmatmul.mubr.msk.bf16.vlgmr.msra.gmra.mrb[196].mxu1 %vm506_vm1, %v10202_v47 }
0x457a   : > { %8578 = vmatprep.mubr.msk.bf16.mxu1 %vm8952_vm0, %v8951_v1 }
0x463c   : > { %v6291_v23 = vpop.f32.mrb[188].mxu1 }
0x463d   : > { %v6297_v24 = vpack.c.bf16 %v6291_v23, %v6291_v23  ;;  %v8538_v37 = vpop.f32.mrb[189].mxu1 }
0x463e   : > { %v6294_v26 = vpop.f32.mrb[190].mxu1 }
0x463f   : > { %v8539_v31 = vpop.f32.mrb[191].mxu1  ;;  %8543 = vmatmul.mubr.msk.bf16.vlgmr.msra.gmra.mrb[188].mxu0 %vm679_vm2, %v6297_v24 }
0x4640   : > { %8555 = vmatpush3.bf16.msra.mxu0 %v8787_v25  ;;  %8558 = vmatprep.mubr.msk.bf16.mxu0 %vm8952_vm0, %v8951_v1 }
0x4641   : > { %8556 = vmatprep.subr.bf16.mxu0 %v8951_v1 }
0x4644   : > { %v6401_v33 = vpop.f32.mrb[192].mxu1  ;;  %8557 = vmatpush3.bf16.msra.mxu0 %v8788_v32 }
0x4645   : > { %v8552_v34 = vpop.f32.mrb[193].mxu1  ;;  %8570 = vmatprep.subr.bf16.mxu0 %v8951_v1  ;;  %v6402_v42 = vadd.f32 %v6401_v33, %v6365_v4 }
0x4646   : > { %v6404_v38 = vpop.f32.mrb[194].mxu1 }
0x4647   : > { %v8553_v30 = vpop.f32.mrb[195].mxu1  ;;  %8559 = vmatmul.mubr.msk.bf16.vlgmr.msra.gmra.mrb[192].mxu0 %vm506_vm1, %v10202_v47  ;;  %v6407_v0 = vmul.f32 0.35355338, %v6402_v42 }
0x4648   : > { %8572 = vmatprep.mubr.msk.bf16.mxu0 %vm8952_vm0, %v8951_v1  ;;  %v6689_v30 = vrot.slane %v10232_v62, %v9396_v22 }
0x464c   : > { %v6522_v3 = vpop.f32.mrb[196].mxu1 }
0x464d   : > { %v8568_v39 = vpop.f32.mrb[197].mxu1 }
0x464e   : > { %v6525_v41 = vpop.f32.mrb[198].mxu1 }
0x464f   : > { %v8569_v40 = vpop.f32.mrb[199].mxu1 }
0x4712   : > { %v6340_v43 = vpop.f32.mrb[188].mxu0 }
0x4713   : > { %v10445_v45 = vadd.f32 %v6340_v43, %v10380_v28  ;;  %v8544_v27 = vpop.f32.mrb[189].mxu0  ;;  %v6528_v28 = vpack.c.bf16 %v6407_v0, %v6407_v0 }
0x4714   : > { %v6343_v36 = vpop.f32.mrb[190].mxu0 }
0x4715   : > { %v8545_v50 = vpop.f32.mrb[191].mxu0 }
0x471a   : > { %v6462_v54 = vpop.f32.mrb[192].mxu0 }
0x471b   : > { %v6463_v58 = vadd.f32 %v6462_v54, %v6426_v52  ;;  %v8560_v47 = vpop.f32.mrb[193].mxu0 }
0x471c   : > { %v6465_v59 = vpop.f32.mrb[194].mxu0 }
0x471d   : > { %v6529_v19 = vpack.c.bf16 %v6463_v58, %v6463_v58  ;;  %v8561_v60 = vpop.f32.mrb[195].mxu0 }
0x471f   : > { %v6534_v63 = vsel %vm679_vm2, %v6529_v19, 0 }
0x4720   : > { %8571 = vmatpush3.bf16.xpose.msra.mxu0 %v6534_v63 }
0x4721   : > { %8582 = vmatprep.subr.bf16.mxu0 %v8951_v1 }
0x4727   : > { %8573 = vmatmul.mubr.msk.bf16.vlgmr.msra.gmra.mrb[196].mxu0 %vm679_vm2, %v6528_v28 }
0x4728   : > { %8584 = vmatprep.mubr.msk.bf16.mxu0 %vm8952_vm0, %v8951_v1 }
0x47fa   : > { %v6570_v2 = vpop.f32.mrb[196].mxu0 }
0x47fb   : > { %v6571_v46 = vadd.f32 %v8886_v5, %v6570_v2  ;;  %v8574_v44 = vpop.f32.mrb[197].mxu0 }
0x47fc   : > { %v6573_v16 = vpop.f32.mrb[198].mxu0 }
0x47fd   : > { %v8575_v6 = vpop.f32.mrb[199].mxu0  ;;  %v6576_v61 = vsel %vm679_vm2, %v6571_v46, -inf }
0x47fe   : > { %6577 = vmax.xlane.f32.xlu0 %v6576_v61  ;;  %v8792_v61 = vld [vmem:[%s10598_s9 + $0xc8] sm:$0xff]  }
0x4814   : > { %6485 = vrot.lane.b32.xlu0 %v10247_v10, %s10618_s20  ;;  %v7526_v10 = vld [vmem:[%s10596_s7 + $0x3c] sm:$0xf]  ;;  %s439_s20 = sand.u32 1, %s8941_s22  }
0x4815   : > { %v6643_v18 = vsel %vm748_vm3, %v7526_v10, 0  ;;  %s7031_s18 = sshll.u32 %s439_s20, 3  ;;  %s6922_s2 = scalar_lea.sflag [#allocation3], %s439_s20 }
0x4816   : > { %8583 = vmatpush3.bf16.msra.mxu0 %v6643_v18  ;;  %v6737_v18 = vrot.slane %v10232_v62, %v3511_v57  ;;  %s441_s26 = scalar_lea.vmem [#allocation2], %s7031_s18 }
0x4817   : > { %8596 = vmatprep.subr.bf16.mxu0 %v8951_v1  ;;  %s6935_s19 = sshll.u32 %s441_s26, 4  ;;  %s10548_s19 = int_to_ptr.vmem [resolvable:$true] %s6935_s19 }
0x4818   : > { %s8887_s15 = scalar_lea.vmem %s10548_s19, 128  ;;  %p8894_p0 = scmp.lt.s32.totalorder %s10548_s19, %s8892_s29 }
0x4819   : > { %p8888_p11 = scmp.ne.s32.totalorder %s10548_s19, %s8887_s15  ;;  %p8895_p1 = scmp.lt.s32.totalorder %s8893_s1, %s8887_s15 }
0x481b   : > { %p8889_p12 = pnand %p8888_p11, %p9061_p5  ;;  %p8896_p2 = por %p8895_p1, %p8894_p0 }
0x481d   : > { %p8890_p13 = pneg %p8889_p12 }
0x481f   : > { %p8897_p3 = pnand %p8896_p2, %p8890_p13 }
0x488b   : > { %v6578_v7 = vpop.xlane.xlu0 %6577 }
0x488c   : > { %v6579_v11 = vsub.f32 %v6571_v46, %v6578_v7  ;;  %v8793_v7 = vld [vmem:[%s10598_s9 + $0xd0] sm:$0xff]  }
0x488e   : > { %v6580_v13 = vmul.f32 1.442695, %v6579_v11  ;;  %v8794_v11 = vld [vmem:[%s10598_s9 + $0xd8] sm:$0xff]  }
0x488f   : > { %v6486_v15 = vpop.permute.xlu0 %6485 }
0x4890   : > { %8873 = vpow2.f32 %v6580_v13  ;;  %v6523_v20 = vadd.f32 %v6522_v3, %v6486_v15  ;;  %v8795_v13 = vld [vmem:[%s10598_s9 + $0xe0] sm:$0xff]   ;;  %v8796_v15 = vld [vmem:[%s10598_s9 + $0xe8] sm:$0xff]  }
0x4892   : > { %v6589_v21 = vpack.c.bf16 %v6523_v20, %v6523_v20 }
0x4894   : > { %v6594_v53 = vsel %vm748_vm3, %v6589_v21, 0 }
0x4895   : > { %8577 = vmatpush3.bf16.msra.mxu1 %v6594_v53 }
0x4896   : > { %8588 = vmatprep.subr.bf16.mxu1 %v8951_v1 }
0x489a   : > { %v8874_v17 = vpop.eup %8873 }
0x489b   : > { %v6582_v8 = vsel %vm679_vm2, %v8874_v17, 0.0 }
0x489c   : > { %6583 = vadd.xlane.f32.xlu1 %v6582_v8 }
0x4929   : > { %v6584_v23 = vpop.xlane.xlu1 %6583 }
0x492a   : > { %8875 = vrcp.f32 %v6584_v23 }
0x4934   : > { %v8876_v25 = vpop.eup %8875 }
0x4935   : > { %v6586_v24 = vmul.f32 %v8876_v25, %v8874_v17  ;;  %v6732_v17 = vrot.slane %v10232_v62, %v3506_v55  ;;  %v8798_v55 = vld [vmem:[%s10598_s9 + $0xf8] sm:$0xff]  }
0x4937   : > { %v6587_v37 = vmul.f32 %v6586_v24, %v9198_v56 }
0x4939   : > { %v6588_v26 = vpack.c.bf16 %v6587_v37, %v6587_v37  ;;  %v8797_v37 = vld [vmem:[%s10598_s9 + $0xf0] sm:$0xff]  }
0x493b   : > { %8579 = vmatmul.mubr.msk.bf16.vlgmr.msra.gmra.mrb[200].mxu1 %vm679_vm2, %v6588_v26 }
0x493c   : > { %8592 = vmatprep.mubr.msk.bf16.mxu1 %vm8952_vm0, %v8951_v1 }
0x4a0e   : > { %v6630_v31 = vpop.f32.mrb[200].mxu1 }
0x4a0f   : > { %v6636_v32 = vpack.c.bf16 %v6630_v31, %v6630_v31  ;;  %v8580_v33 = vpop.f32.mrb[201].mxu1 }
0x4a10   : > { %v6633_v34 = vpop.f32.mrb[202].mxu1 }
0x4a11   : > { %v8581_v38 = vpop.f32.mrb[203].mxu1  ;;  %8585 = vmatmul.mubr.msk.bf16.vlgmr.msra.gmra.mrb[200].mxu0 %vm679_vm2, %v6636_v32 }
0x4a12   : > { %8612 = vmatprep.mubr.msk.bf16.mxu0 %vm8952_vm0, %v8951_v1 }
0x4ae4   : > { %v6679_v3 = vpop.f32.mrb[200].mxu0 }
0x4ae5   : > { %v6685_v39 = vadd.f32 %v6679_v3, %v10445_v45  ;;  %v8586_v41 = vpop.f32.mrb[201].mxu0  ;;  %v6708_v45 = vrot.slane %v10232_v62, %v9436_v48  ;;  %v8789_v48 = vld [vmem:[%s10597_s8 + $0x30] sm:$0xff]  }
0x4ae6   : > { %v6682_v40 = vpop.f32.mrb[202].mxu0  ;;  %8589 = vmatpush3.bf16.msra.mxu1 %v8789_v48 }
0x4ae7   : > { %v6690_v43 = vadd.f32 %v6689_v30, %v6685_v39  ;;  %v8587_v27 = vpop.f32.mrb[203].mxu0  ;;  %8590 = vmatprep.subr.bf16.mxu1 %v8951_v1 }
0x4ae9   : > { %v6691_v36 = vadd.f32 %v6690_v43, %v10195_v51  ;;  %v6713_v51 = vrot.slane %v10232_v62, %v9439_v49  ;;  %v8790_v49 = vld [vmem:[%s10597_s8 + $0x38] sm:$0xff]  }
0x4aea   : > { %8591 = vmatpush3.bf16.msra.mxu1 %v8790_v49 }
0x4aeb   : > { %v6692_v50 = vsel %vm506_vm1, %v6691_v36, 0.0 }
0x4aec   : > { %6693 = vadd.xlane.f32.xlu1 %v6692_v50 }
0x4b79   : > { %v6694_v52 = vpop.xlane.xlu1 %6693 }
0x4b7a   : > { %v6695_v4 = vmul.f32 0.03125, %v6694_v52 }
0x4b7c   : > { %v6696_v54 = vsub.f32 %v6691_v36, %v6695_v4 }
0x4b7e   : > { %v6697_v58 = vmul.f32 %v6696_v54, %v6696_v54 }
0x4b80   : > { %v6698_v47 = vsel %vm506_vm1, %v6697_v58, 0.0 }
0x4b81   : > { %6699 = vadd.xlane.f32.xlu1 %v6698_v47 }
0x4c0e   : > { %v6700_v22 = vpop.xlane.xlu1 %6699 }
0x4c0f   : > { %v6701_v59 = vmul.f32 0.03125, %v6700_v22 }
0x4c11   : > { %v6702_v42 = vadd.f32 1e-05, %v6701_v59 }
0x4c13   : > { %8877 = vrsqrt.f32 %v6702_v42 }
0x4c1d   : > { %v8878_v19 = vpop.eup %8877 }
0x4c1e   : > { %v6704_v60 = vmul.f32 %v8878_v19, %v6696_v54 }
0x4c20   : > { %v6709_v63 = vmul.f32 %v6708_v45, %v6704_v60 }
0x4c22   : > { %v6714_v0 = vadd.f32 %v6713_v51, %v6709_v63 }
0x4c24   : > { %v6715_v28 = vadd.f32 %v6714_v0, %v9774_v35  ;;  %v8791_v35 = vld [vmem:[%s10598_s9 + $0xc0] sm:$0xff]  }
0x4c25   : > { %8597 = vmatpush3.bf16.msra.mxu0 %v8791_v35 }
0x4c26   : > { %v6716_v2 = vsel %vm506_vm1, %v6715_v28, 0.0  ;;  %8598 = vmatprep.subr.bf16.mxu0 %v8951_v1 }
0x4c27   : > { %6717 = vadd.xlane.f32.xlu0 %v6716_v2 }
0x4c29   : > { %8599 = vmatpush3.bf16.msra.mxu0 %v8792_v61 }
0x4c2a   : > { %8600 = vmatprep.subr.bf16.mxu0 %v8951_v1 }
0x4c2d   : > { %8601 = vmatpush3.bf16.msra.mxu0 %v8793_v7 }
0x4c2e   : > { %8602 = vmatprep.subr.bf16.mxu0 %v8951_v1 }
0x4c31   : > { %8603 = vmatpush3.bf16.msra.mxu0 %v8794_v11 }
0x4c32   : > { %8604 = vmatprep.subr.bf16.mxu0 %v8951_v1 }
0x4c35   : > { %8605 = vmatpush3.bf16.msra.mxu0 %v8795_v13 }
0x4c36   : > { %8606 = vmatprep.subr.bf16.mxu0 %v8951_v1 }
0x4c39   : > { %8607 = vmatpush3.bf16.msra.mxu0 %v8796_v15 }
0x4c3a   : > { %8608 = vmatprep.subr.bf16.mxu0 %v8951_v1 }
0x4c3d   : > { %8609 = vmatpush3.bf16.msra.mxu0 %v8797_v37 }
0x4c3e   : > { %8610 = vmatprep.subr.bf16.mxu0 %v8951_v1  ;;  %v7426_v1 = vld [vmem:[%s10599_s10 + $0x38] sm:$0x7] }
0x4c3f   : > { %v6806_v38 = vrot.slane %v7426_v1, %v9134_v14  ;;  %v6918_v42 = vrot.slane %v7426_v1, %v9157_v29 }
0x4c41   : > { %8611 = vmatpush3.bf16.msra.mxu0 %v8798_v55 }
0x4cb4   : > { %v6718_v5 = vpop.xlane.xlu0 %6717 }
0x4cb5   : > { %v6719_v46 = vmul.f32 0.03125, %v6718_v5 }
0x4cb7   : > { %v6720_v44 = vsub.f32 %v6715_v28, %v6719_v46 }
0x4cb9   : > { %v6721_v16 = vmul.f32 %v6720_v44, %v6720_v44 }
0x4cbb   : > { %v6722_v6 = vsel %vm506_vm1, %v6721_v16, 0.0 }
0x4cbc   : > { %6723 = vadd.xlane.f32.xlu1 %v6722_v6 }
0x4d49   : > { %v6724_v20 = vpop.xlane.xlu1 %6723 }
0x4d4a   : > { %v6725_v21 = vmul.f32 0.03125, %v6724_v20 }
0x4d4c   : > { %v6726_v53 = vadd.f32 1e-05, %v6725_v21 }
0x4d4e   : > { %8879 = vrsqrt.f32 %v6726_v53 }
0x4d58   : > { %v8880_v8 = vpop.eup %8879 }
0x4d59   : > { %v6728_v10 = vmul.f32 %v8880_v8, %v6720_v44 }
0x4d5b   : > { %v6733_v23 = vmul.f32 %v6732_v17, %v6728_v10 }
0x4d5d   : > { %v6738_v25 = vadd.f32 %v6737_v18, %v6733_v23 }
0x4d5f   : > { %v6739_v24 = vpack.c.bf16 %v6738_v25, %v6738_v25 }
0x4d61   : > { %8593 = vmatmul.mubr.msk.bf16.vlgmr.msra.gmra.mrb[204].mxu1 %vm506_vm1, %v6739_v24 }
0x4e34   : > { %v6795_v57 = vpop.f32.mrb[204].mxu1 }
0x4e35   : > { %v6796_v62 = vadd.f32 %v7528_v9, %v6795_v57  ;;  %v8594_v26 = vpop.f32.mrb[205].mxu1 }
0x4e36   : > { %v6798_v31 = vpop.f32.mrb[206].mxu1 }
0x4e37   : > { %v6801_v32 = vmax.f32 %v6796_v62, 0.0  ;;  %v8595_v33 = vpop.f32.mrb[207].mxu1 }
0x4e39   : > { %v6802_v34 = vpack.c.bf16 %v6801_v32, %v6801_v32 }
0x4e3b   : > { %8613 = vmatmul.mubr.bf16.vlgmr.msra.gmra.mrb[204].mxu0 %v6802_v34 }
0x4f0e   : > { %v6889_v30 = vpop.f32.mrb[204].mxu0 }
0x4f0f   : > { %v6890_v3 = vadd.f32 %v6889_v30, %v6806_v38  ;;  %v8614_v39 = vpop.f32.mrb[205].mxu0 }
0x4f10   : > { %v6892_v41 = vpop.f32.mrb[206].mxu0 }
0x4f11   : > { %v6895_v40 = vadd.f32 %v6890_v3, %v6738_v25  ;;  %v8615_v43 = vpop.f32.mrb[207].mxu0 }
0x4f13   : > { %v6896_v27 = vmul.f32 %v6895_v40, %v9198_v56  ;;  %v6913_v56 = vrot.slane %v7426_v1, %v9131_v12 }
0x4f15   : > { %v6897_v36 = vsel %vm506_vm1, %v6896_v27, 0.0 }
0x4f16   : > { %6898 = vadd.xlane.f32.xlu1 %v6897_v36 }
0x4fa3   : > { %v6899_v50 = vpop.xlane.xlu1 %6898 }
0x4fa4   : > { %v6900_v52 = vmul.f32 0.03125, %v6899_v50 }
0x4fa6   : > { %v6901_v4 = vsub.f32 %v6896_v27, %v6900_v52 }
0x4fa8   : > { %v6902_v54 = vmul.f32 %v6901_v4, %v6901_v4 }
0x4faa   : > { %v6903_v58 = vsel %vm506_vm1, %v6902_v54, 0.0 }
0x4fab   : > { %6904 = vadd.xlane.f32.xlu1 %v6903_v58 }
0x5038   : > { %v6905_v14 = vpop.xlane.xlu1 %6904 }
0x5039   : > { %v6906_v47 = vmul.f32 0.03125, %v6905_v14 }
0x503b   : > { %v6907_v22 = vadd.f32 1e-05, %v6906_v47 }
0x503d   : > { %8881 = vrsqrt.f32 %v6907_v22 }
0x5047   : > { %v8882_v59 = vpop.eup %8881 }
0x5048   : > { %v6909_v45 = vmul.f32 %v8882_v59, %v6901_v4 }
0x504a   : > { %v6914_v19 = vmul.f32 %v6913_v56, %v6909_v45 }
0x504c   : > { %v6919_v60 = vadd.f32 %v6918_v42, %v6914_v19 }
0x504e   : > { %6920 = vst.msk [vmem:[%s441_s26] sm:$0xff] %vm506_vm1, %v6919_v60 }
0x504f   : > { %8900 = shalt.err (!%p8897_p3)
}
0x5050   : > { %s8901_s20 = scalar_lea.hbm %s10546_s16, 128  ;;  %s8905_s26 = scalar_lea.hbm %s10601_s12, 256 }
0x5051   : > { %p8902_p4 = scmp.ne.s32.totalorder %s10546_s16, %s8901_s20  ;;  %p8906_p9 = scmp.lt.u32.totalorder %s10546_s16, %s10601_s12 }
0x5052   : > { %p8907_p10 = scmp.lt.u32.totalorder %s8905_s26, %s8901_s20  ;;  %p8909_p12 = scmp.lt.u32.totalorder %s8901_s20, %s10546_s16 }
0x5053   : > { %p8903_p7 = pnand %p8902_p4, %p9061_p5 }
0x5054   : > { %p8908_p11 = por %p8907_p10, %p8906_p9 }
0x5055   : > { %p8904_p8 = pneg %p8903_p7 }
0x5056   : > { %p8910_p13 = por %p8909_p12, %p8908_p11 }
0x5058   : > { %p8911_p0 = pnand %p8910_p13, %p8904_p8 }
0x505a   : > { %8914 = shalt.err (!%p8911_p0)
}
0x505b   : > { %8616 = dma.vmem_to_hbm [thread:$0]  (%p9061_p5), %s10548_s19, 128, %s10546_s16, %s6922_s2  }
0x505c PF: > { %p8622_p1 = scmp.ge.s32.totalorder %s8949_s24, 2  ;;  %s6947_s15 = sand.u32 1, %s8937_s21  }
0x505d   : > { %s6948_s25 = scalar_lea.sflag [#allocation3], %s6947_s15 }
0x505e   : > { %p8619_p2 = pnand %p8622_p1, %p9065_p6 }
0x5060   : > { %8932 = dma.done.wait (!%p8619_p2), %s6948_s25, 128  }
0x5061   : > { %8934 = vsyncadd (!%p8619_p2), %s6948_s25, 4294967168  ;;  %p22_p3 = scmp.ge.s32.totalorder %s9048_s27, 4   ;;  %s10621_s21 = smov %s8941_s22 }
0x5062   : > { %s10622_s22 = smov %s8945_s23  ;;  %s10623_s23 = smov %s9059_s30 }
0x5063   : > { %s10624_s24 = smov %s9048_s27  ;;  %24 = sbr.rel (!%p22_p3) target bundleno = 7 (0x7), region = 184 }
0x506a   :  { %6953 = vsyncpa [#allocation3], 1 }
0x506b   :  { %6955 = vsyncpa [#allocation3 + $0x1], 1 }

</bundles_post_ra>
